<compile_context>
chip_gen: v7x
topology: tpu7x:2x2x1
jax: 0.10.0
libtpu: 0.0.40
codegen_flags: <defaults>
</compile_context>

<pallas_src>
import functools

import jax
import jax.numpy as jnp
from jax import lax
from jax.experimental import pallas as pl
from jax.experimental.pallas import tpu as pltpu


def _round_up(x, m):
    return (x + m - 1) // m * m


# ----------------------------------------------------------------------------------------
# Kernel
# ----------------------------------------------------------------------------------------
def _conv3x3_taps(strip_fn, rows, Wp, w_ref):
    """3x3 conv over a padded-width strip via 9 MXU taps -> (rows*Wp, Cout) f32.

    strip_fn(ky) returns the (rows, Wp, Cin) bf16 strip whose local row r corresponds to
    output row r shifted by ky-1.  The kx tap is a +-1 shift along the flat (rows*Wp) axis.

    INVARIANT (roll wrap-around safety): the width axis carries one halo column per side
    (col 0 and cols >= W+1 of Wp are padding).  Wrapped / cross-row values from the +-1 flat
    shift can only land in those padding columns; they are (a) zeroed in y1 by the column
    mask before conv2 and (b) sliced away from the final output by the wrapper
    (out[:, :, 1:W+1]).  Changing any one of {Wp padding, mask range 1..W, wrapper slice}
    requires changing the others.
    """
    cout = w_ref.shape[-1]
    acc = jnp.zeros((rows * Wp, cout), jnp.float32)
    for ky in range(3):
        strip = strip_fn(ky)
        f = strip.reshape(rows * Wp, strip.shape[-1])
        for kx in range(3):
            fk = f if kx == 1 else jnp.roll(f, 1 - kx, axis=0)
            acc = acc + jnp.dot(fk, w_ref[ky, kx], preferred_element_type=jnp.float32)
    return acc


def _double_conv_kernel(x_hbm, w1_ref, w2_ref, b1_ref, b2_ref, o_ref, xbuf, sem, *,
                        H, W, TH, Wp, Cpo, packed_conv1):
    """Fused (conv3x3 -> BN -> ReLU) x2 for one (batch, row-tile) grid step.

    x_hbm : packed_conv1: (N, H+2, Wp, K1p) bf16 9-tap im2col input (1 zero row each side)
            else        : (N, H+4, Wp, Cpi) bf16 (2 zero rows each side).  Stays in HBM;
            the row window is DMA'd manually with cross-step double buffering.
    w1_ref: packed: (K1p, Cpo) ; else (3, 3, Cpi, Cpo)   -- BN1 scale folded in, bf16.
    w2_ref: (3, 3, Cpo, Cpo) bf16                        -- BN2 scale folded in.
    b1/b2 : (1, Cpo) f32 folded BN shifts.
    o_ref : (1, TH, Wp, Cpo) bf16 output tile (padding sliced off in the wrapper).
    xbuf  : (2, win, Wp, Kin) bf16 double-buffered input window ; sem : DMA((2,)).
    """
    n = pl.program_id(0)
    h = pl.program_id(1)
    nH = pl.num_programs(1)
    R1 = TH + 2                                   # conv1 rows = tile + 1 halo row each side
    win = R1 if packed_conv1 else TH + 4

    def copy_in(nn, hh, slot):
        r0 = hh * TH
        if TH % 8 == 0:
            r0 = pl.multiple_of(r0, 8)
        return pltpu.make_async_copy(x_hbm.at[nn, pl.ds(r0, win)], xbuf.at[slot],
                                     sem.at[slot])

    # ---- double-buffered input-window DMA (prefetch never crosses the batch axis, so the
    # ---- "parallel" N axis can still be split across TensorCores) ----
    @pl.when(h == 0)
    def _():                                      # first tile of this image: fetch current
        copy_in(n, 0, 0).start()

    @pl.when(h + 1 < nH)
    def _():                                      # prefetch next row-tile into other slot
        copy_in(n, h + 1, (h + 1) % 2).start()

    slot = h % 2
    copy_in(n, h, slot).wait()                    # wait for the current slot only

    # ------------------ conv1 (BN1 scale folded into weights) + shift + ReLU -----------------
    if packed_conv1:
        xw = xbuf[slot]                           # (R1, Wp, K1p) bf16, 9-tap im2col channels
        acc1 = jnp.dot(xw.reshape(R1 * Wp, xw.shape[-1]), w1_ref[...],
                       preferred_element_type=jnp.float32)
    else:
        acc1 = _conv3x3_taps(lambda ky: xbuf[slot, pl.ds(ky, R1)], R1, Wp, w1_ref)
    y1 = jnp.maximum(acc1 + b1_ref[...], 0.0).reshape(R1, Wp, Cpo)

    # Rows outside the image and the width-padding columns must be exact zeros: they act as
    # conv2's zero padding (acc is 0 there, but ReLU(shift1) != 0 in general).  Cheap masks:
    # static (1,Wp,1) column compare + (R1,1,1) global-row compare, broadcast by one where.
    col = lax.broadcasted_iota(jnp.int32, (1, Wp, 1), 1)
    row = h * TH - 1 + lax.broadcasted_iota(jnp.int32, (R1, 1, 1), 0)
    valid = (col >= 1) & (col <= W) & (row >= 0) & (row < H)
    y1 = jnp.where(valid, y1, 0.0).astype(jnp.bfloat16)

    # ------------------ conv2 (BN2 scale folded into weights) + shift + ReLU -----------------
    acc2 = _conv3x3_taps(lambda ky: y1[ky:ky + TH], TH, Wp, w2_ref)
    y2 = jnp.maximum(acc2 + b2_ref[...], 0.0)
    o_ref[...] = y2.reshape(1, TH, Wp, Cpo).astype(o_ref.dtype)


# ----------------------------------------------------------------------------------------
# Wrapper
# ----------------------------------------------------------------------------------------
def fold_bn(bias, gamma, beta, running_mean, running_var, eps=1e-5):
    """Fold conv bias + eval-mode BatchNorm into per-channel (scale, shift)."""
    scale = gamma / jnp.sqrt(running_var + eps)
    shift = (bias - running_mean) * scale + beta
    return scale, shift


def _vmem_limit_bytes():
    """Per-generation scoped-VMEM limit: ~3/4 of physical (96 MiB cap), 48 MiB fallback."""
    try:
        cap = int(pltpu.get_tpu_info().vmem_capacity_bytes)
    except Exception:
        cap = 64 * 1024 * 1024                     # conservative: v7x per-core VMEM
    return max(32 * 1024 * 1024, min(cap * 3 // 4, 96 * 1024 * 1024))


def _pick_tile_h(H, Wp, Kin, Cpo, extra_rows, budget_bytes, max_tile_h):
    """Largest divisor of H (<= max_tile_h) whose per-step working set fits the budget."""
    best = 1
    for th in range(1, min(H, max_tile_h) + 1):
        if H % th:
            continue
        need = (2 * (th + extra_rows) * Wp * Kin * 2   # double-buffered input window (bf16)
                + 2 * th * Wp * Cpo * 2                # double-buffered bf16 output block
                + (th + 2) * Wp * Cpo * 2              # y1 (bf16)
                + (2 * th + 2) * Wp * Cpo * 4)         # conv1 + conv2 f32 accumulators
        if need <= budget_bytes:
            best = th
    return best


def double_conv2d(x_nchw, params, *, max_tile_h=None):
    """Pallas implementation of DoubleConv2D.forward. Input/output are NCHW f32."""
    N, Cin, H, W = x_nchw.shape
    Cout = params["w1"].shape[-1]

    Cpo = _round_up(Cout, 128)                     # lane-dense (unmasked) output stores
    Wp = _round_up(W + 2, 8)                       # width + 1 halo column per side, 8-aligned

    s1, b1 = fold_bn(params["b1"], params["g1"], params["beta1"], params["m1"], params["v1"])
    s2, b2 = fold_bn(params["b2"], params["g2"], params["beta2"], params["m2"], params["v2"])

    x_nhwc = jnp.transpose(x_nchw, (0, 2, 3, 1))   # NCHW -> NHWC

    packed = 9 * Cin <= 128                        # pack all 9 taps into K when Cin is tiny
    if packed:
        K1 = 9 * Cin
        K1p = _round_up(K1, 128)
        xp = jnp.pad(x_nhwc, ((0, 0), (1, 1), (1, 1), (0, 0)))
        taps = [xp[:, dy:dy + H, dx:dx + W, :] for dy in range(3) for dx in range(3)]
        xi = jnp.concatenate(taps, axis=-1)        # (N, H, W, 9*Cin), tap order (ky, kx, cin)
        x_in = jnp.pad(xi, ((0, 0), (1, 1), (1, Wp - W - 1), (0, K1p - K1))
                       ).astype(jnp.bfloat16)      # (N, H+2, Wp, K1p)
        w1 = (params["w1"] * s1).reshape(K1, Cout)  # fold BN1 scale, flatten taps into K
        w1 = jnp.pad(w1, ((0, K1p - K1), (0, Cpo - Cout))).astype(jnp.bfloat16)
        w1_spec = pl.BlockSpec((K1p, Cpo), lambda n, h: (0, 0))
        Kin, extra_rows = K1p, 2
    else:
        Cpi = _round_up(Cin, 128)
        x_in = jnp.pad(x_nhwc, ((0, 0), (2, 2), (1, Wp - W - 1), (0, Cpi - Cin))
                       ).astype(jnp.bfloat16)      # (N, H+4, Wp, Cpi)
        w1 = jnp.pad(params["w1"] * s1,
                     ((0, 0), (0, 0), (0, Cpi - Cin), (0, Cpo - Cout))).astype(jnp.bfloat16)
        w1_spec = pl.BlockSpec((3, 3, Cpi, Cpo), lambda n, h: (0, 0, 0, 0))
        Kin, extra_rows = Cpi, 4

    w2 = jnp.pad(params["w2"] * s2,
                 ((0, 0), (0, 0), (0, Cpo - Cout), (0, Cpo - Cout))).astype(jnp.bfloat16)
    pad_c = lambda v: jnp.pad(v, (0, Cpo - Cout)).reshape(1, Cpo).astype(jnp.float32)
    b1p, b2p = pad_c(b1), pad_c(b2)

    vmem_limit = _vmem_limit_bytes()
    w_bytes = 2 * 2 * (w1.size + w2.size)          # double-buffered bf16 weights
    TH = _pick_tile_h(H, Wp, Kin, Cpo, extra_rows,
                      int(vmem_limit * 0.7) - w_bytes,
                      max_tile_h if max_tile_h is not None else H)
    nH = H // TH
    assert H % TH == 0

    kernel = functools.partial(_double_conv_kernel, H=H, W=W, TH=TH, Wp=Wp,
                               Cpo=Cpo, packed_conv1=packed)

    out = pl.pallas_call(
        kernel,
        out_shape=jax.ShapeDtypeStruct((N, H, Wp, Cpo), jnp.bfloat16),
        grid_spec=pltpu.PrefetchScalarGridSpec(
            num_scalar_prefetch=0,
            grid=(N, nH),
            in_specs=[
                pl.BlockSpec(memory_space=pl.ANY),                     # x stays in HBM
                w1_spec,
                pl.BlockSpec((3, 3, Cpo, Cpo), lambda n, h: (0, 0, 0, 0)),
                pl.BlockSpec((1, Cpo), lambda n, h: (0, 0)),
                pl.BlockSpec((1, Cpo), lambda n, h: (0, 0)),
            ],
            out_specs=pl.BlockSpec((1, TH, Wp, Cpo), lambda n, h: (n, h, 0, 0)),
            scratch_shapes=[
                pltpu.VMEM((2, TH + extra_rows, Wp, Kin), jnp.bfloat16),  # dbl-buffered window
                pltpu.SemaphoreType.DMA((2,)),
            ],
        ),
        compiler_params=pltpu.CompilerParams(
            dimension_semantics=("parallel", "arbitrary"),
            vmem_limit_bytes=vmem_limit),
    )(x_in, w1, w2, b1p, b2p)

    # Strip width / channel padding, back to NCHW, f32 for the consumer.
    y = out[:, :, 1:W + 1, :Cout].astype(jnp.float32)
    return jnp.transpose(y, (0, 3, 1, 2))


# ----------------------------------------------------------------------------------------
# Pure-JAX reference + test harness
# ----------------------------------------------------------------------------------------
def _reference(x_nchw, params):
    """Pure-JAX f32 reference (lax.conv) for correctness checking."""
    def step(x, w_hwio, bias, g, beta, m, v):
        w_oihw = jnp.transpose(w_hwio, (3, 2, 0, 1))
        y = lax.conv_general_dilated(
            x, w_oihw, window_strides=(1, 1), padding=((1, 1), (1, 1)),
            dimension_numbers=("NCHW", "OIHW", "NCHW"))
        y = y + bias[None, :, None, None]
        y = (y - m[None, :, None, None]) / jnp.sqrt(v[None, :, None, None] + 1e-5)
        y = y * g[None, :, None, None] + beta[None, :, None, None]
        return jnp.maximum(y, 0.0)

    y = step(x_nchw, params["w1"], params["b1"], params["g1"], params["beta1"],
             params["m1"], params["v1"])
    y = step(y, params["w2"], params["b2"], params["g2"], params["beta2"],
             params["m2"], params["v2"])
    return y


def make_params(key, in_ch, out_ch):
    ks = jax.random.split(key, 8)
    fan1 = in_ch * 9
    fan2 = out_ch * 9
    return {
        # conv weights stored as HWIO (3, 3, Cin, Cout)
        "w1": jax.random.normal(ks[0], (3, 3, in_ch, out_ch), jnp.float32) / jnp.sqrt(fan1),
        "b1": jax.random.normal(ks[1], (out_ch,), jnp.float32) * 0.05,
        "g1": 1.0 + 0.1 * jax.random.normal(ks[2], (out_ch,), jnp.float32),
        "beta1": 0.1 * jax.random.normal(ks[3], (out_ch,), jnp.float32),
        "m1": 0.05 * jax.random.normal(ks[4], (out_ch,), jnp.float32),
        "v1": 1.0 + 0.1 * jnp.abs(jax.random.normal(ks[5], (out_ch,), jnp.float32)),
        "w2": jax.random.normal(ks[6], (3, 3, out_ch, out_ch), jnp.float32) / jnp.sqrt(fan2),
        "b2": jax.random.normal(ks[7], (out_ch,), jnp.float32) * 0.05,
        "g2": 1.0 + 0.05 * jnp.ones((out_ch,), jnp.float32),
        "beta2": 0.02 * jnp.ones((out_ch,), jnp.float32),
        "m2": 0.01 * jnp.ones((out_ch,), jnp.float32),
        "v2": 1.0 + 0.2 * jnp.ones((out_ch,), jnp.float32),
    }


if __name__ == "__main__":
    root = jax.random.PRNGKey(0)
    configs = [
        # packed-K conv1 (9*Cin <= 128), single row tile
        dict(N=2, Cin=4, Cout=8, H=16, W=16, max_tile_h=None),
        # packed-K conv1, 4 row tiles -> exercises cross-step DMA double buffering
        dict(N=2, Cin=4, Cout=8, H=16, W=16, max_tile_h=4),
        # per-tap conv1 path (9*Cin > 128), 2 row tiles
        dict(N=1, Cin=16, Cout=8, H=16, W=16, max_tile_h=8),
    ]
    for i, cfg in enumerate(configs):
        k_x, k_p = jax.random.split(jax.random.fold_in(root, i))
        x = jax.random.normal(k_x, (cfg["N"], cfg["Cin"], cfg["H"], cfg["W"]), jnp.float32)
        params = make_params(k_p, cfg["Cin"], cfg["Cout"])

        out = jax.block_until_ready(double_conv2d(x, params, max_tile_h=cfg["max_tile_h"]))
        ref = jax.block_until_ready(_reference(x, params))

        assert out.shape == ref.shape, (out.shape, ref.shape)
        err = float(jnp.max(jnp.abs(out - ref)))
        # bf16 MXU inputs / bf16 output with f32 accumulation vs an f32 reference.
        assert err < 1e-1, (i, err)

    print("KERNEL_OK")
</pallas_src>

<mosaic_0001>
module attributes {stable_mosaic.version = 11 : i64} {
  func.func @_double_conv_kernel(%arg0: i32, %arg1: i32, %arg2: memref<2x18x24x128xbf16, #tpu.memory_space<any>>, %arg3: memref<128x128xbf16, #tpu.memory_space<vmem>>, %arg4: memref<3x3x128x128xbf16, #tpu.memory_space<vmem>>, %arg5: memref<1x128xf32, #tpu.memory_space<vmem>>, %arg6: memref<1x128xf32, #tpu.memory_space<vmem>>, %arg7: memref<1x16x24x128xbf16, #tpu.memory_space<vmem>>, %arg8: memref<2x18x24x128xbf16, #tpu.memory_space<vmem>>, %arg9: memref<2x!tpu.dma_semaphore, #tpu.memory_space<semaphore_mem>>) attributes {dimension_semantics = [#tpu.dimension_semantics<parallel>, #tpu.dimension_semantics<arbitrary>], iteration_bounds = array<i64: 2, 1>, scalar_prefetch = 0 : i64, scratch_operands = 2 : i64, tpu.core_type = #tpu.core_type<tc>, window_params = [{}, {pipeline_mode = #tpu.pipeline_mode<synchronous>, transform_indices = @transform_1, window_bounds = array<i64: 128, 128>}, {pipeline_mode = #tpu.pipeline_mode<synchronous>, transform_indices = @transform_2, window_bounds = array<i64: 3, 3, 128, 128>}, {pipeline_mode = #tpu.pipeline_mode<synchronous>, transform_indices = @transform_3, window_bounds = array<i64: 1, 128>}, {pipeline_mode = #tpu.pipeline_mode<synchronous>, transform_indices = @transform_4, window_bounds = array<i64: 1, 128>}, {transform_indices = @transform_5, window_bounds = array<i64: 1, 16, 24, 128>}]} {
    %c0_i32 = arith.constant 0 : i32
    %0 = arith.cmpi eq, %arg1, %c0_i32 : i32
    %1 = arith.extui %0 : i1 to i32
    %c0_i32_0 = arith.constant 0 : i32
    %2 = arith.cmpi ne, %1, %c0_i32_0 : i32
    scf.if %2 {
      %c0_i32_78 = arith.constant 0 : i32
      %131 = tpu.assume_multiple %c0_i32_78, 8 : i32
      %c0_i32_79 = arith.constant 0 : i32
      %c0_i32_80 = arith.constant 0 : i32
      %c0_i32_81 = arith.constant 0 : i32
      %c0_i32_82 = arith.constant 0 : i32
      %132 = tpu.memref_slice %arg2[%arg0, %131, %c0_i32_81, %c0_i32_82] : memref<2x18x24x128xbf16, #tpu.memory_space<any>> -> memref<1x18x24x128xbf16, #tpu.memory_space<any>>
      %133 = tpu.memref_squeeze %132 : memref<1x18x24x128xbf16, #tpu.memory_space<any>> -> memref<18x24x128xbf16, #tpu.memory_space<any>>
      %c0_i32_83 = arith.constant 0 : i32
      %c0_i32_84 = arith.constant 0 : i32
      %c0_i32_85 = arith.constant 0 : i32
      %134 = tpu.memref_slice %arg8[%c0_i32_79, %c0_i32_83, %c0_i32_84, %c0_i32_85] : memref<2x18x24x128xbf16, #tpu.memory_space<vmem>> -> memref<1x18x24x128xbf16, #tpu.memory_space<vmem>>
      %135 = tpu.memref_squeeze %134 : memref<1x18x24x128xbf16, #tpu.memory_space<vmem>> -> memref<18x24x128xbf16, #tpu.memory_space<vmem>>
      %136 = tpu.memref_slice %arg9[%c0_i32_80] : memref<2x!tpu.dma_semaphore, #tpu.memory_space<semaphore_mem>> -> memref<1x!tpu.dma_semaphore, #tpu.memory_space<semaphore_mem>>
      %137 = tpu.memref_squeeze %136 : memref<1x!tpu.dma_semaphore, #tpu.memory_space<semaphore_mem>> -> memref<!tpu.dma_semaphore, #tpu.memory_space<semaphore_mem>>
      tpu.enqueue_dma source(%133 : memref<18x24x128xbf16, #tpu.memory_space<any>>) target(%135 : memref<18x24x128xbf16, #tpu.memory_space<vmem>>) target_semaphore(%137 : memref<!tpu.dma_semaphore, #tpu.memory_space<semaphore_mem>>)
    } else {
    }
    %c1_i32 = arith.constant 1 : i32
    %3 = arith.addi %arg1, %c1_i32 : i32
    %c1_i32_1 = arith.constant 1 : i32
    %4 = arith.cmpi slt, %3, %c1_i32_1 : i32
    %5 = arith.extui %4 : i1 to i32
    %c0_i32_2 = arith.constant 0 : i32
    %6 = arith.cmpi ne, %5, %c0_i32_2 : i32
    scf.if %6 {
      %c1_i32_78 = arith.constant 1 : i32
      %131 = arith.addi %arg1, %c1_i32_78 : i32
      %c1_i32_79 = arith.constant 1 : i32
      %132 = arith.addi %arg1, %c1_i32_79 : i32
      %c2_i32_80 = arith.constant 2 : i32
      %c0_i32_81 = arith.constant 0 : i32
      %133 = arith.cmpi eq, %c2_i32_80, %c0_i32_81 : i32
      %c1_i32_82 = arith.constant 1 : i32
      %134 = arith.select %133, %c1_i32_82, %c2_i32_80 : i32
      %135 = arith.remsi %132, %134 : i32
      %c0_i32_83 = arith.constant 0 : i32
      %136 = arith.cmpi ne, %135, %c0_i32_83 : i32
      %c0_i32_84 = arith.constant 0 : i32
      %137 = arith.cmpi slt, %135, %c0_i32_84 : i32
      %c0_i32_85 = arith.constant 0 : i32
      %138 = arith.cmpi slt, %134, %c0_i32_85 : i32
      %139 = arith.xori %137, %138 : i1
      %140 = arith.andi %139, %136 : i1
      %141 = arith.addi %135, %134 : i32
      %142 = arith.select %140, %141, %135 : i32
      %c16_i32_86 = arith.constant 16 : i32
      %143 = arith.muli %131, %c16_i32_86 : i32
      %144 = tpu.assume_multiple %143, 8 : i32
      %c0_i32_87 = arith.constant 0 : i32
      %c0_i32_88 = arith.constant 0 : i32
      %145 = tpu.memref_slice %arg2[%arg0, %144, %c0_i32_87, %c0_i32_88] : memref<2x18x24x128xbf16, #tpu.memory_space<any>> -> memref<1x18x24x128xbf16, #tpu.memory_space<any>>
      %146 = tpu.memref_squeeze %145 : memref<1x18x24x128xbf16, #tpu.memory_space<any>> -> memref<18x24x128xbf16, #tpu.memory_space<any>>
      %c0_i32_89 = arith.constant 0 : i32
      %c0_i32_90 = arith.constant 0 : i32
      %c0_i32_91 = arith.constant 0 : i32
      %147 = tpu.memref_slice %arg8[%142, %c0_i32_89, %c0_i32_90, %c0_i32_91] : memref<2x18x24x128xbf16, #tpu.memory_space<vmem>> -> memref<1x18x24x128xbf16, #tpu.memory_space<vmem>>
      %148 = tpu.memref_squeeze %147 : memref<1x18x24x128xbf16, #tpu.memory_space<vmem>> -> memref<18x24x128xbf16, #tpu.memory_space<vmem>>
      %149 = tpu.memref_slice %arg9[%142] : memref<2x!tpu.dma_semaphore, #tpu.memory_space<semaphore_mem>> -> memref<1x!tpu.dma_semaphore, #tpu.memory_space<semaphore_mem>>
      %150 = tpu.memref_squeeze %149 : memref<1x!tpu.dma_semaphore, #tpu.memory_space<semaphore_mem>> -> memref<!tpu.dma_semaphore, #tpu.memory_space<semaphore_mem>>
      tpu.enqueue_dma source(%146 : memref<18x24x128xbf16, #tpu.memory_space<any>>) target(%148 : memref<18x24x128xbf16, #tpu.memory_space<vmem>>) target_semaphore(%150 : memref<!tpu.dma_semaphore, #tpu.memory_space<semaphore_mem>>)
    } else {
    }
    %c2_i32 = arith.constant 2 : i32
    %c0_i32_3 = arith.constant 0 : i32
    %7 = arith.cmpi eq, %c2_i32, %c0_i32_3 : i32
    %c1_i32_4 = arith.constant 1 : i32
    %8 = arith.select %7, %c1_i32_4, %c2_i32 : i32
    %9 = arith.remsi %arg1, %8 : i32
    %c0_i32_5 = arith.constant 0 : i32
    %10 = arith.cmpi ne, %9, %c0_i32_5 : i32
    %c0_i32_6 = arith.constant 0 : i32
    %11 = arith.cmpi slt, %9, %c0_i32_6 : i32
    %c0_i32_7 = arith.constant 0 : i32
    %12 = arith.cmpi slt, %8, %c0_i32_7 : i32
    %13 = arith.xori %11, %12 : i1
    %14 = arith.andi %13, %10 : i1
    %15 = arith.addi %9, %8 : i32
    %16 = arith.select %14, %15, %9 : i32
    %c16_i32 = arith.constant 16 : i32
    %17 = arith.muli %arg1, %c16_i32 : i32
    %18 = tpu.assume_multiple %17, 8 : i32
    %c0_i32_8 = arith.constant 0 : i32
    %c0_i32_9 = arith.constant 0 : i32
    %19 = tpu.memref_slice %arg2[%arg0, %18, %c0_i32_8, %c0_i32_9] : memref<2x18x24x128xbf16, #tpu.memory_space<any>> -> memref<1x18x24x128xbf16, #tpu.memory_space<any>>
    %20 = tpu.memref_squeeze %19 : memref<1x18x24x128xbf16, #tpu.memory_space<any>> -> memref<18x24x128xbf16, #tpu.memory_space<any>>
    %c0_i32_10 = arith.constant 0 : i32
    %c0_i32_11 = arith.constant 0 : i32
    %c0_i32_12 = arith.constant 0 : i32
    %21 = tpu.memref_slice %arg8[%16, %c0_i32_10, %c0_i32_11, %c0_i32_12] : memref<2x18x24x128xbf16, #tpu.memory_space<vmem>> -> memref<1x18x24x128xbf16, #tpu.memory_space<vmem>>
    %22 = tpu.memref_squeeze %21 : memref<1x18x24x128xbf16, #tpu.memory_space<vmem>> -> memref<18x24x128xbf16, #tpu.memory_space<vmem>>
    %23 = tpu.memref_slice %arg9[%16] : memref<2x!tpu.dma_semaphore, #tpu.memory_space<semaphore_mem>> -> memref<1x!tpu.dma_semaphore, #tpu.memory_space<semaphore_mem>>
    %24 = tpu.memref_squeeze %23 : memref<1x!tpu.dma_semaphore, #tpu.memory_space<semaphore_mem>> -> memref<!tpu.dma_semaphore, #tpu.memory_space<semaphore_mem>>
    tpu.wait_dma2 semaphore(%24 : memref<!tpu.dma_semaphore, #tpu.memory_space<semaphore_mem>>) src(%20 : memref<18x24x128xbf16, #tpu.memory_space<any>>) dst(%22 : memref<18x24x128xbf16, #tpu.memory_space<vmem>>)
    %25 = arith.index_cast %16 : i32 to index
    %c0 = arith.constant 0 : index
    %c0_13 = arith.constant 0 : index
    %c0_14 = arith.constant 0 : index
    %26 = vector.load %arg8[%25, %c0, %c0_13, %c0_14] : memref<2x18x24x128xbf16, #tpu.memory_space<vmem>>, vector<1x18x24x128xbf16>
    %27 = vector.shape_cast %26 : vector<1x18x24x128xbf16> to vector<18x24x128xbf16>
    %28 = vector.shape_cast %27 : vector<18x24x128xbf16> to vector<432x128xbf16>
    %c0_15 = arith.constant 0 : index
    %c0_16 = arith.constant 0 : index
    %29 = vector.load %arg3[%c0_15, %c0_16] : memref<128x128xbf16, #tpu.memory_space<vmem>>, vector<128x128xbf16>
    %cst = arith.constant dense<0.000000e+00> : vector<432x128xf32>
    %30 = tpu.matmul %28, %29, %cst {dimension_numbers = #tpu.dot_dimension_numbers<[1], [0], [0], [1], [0, 0, 1, 1], [], []>} : vector<432x128xbf16>, vector<128x128xbf16>, vector<432x128xf32> -> vector<432x128xf32>
    %c0_17 = arith.constant 0 : index
    %c0_18 = arith.constant 0 : index
    %31 = vector.load %arg5[%c0_17, %c0_18] : memref<1x128xf32, #tpu.memory_space<vmem>>, vector<1x128xf32>
    %32 = vector.broadcast %31 : vector<1x128xf32> to vector<432x128xf32>
    %33 = arith.addf %30, %32 : vector<432x128xf32>
    %cst_19 = arith.constant 0.000000e+00 : f32
    %34 = vector.broadcast %cst_19 : f32 to vector<432x128xf32>
    %35 = arith.maximumf %33, %34 : vector<432x128xf32>
    %36 = vector.shape_cast %35 : vector<432x128xf32> to vector<18x24x128xf32>
    %37 = tpu.iota {dimensions = array<i32: 1>} : vector<1x24x1xi32>
    %c16_i32_20 = arith.constant 16 : i32
    %38 = arith.muli %arg1, %c16_i32_20 : i32
    %c1_i32_21 = arith.constant 1 : i32
    %39 = arith.subi %38, %c1_i32_21 : i32
    %40 = tpu.iota {dimensions = array<i32: 0>} : vector<18x1x1xi32>
    %41 = vector.broadcast %39 : i32 to vector<18x1x1xi32>
    %42 = arith.addi %41, %40 : vector<18x1x1xi32>
    %c1_i32_22 = arith.constant 1 : i32
    %43 = vector.broadcast %c1_i32_22 : i32 to vector<1x24x1xi32>
    %44 = arith.cmpi sge, %37, %43 : vector<1x24x1xi32>
    %c16_i32_23 = arith.constant 16 : i32
    %45 = vector.broadcast %c16_i32_23 : i32 to vector<1x24x1xi32>
    %46 = arith.cmpi sle, %37, %45 : vector<1x24x1xi32>
    %47 = arith.andi %44, %46 : vector<1x24x1xi1>
    %c0_i32_24 = arith.constant 0 : i32
    %48 = vector.broadcast %c0_i32_24 : i32 to vector<18x1x1xi32>
    %49 = arith.cmpi sge, %42, %48 : vector<18x1x1xi32>
    %50 = vector.broadcast %47 : vector<1x24x1xi1> to vector<18x24x1xi1>
    %51 = vector.broadcast %49 : vector<18x1x1xi1> to vector<18x24x1xi1>
    %52 = arith.andi %50, %51 : vector<18x24x1xi1>
    %c16_i32_25 = arith.constant 16 : i32
    %53 = vector.broadcast %c16_i32_25 : i32 to vector<18x1x1xi32>
    %54 = arith.cmpi slt, %42, %53 : vector<18x1x1xi32>
    %55 = vector.broadcast %54 : vector<18x1x1xi1> to vector<18x24x1xi1>
    %56 = arith.andi %52, %55 : vector<18x24x1xi1>
    %cst_26 = arith.constant 0.000000e+00 : f32
    %57 = vector.shape_cast %56 : vector<18x24x1xi1> to vector<18x24x1xi1>
    %58 = vector.broadcast %57 : vector<18x24x1xi1> to vector<18x24x128xi1>
    %59 = vector.broadcast %cst_26 : f32 to vector<18x24x128xf32>
    %60 = arith.select %58, %36, %59 : vector<18x24x128xi1>, vector<18x24x128xf32>
    %61 = arith.truncf %60 : vector<18x24x128xf32> to vector<18x24x128xbf16>
    %cst_27 = arith.constant 0.000000e+00 : f32
    %62 = vector.broadcast %cst_27 : f32 to vector<384x128xf32>
    %63 = vector.extract_strided_slice %61 {offsets = [0, 0, 0], sizes = [16, 24, 128], strides = [1, 1, 1]} : vector<18x24x128xbf16> to vector<16x24x128xbf16>
    %64 = vector.shape_cast %63 : vector<16x24x128xbf16> to vector<384x128xbf16>
    %65 = vector.extract_strided_slice %64 {offsets = [383, 0], sizes = [1, 128], strides = [1, 1]} : vector<384x128xbf16> to vector<1x128xbf16>
    %66 = vector.extract_strided_slice %64 {offsets = [0, 0], sizes = [383, 128], strides = [1, 1]} : vector<384x128xbf16> to vector<383x128xbf16>
    %67 = tpu.concatenate %65, %66 in 0 : vector<1x128xbf16>, vector<383x128xbf16> -> vector<384x128xbf16>
    %c0_28 = arith.constant 0 : index
    %c0_29 = arith.constant 0 : index
    %c0_30 = arith.constant 0 : index
    %c0_31 = arith.constant 0 : index
    %68 = vector.load %arg4[%c0_28, %c0_29, %c0_30, %c0_31] : memref<3x3x128x128xbf16, #tpu.memory_space<vmem>>, vector<1x1x128x128xbf16>
    %69 = vector.shape_cast %68 : vector<1x1x128x128xbf16> to vector<128x128xbf16>
    %cst_32 = arith.constant dense<0.000000e+00> : vector<384x128xf32>
    %70 = tpu.matmul %67, %69, %cst_32 {dimension_numbers = #tpu.dot_dimension_numbers<[1], [0], [0], [1], [0, 0, 1, 1], [], []>} : vector<384x128xbf16>, vector<128x128xbf16>, vector<384x128xf32> -> vector<384x128xf32>
    %71 = arith.addf %62, %70 : vector<384x128xf32>
    %c0_33 = arith.constant 0 : index
    %c1 = arith.constant 1 : index
    %c0_34 = arith.constant 0 : index
    %c0_35 = arith.constant 0 : index
    %72 = vector.load %arg4[%c0_33, %c1, %c0_34, %c0_35] : memref<3x3x128x128xbf16, #tpu.memory_space<vmem>>, vector<1x1x128x128xbf16>
    %73 = vector.shape_cast %72 : vector<1x1x128x128xbf16> to vector<128x128xbf16>
    %cst_36 = arith.constant dense<0.000000e+00> : vector<384x128xf32>
    %74 = tpu.matmul %64, %73, %cst_36 {dimension_numbers = #tpu.dot_dimension_numbers<[1], [0], [0], [1], [0, 0, 1, 1], [], []>} : vector<384x128xbf16>, vector<128x128xbf16>, vector<384x128xf32> -> vector<384x128xf32>
    %75 = arith.addf %71, %74 : vector<384x128xf32>
    %76 = vector.extract_strided_slice %64 {offsets = [1, 0], sizes = [383, 128], strides = [1, 1]} : vector<384x128xbf16> to vector<383x128xbf16>
    %77 = vector.extract_strided_slice %64 {offsets = [0, 0], sizes = [1, 128], strides = [1, 1]} : vector<384x128xbf16> to vector<1x128xbf16>
    %78 = tpu.concatenate %76, %77 in 0 : vector<383x128xbf16>, vector<1x128xbf16> -> vector<384x128xbf16>
    %c0_37 = arith.constant 0 : index
    %c2 = arith.constant 2 : index
    %c0_38 = arith.constant 0 : index
    %c0_39 = arith.constant 0 : index
    %79 = vector.load %arg4[%c0_37, %c2, %c0_38, %c0_39] : memref<3x3x128x128xbf16, #tpu.memory_space<vmem>>, vector<1x1x128x128xbf16>
    %80 = vector.shape_cast %79 : vector<1x1x128x128xbf16> to vector<128x128xbf16>
    %cst_40 = arith.constant dense<0.000000e+00> : vector<384x128xf32>
    %81 = tpu.matmul %78, %80, %cst_40 {dimension_numbers = #tpu.dot_dimension_numbers<[1], [0], [0], [1], [0, 0, 1, 1], [], []>} : vector<384x128xbf16>, vector<128x128xbf16>, vector<384x128xf32> -> vector<384x128xf32>
    %82 = arith.addf %75, %81 : vector<384x128xf32>
    %83 = vector.extract_strided_slice %61 {offsets = [1, 0, 0], sizes = [16, 24, 128], strides = [1, 1, 1]} : vector<18x24x128xbf16> to vector<16x24x128xbf16>
    %84 = vector.shape_cast %83 : vector<16x24x128xbf16> to vector<384x128xbf16>
    %85 = vector.extract_strided_slice %84 {offsets = [383, 0], sizes = [1, 128], strides = [1, 1]} : vector<384x128xbf16> to vector<1x128xbf16>
    %86 = vector.extract_strided_slice %84 {offsets = [0, 0], sizes = [383, 128], strides = [1, 1]} : vector<384x128xbf16> to vector<383x128xbf16>
    %87 = tpu.concatenate %85, %86 in 0 : vector<1x128xbf16>, vector<383x128xbf16> -> vector<384x128xbf16>
    %c1_41 = arith.constant 1 : index
    %c0_42 = arith.constant 0 : index
    %c0_43 = arith.constant 0 : index
    %c0_44 = arith.constant 0 : index
    %88 = vector.load %arg4[%c1_41, %c0_42, %c0_43, %c0_44] : memref<3x3x128x128xbf16, #tpu.memory_space<vmem>>, vector<1x1x128x128xbf16>
    %89 = vector.shape_cast %88 : vector<1x1x128x128xbf16> to vector<128x128xbf16>
    %cst_45 = arith.constant dense<0.000000e+00> : vector<384x128xf32>
    %90 = tpu.matmul %87, %89, %cst_45 {dimension_numbers = #tpu.dot_dimension_numbers<[1], [0], [0], [1], [0, 0, 1, 1], [], []>} : vector<384x128xbf16>, vector<128x128xbf16>, vector<384x128xf32> -> vector<384x128xf32>
    %91 = arith.addf %82, %90 : vector<384x128xf32>
    %c1_46 = arith.constant 1 : index
    %c1_47 = arith.constant 1 : index
    %c0_48 = arith.constant 0 : index
    %c0_49 = arith.constant 0 : index
    %92 = vector.load %arg4[%c1_46, %c1_47, %c0_48, %c0_49] : memref<3x3x128x128xbf16, #tpu.memory_space<vmem>>, vector<1x1x128x128xbf16>
    %93 = vector.shape_cast %92 : vector<1x1x128x128xbf16> to vector<128x128xbf16>
    %cst_50 = arith.constant dense<0.000000e+00> : vector<384x128xf32>
    %94 = tpu.matmul %84, %93, %cst_50 {dimension_numbers = #tpu.dot_dimension_numbers<[1], [0], [0], [1], [0, 0, 1, 1], [], []>} : vector<384x128xbf16>, vector<128x128xbf16>, vector<384x128xf32> -> vector<384x128xf32>
    %95 = arith.addf %91, %94 : vector<384x128xf32>
    %96 = vector.extract_strided_slice %84 {offsets = [1, 0], sizes = [383, 128], strides = [1, 1]} : vector<384x128xbf16> to vector<383x128xbf16>
    %97 = vector.extract_strided_slice %84 {offsets = [0, 0], sizes = [1, 128], strides = [1, 1]} : vector<384x128xbf16> to vector<1x128xbf16>
    %98 = tpu.concatenate %96, %97 in 0 : vector<383x128xbf16>, vector<1x128xbf16> -> vector<384x128xbf16>
    %c1_51 = arith.constant 1 : index
    %c2_52 = arith.constant 2 : index
    %c0_53 = arith.constant 0 : index
    %c0_54 = arith.constant 0 : index
    %99 = vector.load %arg4[%c1_51, %c2_52, %c0_53, %c0_54] : memref<3x3x128x128xbf16, #tpu.memory_space<vmem>>, vector<1x1x128x128xbf16>
    %100 = vector.shape_cast %99 : vector<1x1x128x128xbf16> to vector<128x128xbf16>
    %cst_55 = arith.constant dense<0.000000e+00> : vector<384x128xf32>
    %101 = tpu.matmul %98, %100, %cst_55 {dimension_numbers = #tpu.dot_dimension_numbers<[1], [0], [0], [1], [0, 0, 1, 1], [], []>} : vector<384x128xbf16>, vector<128x128xbf16>, vector<384x128xf32> -> vector<384x128xf32>
    %102 = arith.addf %95, %101 : vector<384x128xf32>
    %103 = vector.extract_strided_slice %61 {offsets = [2, 0, 0], sizes = [16, 24, 128], strides = [1, 1, 1]} : vector<18x24x128xbf16> to vector<16x24x128xbf16>
    %104 = vector.shape_cast %103 : vector<16x24x128xbf16> to vector<384x128xbf16>
    %105 = vector.extract_strided_slice %104 {offsets = [383, 0], sizes = [1, 128], strides = [1, 1]} : vector<384x128xbf16> to vector<1x128xbf16>
    %106 = vector.extract_strided_slice %104 {offsets = [0, 0], sizes = [383, 128], strides = [1, 1]} : vector<384x128xbf16> to vector<383x128xbf16>
    %107 = tpu.concatenate %105, %106 in 0 : vector<1x128xbf16>, vector<383x128xbf16> -> vector<384x128xbf16>
    %c2_56 = arith.constant 2 : index
    %c0_57 = arith.constant 0 : index
    %c0_58 = arith.constant 0 : index
    %c0_59 = arith.constant 0 : index
    %108 = vector.load %arg4[%c2_56, %c0_57, %c0_58, %c0_59] : memref<3x3x128x128xbf16, #tpu.memory_space<vmem>>, vector<1x1x128x128xbf16>
    %109 = vector.shape_cast %108 : vector<1x1x128x128xbf16> to vector<128x128xbf16>
    %cst_60 = arith.constant dense<0.000000e+00> : vector<384x128xf32>
    %110 = tpu.matmul %107, %109, %cst_60 {dimension_numbers = #tpu.dot_dimension_numbers<[1], [0], [0], [1], [0, 0, 1, 1], [], []>} : vector<384x128xbf16>, vector<128x128xbf16>, vector<384x128xf32> -> vector<384x128xf32>
    %111 = arith.addf %102, %110 : vector<384x128xf32>
    %c2_61 = arith.constant 2 : index
    %c1_62 = arith.constant 1 : index
    %c0_63 = arith.constant 0 : index
    %c0_64 = arith.constant 0 : index
    %112 = vector.load %arg4[%c2_61, %c1_62, %c0_63, %c0_64] : memref<3x3x128x128xbf16, #tpu.memory_space<vmem>>, vector<1x1x128x128xbf16>
    %113 = vector.shape_cast %112 : vector<1x1x128x128xbf16> to vector<128x128xbf16>
    %cst_65 = arith.constant dense<0.000000e+00> : vector<384x128xf32>
    %114 = tpu.matmul %104, %113, %cst_65 {dimension_numbers = #tpu.dot_dimension_numbers<[1], [0], [0], [1], [0, 0, 1, 1], [], []>} : vector<384x128xbf16>, vector<128x128xbf16>, vector<384x128xf32> -> vector<384x128xf32>
    %115 = arith.addf %111, %114 : vector<384x128xf32>
    %116 = vector.extract_strided_slice %104 {offsets = [1, 0], sizes = [383, 128], strides = [1, 1]} : vector<384x128xbf16> to vector<383x128xbf16>
    %117 = vector.extract_strided_slice %104 {offsets = [0, 0], sizes = [1, 128], strides = [1, 1]} : vector<384x128xbf16> to vector<1x128xbf16>
    %118 = tpu.concatenate %116, %117 in 0 : vector<383x128xbf16>, vector<1x128xbf16> -> vector<384x128xbf16>
    %c2_66 = arith.constant 2 : index
    %c2_67 = arith.constant 2 : index
    %c0_68 = arith.constant 0 : index
    %c0_69 = arith.constant 0 : index
    %119 = vector.load %arg4[%c2_66, %c2_67, %c0_68, %c0_69] : memref<3x3x128x128xbf16, #tpu.memory_space<vmem>>, vector<1x1x128x128xbf16>
    %120 = vector.shape_cast %119 : vector<1x1x128x128xbf16> to vector<128x128xbf16>
    %cst_70 = arith.constant dense<0.000000e+00> : vector<384x128xf32>
    %121 = tpu.matmul %118, %120, %cst_70 {dimension_numbers = #tpu.dot_dimension_numbers<[1], [0], [0], [1], [0, 0, 1, 1], [], []>} : vector<384x128xbf16>, vector<128x128xbf16>, vector<384x128xf32> -> vector<384x128xf32>
    %122 = arith.addf %115, %121 : vector<384x128xf32>
    %c0_71 = arith.constant 0 : index
    %c0_72 = arith.constant 0 : index
    %123 = vector.load %arg6[%c0_71, %c0_72] : memref<1x128xf32, #tpu.memory_space<vmem>>, vector<1x128xf32>
    %124 = vector.broadcast %123 : vector<1x128xf32> to vector<384x128xf32>
    %125 = arith.addf %122, %124 : vector<384x128xf32>
    %cst_73 = arith.constant 0.000000e+00 : f32
    %126 = vector.broadcast %cst_73 : f32 to vector<384x128xf32>
    %127 = arith.maximumf %125, %126 : vector<384x128xf32>
    %128 = vector.shape_cast %127 : vector<384x128xf32> to vector<1x16x24x128xf32>
    %129 = arith.truncf %128 : vector<1x16x24x128xf32> to vector<1x16x24x128xbf16>
    %c0_74 = arith.constant 0 : index
    %c0_75 = arith.constant 0 : index
    %c0_76 = arith.constant 0 : index
    %c0_77 = arith.constant 0 : index
    %130 = vector.load %arg7[%c0_74, %c0_75, %c0_76, %c0_77] : memref<1x16x24x128xbf16, #tpu.memory_space<vmem>>, vector<1x16x24x128xbf16>
    tpu.vector_store %arg7[%c0_74, %c0_75, %c0_76, %c0_77], %129 {strides = array<i32>} : memref<1x16x24x128xbf16, #tpu.memory_space<vmem>>, vector<1x16x24x128xbf16>,
    return
  }
  func.func @transform_1(%arg0: i32, %arg1: i32) -> (i32, i32) {
    %c0_i32 = arith.constant 0 : i32
    %c0_i32_0 = arith.constant 0 : i32
    %c0_i32_1 = arith.constant 0 : i32
    return %c0_i32, %c0_i32_0 : i32, i32
  }
  func.func @transform_2(%arg0: i32, %arg1: i32) -> (i32, i32, i32, i32) {
    %c0_i32 = arith.constant 0 : i32
    %c0_i32_0 = arith.constant 0 : i32
    %c0_i32_1 = arith.constant 0 : i32
    %c0_i32_2 = arith.constant 0 : i32
    %c0_i32_3 = arith.constant 0 : i32
    return %c0_i32, %c0_i32_0, %c0_i32_1, %c0_i32_2 : i32, i32, i32, i32
  }
  func.func @transform_3(%arg0: i32, %arg1: i32) -> (i32, i32) {
    %c0_i32 = arith.constant 0 : i32
    %c0_i32_0 = arith.constant 0 : i32
    %c0_i32_1 = arith.constant 0 : i32
    return %c0_i32, %c0_i32_0 : i32, i32
  }
  func.func @transform_4(%arg0: i32, %arg1: i32) -> (i32, i32) {
    %c0_i32 = arith.constant 0 : i32
    %c0_i32_0 = arith.constant 0 : i32
    %c0_i32_1 = arith.constant 0 : i32
    return %c0_i32, %c0_i32_0 : i32, i32
  }
  func.func @transform_5(%arg0: i32, %arg1: i32) -> (i32, i32, i32, i32) {
    %c0_i32 = arith.constant 0 : i32
    %c0_i32_0 = arith.constant 0 : i32
    %c0_i32_1 = arith.constant 0 : i32
    return %arg0, %arg1, %c0_i32, %c0_i32_0 : i32, i32, i32, i32
  }
}

</mosaic_0001>

<bundles_post_ra>
// kernel: tpu_custom_call.1
= control target key start
LH: loop header
LB: loop body
LE: loop exit
PB: predicated region body
PF: predicated region fallthrough
CT: control target
= control target key end

     0   :  { %10 = vsyncpa [#allocation5], 0  ;;  %s9687_s0 = inlined_call_operand.hbm [shape: bf16[2,18,24,128], index: 0, kind: input, shape index: {}]   ;;  %s9688_s1 = inlined_call_operand.hbm [shape: bf16[128,128], index: 1, kind: input, shape index: {}]   ;;  %s9689_s2 = inlined_call_operand.hbm [shape: bf16[3,3,128,128], index: 2, kind: input, shape index: {}]   ;;  %s9690_s3 = inlined_call_operand.vmem [shape: f32[1,128], index: 3, kind: input, shape index: {}]   ;;  %s9691_s4 = inlined_call_operand.vmem [shape: f32[1,128], index: 4, kind: input, shape index: {}]   ;;  %s9692_s5 = inlined_call_operand.hbm [shape: bf16[2,16,24,128], index: 5, kind: output, shape index: {}]  }
   0x1   :  { %11 = vsyncpa [#allocation8], 0 }
   0x2   :  { %12 = vsyncpa [#allocation6], 0 }
   0x3   :  { %14 = vsyncpa [#allocation6 + $0x1], 0  ;;  %s8043_s18 = smov 0   ;;  %s8045_s19 = smov 0  }
   0x4   :  { %s8047_s20 = smov 0   ;;  %s8049_s21 = smov 0  }
   0x5   :  { %s8051_s22 = smov 0   ;;  %s8053_s23 = smov 0  }
   0x6 LB: > { %s5672_s24 = sadd.s32 4294967295, %s7998_s23   ;;  %s5673_s25 = sadd.s32 4294967294, %s7998_s23   ;;  %s7998_s23 = sphi %s8053_s23, %s20_s23   ;;  %s7994_s22 = sphi %s8051_s22, %s10078_s22   ;;  %s7990_s21 = sphi %s8049_s21, %s10077_s21   ;;  %s7986_s20 = sphi %s8047_s20, %s10076_s20   ;;  %s7982_s19 = sphi %s8045_s19, %s10075_s19   ;;  %s7978_s18 = sphi %s8043_s18, %s10074_s18  }
   0x7   : > { %s32_s26 = sadd.s32 1, %s7994_s22  ;;  %s125_s27 = sadd.s32 1, %s7986_s20 }
   0x8   : > { %p34_p0 = scmp.ge.s32.totalorder %s32_s26, 2  ;;  %p135_p1 = scmp.ne.s32.totalorder %s7986_s20, %s7982_s19 }
   0x9   : > { %p136_p2 = scmp.eq.s32.totalorder %s5672_s24, 1  ;;  %p141_p3 = scmp.ne.s32.totalorder %s7982_s19, %s7978_s18 }
   0xa   : > { %s10080_s26 = smov (%p34_p0, %s32_s26), 0  ;;  %p142_p5 = scmp.eq.s32.totalorder %s5673_s25, 1 }
   0xb   : > { %9802 = sst [smem:[#allocation20_spill]] %s10080_s26  ;;  %p8083_p4 = por %p136_p2, %p135_p1 }
   0xc   : > { %s120_s29 = ssub.s32 %s7994_s22, %s10080_s26  ;;  %p5674_p6 = scmp.ge.s32.totalorder %s7998_s23, 1 }
   0xd   : > { %s9803_s28 = scalar_select %p8083_p4, 1, 0 }
   0xe   : > { %p123_p7 = scmp.eq.s32.totalorder %s120_s29, 0  ;;  %p8090_p8 = por %p142_p5, %p141_p3 }
   0xf   : > { %p149_p9 = scmp.lt.s32.totalorder %s7998_s23, 3  ;;  %p8102_p11 = scmp.eq.s32.totalorder %s5672_s24, 0 }
  0x10   : > { %s9804_s30 = scalar_select %p8090_p8, 1, 0 }
  0x11   : > { %s8096_s6 = scalar_select %p123_p7, %s7986_s20, %s125_s27  }
  0x12   : > { %p8098_p10 = pnand %p5674_p6, %p149_p9  ;;  %s8000_s9 = smov [#allocation4]  }
  0x13   : > { %s9806_s8 = scalar_select %p8102_p11, 1, 0 }
  0x14   : > { %s9805_s7 = scalar_select %p8098_p10, 1, 0 }
  0x15   : > { %p7638_p12 = pneg %p8098_p10  ;;  %s161_s10 = sshll.u32 %s8000_s9, 4  ;;  %s162_s10 = int_to_ptr.vmem [resolvable:$true] %s161_s10 }
  0x16   : > { %s8001_s12 = smov [#allocation7]   ;;  %s7830_s16 = scalar_lea.hbm %s9688_s1, 1024 }
  0x17   : > { %p8110_p13 = pnand %p8102_p11, %p7638_p12  ;;  %s174_s13 = sshll.u32 %s8001_s12, 4  ;;  %s8114_s13 = int_to_ptr.vmem [resolvable:$true] %s174_s13 }
  0x18   : > { %p7831_p0 = scmp.ne.s32.totalorder %s9688_s1, %s7830_s16  ;;  %p7837_p5 = scmp.lt.u32.totalorder %s7830_s16, %s9688_s1 }
  0x19   : > { %p7832_p1 = pneg %p8110_p13 }
  0x1b   : > { %p7833_p2 = pnand %p7832_p1, %p7831_p0 }
  0x1d   : > { %p7834_p3 = pneg %p7833_p2 }
  0x1f   : > { %p7839_p6 = pnand %p7837_p5, %p7834_p3 }
  0x21   : > { %7842 = shalt.err (!%p7839_p6)
}
  0x22   : > { %s7843_s29 = scalar_lea.vmem %s162_s10, 1024  ;;  %p7851_p8 = scmp.lt.s32.totalorder %s162_s10, %s162_s10 }
  0x23   : > { %p7844_p7 = scmp.ne.s32.totalorder %s162_s10, %s7843_s29  ;;  %p7852_p4 = scmp.lt.s32.totalorder %s7843_s29, %s7843_s29 }
  0x25   : > { %p7846_p9 = pnand %p7844_p7, %p7832_p1  ;;  %p7853_p11 = por %p7852_p4, %p7851_p8 }
  0x27   : > { %p7847_p12 = pneg %p7846_p9 }
  0x29   : > { %p7854_p10 = pnand %p7853_p11, %p7847_p12 }
  0x2b   : > { %7857 = shalt.err (!%p7854_p10)
}
  0x2c   : > { %s8002_s9 = smov 64   ;;  %s8003_s12 = smov 4  }
  0x2d   : > { %7641 = dma.hbm_to_vmem [thread:$0]  (!%p8110_p13), %s9688_s1, 1024, %s162_s10, [#allocation5], %s8002_s9, %s8002_s9, %s8003_s12  }
  0x2e   : > { %s7858_s24 = scalar_lea.hbm %s9689_s2, 9216 }
  0x2f   : > { %p7859_p0 = scmp.ne.s32.totalorder %s9689_s2, %s7858_s24  ;;  %p7865_p10 = scmp.lt.u32.totalorder %s7858_s24, %s9689_s2 }
  0x31   : > { %p7861_p4 = pnand %p7859_p0, %p7832_p1 }
  0x33   : > { %p7862_p8 = pneg %p7861_p4 }
  0x35   : > { %p7867_p11 = pnand %p7865_p10, %p7862_p8 }
  0x37   : > { %7870 = shalt.err (!%p7867_p11)
}
  0x38   : > { %s7871_s10 = scalar_lea.vmem %s8114_s13, 9216  ;;  %p7879_p6 = scmp.lt.s32.totalorder %s8114_s13, %s8114_s13 }
  0x39   : > { %p7872_p2 = scmp.ne.s32.totalorder %s8114_s13, %s7871_s10  ;;  %p7880_p7 = scmp.lt.s32.totalorder %s7871_s10, %s7871_s10 }
  0x3b   : > { %p7874_p3 = pnand %p7872_p2, %p7832_p1  ;;  %p7881_p9 = por %p7880_p7, %p7879_p6 }
  0x3d   : > { %p7875_p5 = pneg %p7874_p3 }
  0x3f   : > { %p7882_p12 = pnand %p7881_p9, %p7875_p5 }
  0x41   : > { %7885 = shalt.err (!%p7882_p12)
}
  0x42   : > { %7644 = dma.hbm_to_vmem [thread:$0]  (!%p8110_p13), %s9689_s2, 9216, %s8114_s13, [#allocation8], %s8002_s9, %s8002_s9, %s8003_s12  }
  0x43   : > { %p9808_p0 = scmp.ne.s32.totalorder %s9805_s7, 0 }
  0x45   : > { %196 = sbr.rel (%p9808_p0) target bundleno = 1288 (0x508), region = 36 }
  0x4c   : > { %p9809_p4 = scmp.ne.s32.totalorder %s9806_s8, 0 }
  0x4e   : > { %7963 = dma.done.wait (%p9809_p4), [#allocation5], 1024  }
  0x4f   : > { %7965 = vsyncadd (%p9809_p4), [#allocation5], 4294966272 }
  0x50   : > { %7967 = dma.done.wait (%p9809_p4), [#allocation8], 9216  }
  0x51   : > { %7969 = vsyncadd (%p9809_p4), [#allocation8], 4294958080  ;;  %s218_s11 = sand.u32 1, %s7982_s19   ;;  %s5930_s13 = smul.u32 3456, %s7990_s21 }
  0x52   : > { %s7626_s7 = smul.u32 192, %s218_s11  ;;  %s8004_s16 = smov [#allocation2]  }
  0x53   : > { %s231_s15 = scalar_lea.hbm %s9687_s0, %s5930_s13  ;;  %s239_s17 = sshll.u32 %s8004_s16, 4  ;;  %s240_s17 = int_to_ptr.vmem [resolvable:$true] %s239_s17 }
  0x54   : > { %s7886_s24 = scalar_lea.hbm %s231_s15, 3456  ;;  %s7888_s8 = scalar_lea.hbm %s9687_s0, 6912 }
  0x55   : > { %p7887_p13 = scmp.ne.s32.totalorder %s231_s15, %s7886_s24  ;;  %p7889_p1 = scmp.lt.u32.totalorder %s231_s15, %s9687_s0 }
  0x56   : > { %p7890_p8 = scmp.lt.u32.totalorder %s7888_s8, %s7886_s24  ;;  %p7892_p11 = scmp.lt.u32.totalorder %s7886_s24, %s231_s15 }
  0x58   : > { %p7891_p10 = por %p7890_p8, %p7889_p1 }
  0x5a   : > { %p7893_p2 = por %p7892_p11, %p7891_p10 }
  0x5c   : > { %p7894_p3 = pnand %p7893_p2, %p7887_p13 }
  0x5e   : > { %7897 = shalt.err (!%p7894_p3)  }
  0x5f   : > { %s7898_s26 = scalar_lea.vmem %s240_s17, 3456  ;;  %s7902_s14 = scalar_lea.vmem %s240_s17, 6912 }
  0x60   : > { %p7899_p5 = scmp.ne.s32.totalorder %s240_s17, %s7898_s26  ;;  %p7903_p6 = scmp.lt.s32.totalorder %s240_s17, %s240_s17 }
  0x61   : > { %p7904_p7 = scmp.lt.s32.totalorder %s7902_s14, %s7898_s26 }
  0x63   : > { %p7905_p9 = por %p7904_p7, %p7903_p6 }
  0x65   : > { %p7906_p12 = pnand %p7905_p9, %p7899_p5 }
  0x67   : > { %7909 = shalt.err (!%p7906_p12)  }
  0x68   : > { %242 = dma.hbm_to_vmem [thread:$0]  %s231_s15, 3456, %s240_s17, [#allocation3] }
  0x69   : > { %s8186_s13 = scalar_lea.vmem [#allocation9], %s7626_s7 }
  0x6a   : > { %7970 = dma.done.wait [#allocation3], 3456 }
  0x6b   : > { %7971 = vsyncadd [#allocation3], 4294963840  ;;  %v8005_v0 = vmov 0.0   ;;  %vm8006_vm0 = vmmov 0   ;;  %v7714_v1 = vld [vmem:[#allocation4] sm:$0xff]   ;;  %v7715_v2 = vld [vmem:[#allocation4 + $0x8] sm:$0xff]   ;;  %v893_v60 = vlaneseq }
  0x6c   : > { %6526 = vmatprep.subr.bf16.mxu0 %v8005_v0  ;;  %6542 = vmatprep.mubr.msk.bf16.mxu0 %vm8006_vm0, %v8005_v0  ;;  %v7716_v3 = vld [vmem:[#allocation4 + $0x10] sm:$0xff]   ;;  %v7717_v4 = vld [vmem:[#allocation4 + $0x18] sm:$0xff]   ;;  %v7718_v5 = vld [vmem:[#allocation4 + $0x20] sm:$0xff]   ;;  %v9705_v52 = vmov 0.0|0.0   ;;  %vm2276_vm3 = vsmask.f32 7424 }
  0x6d   : > { %6527 = vmatpush3.bf16.msra.mxu0 %v7714_v1  ;;  %v7719_v6 = vld [vmem:[#allocation4 + $0x28] sm:$0xff]   ;;  %v7720_v7 = vld [vmem:[#allocation4 + $0x30] sm:$0xff]   ;;  %v7721_v8 = vld [vmem:[#allocation4 + $0x38] sm:$0xff]   ;;  %vm1454_vm4 = vsmask.f32 256  ;;  %vm1670_vm5 = vcmask 1040384  }
  0x6e   : > { %6528 = vmatprep.subr.bf16.mxu0 %v8005_v0  ;;  %v7722_v9 = vld [vmem:[#allocation2] sm:$0xff]   ;;  %v7723_v10 = vld [vmem:[#allocation2 + $0x8] sm:$0xff]   ;;  %v7724_v11 = vld [vmem:[#allocation2 + $0x10] sm:$0xff]   ;;  %vm8008_vm6 = vmmov 1   ;;  %vm2377_vm10 = vcmask 1047552   ;;  %s7627_s24 = smul.u32 3072, %s7990_s21 }
  0x6f   : > { %v7725_v12 = vld [vmem:[#allocation2 + $0x18] sm:$0xff]   ;;  %v7726_v13 = vld [vmem:[#allocation2 + $0x20] sm:$0xff]   ;;  %v7727_v14 = vld [vmem:[#allocation2 + $0x28] sm:$0xff]   ;;  %s5561_s25 = sshll.u32 %s8186_s13, 4  ;;  %s9641_s21 = scalar_lea.sflag [#allocation6], %s218_s11  ;;  %s9635_s25 = int_to_ptr.vmem [resolvable:$true] %s5561_s25 }
  0x70   : > { %v7728_v15 = vld [vmem:[#allocation2 + $0x30] sm:$0xff]   ;;  %v7729_v16 = vld [vmem:[#allocation2 + $0x38] sm:$0xff]   ;;  %v7730_v17 = vld [vmem:[#allocation2 + $0x40] sm:$0xff]   ;;  %s9633_s29 = scalar_lea.hbm %s9692_s5, %s7627_s24  ;;  %s7910_s10 = scalar_lea.vmem %s9635_s25, 3072 }
  0x71   : > { %6529 = vmatpush3.bf16.msra.mxu0 %v7715_v2  ;;  %v7731_v18 = vld [vmem:[#allocation2 + $0x48] sm:$0xff]   ;;  %v7748_v19 = vld [vmem:[#allocation7 + $0x40] sm:$0xff]   ;;  %v7749_v20 = vld [vmem:[#allocation7 + $0x48] sm:$0xff]   ;;  %p7911_p0 = scmp.ne.s32.totalorder %s9635_s25, %s7910_s10  ;;  %p10071_p4 = scmp.ne.s32.totalorder %s9803_s28, 0 }
  0x72   : > { %6530 = vmatprep.subr.bf16.mxu0 %v8005_v0  ;;  %v7732_v21 = vld [vmem:[#allocation2 + $0x50] sm:$0xff]   ;;  %v7750_v22 = vld [vmem:[#allocation7 + $0x50] sm:$0xff]   ;;  %v7733_v23 = vld [vmem:[#allocation2 + $0x58] sm:$0xff]   ;;  %s8010_s26 = smov [#allocation9]  }
  0x73   : > { %v7751_v24 = vld [vmem:[#allocation7 + $0x58] sm:$0xff]   ;;  %v7752_v25 = vld [vmem:[#allocation7 + $0x60] sm:$0xff]   ;;  %v7734_v26 = vld [vmem:[#allocation2 + $0x60] sm:$0xff]   ;;  %p7912_p13 = pnand %p7911_p0, %p10071_p4  ;;  %s7914_s14 = sshll.u32 %s8010_s26, 4  ;;  %s7915_s14 = int_to_ptr.vmem [resolvable:$false] %s7914_s14 }
  0x74   : > { %v7753_v27 = vld [vmem:[#allocation7 + $0x68] sm:$0xff]   ;;  %v7755_v28 = vld [vmem:[#allocation7 + $0x70] sm:$0xff]   ;;  %v7735_v29 = vld [vmem:[#allocation2 + $0x68] sm:$0xff]   ;;  %s7916_s7 = scalar_lea.vmem %s7915_s14, 6144  ;;  %p7917_p8 = scmp.lt.s32.totalorder %s9635_s25, %s7915_s14 }
  0x75   : > { %6531 = vmatpush3.bf16.msra.mxu0 %v7716_v3  ;;  %v7756_v30 = vld [vmem:[#allocation7 + $0x78] sm:$0xff]   ;;  %v7736_v31 = vld [vmem:[#allocation2 + $0x70] sm:$0xff]   ;;  %v7737_v32 = vld [vmem:[#allocation2 + $0x78] sm:$0xff]   ;;  %p7913_p1 = pneg %p7912_p13  ;;  %p7918_p10 = scmp.lt.s32.totalorder %s7916_s7, %s7910_s10 }
  0x76   : > { %6532 = vmatprep.subr.bf16.mxu0 %v8005_v0  ;;  %v7738_v33 = vld [vmem:[#allocation2 + $0x80] sm:$0xff]   ;;  %v7739_v34 = vld [vmem:[#allocation2 + $0x88] sm:$0xff]   ;;  %v7740_v35 = vld [vmem:[#allocation2 + $0x90] sm:$0xff]  }
  0x77   : > { %v7741_v36 = vld [vmem:[#allocation2 + $0x98] sm:$0xff]   ;;  %v7757_v37 = vld [vmem:[#allocation7 + $0xc0] sm:$0xff]   ;;  %v7742_v39 = vld [vmem:[#allocation2 + $0xa0] sm:$0xff]   ;;  %p7919_p11 = por %p7918_p10, %p7917_p8 }
  0x78   : > { %7226 = vmatprep.subr.bf16.mxu1 %v7757_v37  ;;  %v7758_v38 = vld [vmem:[#allocation7 + $0xc8] sm:$0xff]   ;;  %v7759_v40 = vld [vmem:[#allocation7 + $0xd0] sm:$0xff]   ;;  %v7760_v41 = vld [vmem:[#allocation7 + $0xd8] sm:$0xff]  }
  0x79   : > { %6533 = vmatpush3.bf16.msra.mxu0 %v7717_v4  ;;  %7234 = vmatpush3.bf16.msra.mxu1 %v7757_v37  ;;  %v7743_v42 = vld [vmem:[#allocation2 + $0xa8] sm:$0xff]   ;;  %v7761_v43 = vld [vmem:[#allocation7 + $0xe0] sm:$0xff]   ;;  %v7762_v44 = vld [vmem:[#allocation7 + $0xe8] sm:$0xff]   ;;  %p7920_p2 = pnand %p7919_p11, %p7913_p1 }
  0x7a   : > { %6534 = vmatprep.subr.bf16.mxu0 %v8005_v0  ;;  %7227 = vmatprep.subr.bf16.mxu1 %v7758_v38  ;;  %v7744_v45 = vld [vmem:[#allocation2 + $0xb0] sm:$0xff]   ;;  %v7763_v46 = vld [vmem:[#allocation7 + $0xf0] sm:$0xff]   ;;  %v7764_v47 = vld [vmem:[#allocation7 + $0xf8] sm:$0xff]  }
  0x7b   : > { %v7745_v48 = vld [vmem:[#allocation2 + $0xb8] sm:$0xff]   ;;  %v7746_v49 = vld [vmem:[#allocation2 + $0xc0] sm:$0xff]   ;;  %v7747_v50 = vld [vmem:[#allocation2 + $0xc8] sm:$0xff]  }
  0x7c   : > { %v7754_v51 = vld [vmem:[#allocation2 + $0xd0] sm:$0xff]   ;;  %v8254_v59 = vld [vmem:[%s9690_s3] ss:$0 sm:$0xff]  ;;  %vm8345_vm8 = vmand %vm1670_vm5, %vm1454_vm4 }
  0x7d   : > { %6535 = vmatpush3.bf16.msra.mxu0 %v7718_v5  ;;  %7235 = vmatpush3.bf16.msra.mxu1 %v7758_v38  ;;  %vm9274_vm11 = vmand %vm2377_vm10, %vm2276_vm3 }
  0x7e   : > { %6536 = vmatprep.subr.bf16.mxu0 %v8005_v0  ;;  %7228 = vmatprep.subr.bf16.mxu1 %v7759_v40 }
  0x81   : > { %6537 = vmatpush3.bf16.msra.mxu0 %v7719_v6  ;;  %7236 = vmatpush3.bf16.msra.mxu1 %v7759_v40 }
  0x82   : > { %6538 = vmatprep.subr.bf16.mxu0 %v8005_v0  ;;  %7229 = vmatprep.subr.bf16.mxu1 %v7760_v41 }
  0x85   : > { %6539 = vmatpush3.bf16.msra.mxu0 %v7720_v7  ;;  %7237 = vmatpush3.bf16.msra.mxu1 %v7760_v41  ;;  %v9708_v41 = vmov 0  }
  0x86   : > { %6540 = vmatprep.subr.bf16.mxu0 %v8005_v0  ;;  %7230 = vmatprep.subr.bf16.mxu1 %v7761_v43 }
  0x89   : > { %6541 = vmatpush3.bf16.msra.mxu0 %v7721_v8  ;;  %7238 = vmatpush3.bf16.msra.mxu1 %v7761_v43 }
  0x8a   : > { %6650 = vmatprep.subr.bf16.mxu0 %v7748_v19  ;;  %7231 = vmatprep.subr.bf16.mxu1 %v7762_v44 }
  0x8c   : > { %6543 = vmatmul.mubr.bf16.vlgmr.msra.gmra.mrb[0].mxu0 %v7722_v9 }
  0x8d   : > { %6546 = vmatprep.mubr.msk.bf16.mxu0 %vm8006_vm0, %v8005_v0  ;;  %6651 = vmatpush3.bf16.msra.mxu0 %v7748_v19 }
  0x8e   : > { %6652 = vmatprep.subr.bf16.mxu0 %v7749_v20  ;;  %7239 = vmatpush3.bf16.msra.mxu1 %v7762_v44 }
  0x8f   : > { %7232 = vmatprep.subr.bf16.mxu1 %v7763_v46 }
  0x91   : > { %6653 = vmatpush3.bf16.msra.mxu0 %v7749_v20 }
  0x92   : > { %6654 = vmatprep.subr.bf16.mxu0 %v7750_v22  ;;  %7240 = vmatpush3.bf16.msra.mxu1 %v7763_v46 }
  0x93   : > { %7233 = vmatprep.subr.bf16.mxu1 %v7764_v47 }
  0x94   : > { %6547 = vmatmul.mubr.bf16.gmra.mrb[4].mxu0 %v7723_v10 }
  0x95   : > { %6550 = vmatprep.mubr.msk.bf16.mxu0 %vm8006_vm0, %v8005_v0  ;;  %6655 = vmatpush3.bf16.msra.mxu0 %v7750_v22 }
  0x96   : > { %6656 = vmatprep.subr.bf16.mxu0 %v7751_v24  ;;  %7241 = vmatpush3.bf16.msra.mxu1 %v7764_v47 }
  0x99   : > { %6657 = vmatpush3.bf16.msra.mxu0 %v7751_v24 }
  0x9a   : > { %6658 = vmatprep.subr.bf16.mxu0 %v7752_v25 }
  0x9c   : > { %6551 = vmatmul.mubr.bf16.gmra.mrb[8].mxu0 %v7724_v11 }
  0x9d   : > { %6554 = vmatprep.mubr.msk.bf16.mxu0 %vm8006_vm0, %v8005_v0  ;;  %6659 = vmatpush3.bf16.msra.mxu0 %v7752_v25 }
  0x9e   : > { %6660 = vmatprep.subr.bf16.mxu0 %v7753_v27 }
  0xa1   : > { %6661 = vmatpush3.bf16.msra.mxu0 %v7753_v27 }
  0xa2   : > { %6662 = vmatprep.subr.bf16.mxu0 %v7755_v28 }
  0xa4   : > { %6555 = vmatmul.mubr.bf16.gmra.mrb[12].mxu0 %v7725_v12 }
  0xa5   : > { %6558 = vmatprep.mubr.msk.bf16.mxu0 %vm8006_vm0, %v8005_v0  ;;  %6663 = vmatpush3.bf16.msra.mxu0 %v7755_v28 }
  0xa6   : > { %6664 = vmatprep.subr.bf16.mxu0 %v7756_v30 }
  0xa9   : > { %6665 = vmatpush3.bf16.msra.mxu0 %v7756_v30 }
  0xac   : > { %6559 = vmatmul.mubr.bf16.gmra.mrb[16].mxu0 %v7726_v13 }
  0xad   : > { %6562 = vmatprep.mubr.msk.bf16.mxu0 %vm8006_vm0, %v8005_v0 }
  0xb4   : > { %6563 = vmatmul.mubr.bf16.gmra.mrb[20].mxu0 %v7727_v14 }
  0xb5   : > { %6566 = vmatprep.mubr.msk.bf16.mxu0 %vm8006_vm0, %v8005_v0 }
  0xbc   : > { %6567 = vmatmul.mubr.bf16.gmra.mrb[24].mxu0 %v7728_v15 }
  0xbd   : > { %6570 = vmatprep.mubr.msk.bf16.mxu0 %vm8006_vm0, %v8005_v0 }
  0xc4   : > { %6571 = vmatmul.mubr.bf16.gmra.mrb[28].mxu0 %v7729_v16 }
  0xc5   : > { %6574 = vmatprep.mubr.msk.bf16.mxu0 %vm8006_vm0, %v8005_v0 }
  0xcc   : > { %6575 = vmatmul.mubr.bf16.gmra.mrb[32].mxu0 %v7730_v17 }
  0xcd   : > { %6578 = vmatprep.mubr.msk.bf16.mxu0 %vm8006_vm0, %v8005_v0 }
  0xd4   : > { %6579 = vmatmul.mubr.bf16.gmra.mrb[36].mxu0 %v7731_v18 }
  0xd5   : > { %6582 = vmatprep.mubr.msk.bf16.mxu0 %vm8006_vm0, %v8005_v0 }
  0xdc   : > { %6583 = vmatmul.mubr.bf16.gmra.mrb[40].mxu0 %v7732_v21 }
  0xdd   : > { %6586 = vmatprep.mubr.msk.bf16.mxu0 %vm8006_vm0, %v8005_v0 }
  0xe4   : > { %6587 = vmatmul.mubr.bf16.gmra.mrb[44].mxu0 %v7733_v23 }
  0xe5   : > { %6590 = vmatprep.mubr.msk.bf16.mxu0 %vm8006_vm0, %v8005_v0 }
  0xec   : > { %6591 = vmatmul.mubr.bf16.gmra.mrb[48].mxu0 %v7734_v26 }
  0xed   : > { %6594 = vmatprep.mubr.msk.bf16.mxu0 %vm8006_vm0, %v8005_v0 }
  0xf4   : > { %6595 = vmatmul.mubr.bf16.gmra.mrb[52].mxu0 %v7735_v29 }
  0xf5   : > { %6598 = vmatprep.mubr.msk.bf16.mxu0 %vm8006_vm0, %v8005_v0 }
  0xfc   : > { %6599 = vmatmul.mubr.bf16.gmra.mrb[56].mxu0 %v7736_v31 }
  0xfd   : > { %6602 = vmatprep.mubr.msk.bf16.mxu0 %vm8006_vm0, %v8005_v0 }
 0x104   : > { %6603 = vmatmul.mubr.bf16.gmra.mrb[60].mxu0 %v7737_v32 }
 0x105   : > { %6606 = vmatprep.mubr.msk.bf16.mxu0 %vm8006_vm0, %v8005_v0 }
 0x10c   : > { %6607 = vmatmul.mubr.bf16.gmra.mrb[64].mxu0 %v7738_v33 }
 0x10d   : > { %6610 = vmatprep.mubr.msk.bf16.mxu0 %vm8006_vm0, %v8005_v0 }
 0x114   : > { %6611 = vmatmul.mubr.bf16.gmra.mrb[68].mxu0 %v7739_v34 }
 0x115   : > { %6614 = vmatprep.mubr.msk.bf16.mxu0 %vm8006_vm0, %v8005_v0 }
 0x11c   : > { %6615 = vmatmul.mubr.bf16.gmra.mrb[72].mxu0 %v7740_v35 }
 0x11d   : > { %6618 = vmatprep.mubr.msk.bf16.mxu0 %vm8006_vm0, %v8005_v0 }
 0x124   : > { %6619 = vmatmul.mubr.bf16.gmra.mrb[76].mxu0 %v7741_v36 }
 0x125   : > { %6622 = vmatprep.mubr.msk.bf16.mxu0 %vm8006_vm0, %v8005_v0 }
 0x12c   : > { %6623 = vmatmul.mubr.bf16.gmra.mrb[80].mxu0 %v7742_v39 }
 0x12d   : > { %6626 = vmatprep.mubr.msk.bf16.mxu0 %vm8006_vm0, %v8005_v0 }
 0x134   : > { %6627 = vmatmul.mubr.bf16.gmra.mrb[84].mxu0 %v7743_v42  ;;  %v8308_v42 = vrot.slane %v9708_v41, 3  ;;  %v7774_v41 = vld [vmem:[#allocation7 + $0x28] sm:$0xff]  }
 0x135   : > { %6630 = vmatprep.mubr.msk.bf16.mxu0 %vm8006_vm0, %v8005_v0 }
 0x136   : > { %9814 = vst [vmem:[#allocation23_spill] sm:$0xff] %v8308_v42 }
 0x13c   : > { %6631 = vmatmul.mubr.bf16.gmra.mrb[88].mxu0 %v7744_v45 }
 0x13d   : > { %6634 = vmatprep.mubr.msk.bf16.mxu0 %vm8006_vm0, %v8005_v0 }
 0x144   : > { %6635 = vmatmul.mubr.bf16.gmra.mrb[92].mxu0 %v7745_v48 }
 0x145   : > { %6638 = vmatprep.mubr.msk.bf16.mxu0 %vm8006_vm0, %v8005_v0 }
 0x14c   : > { %6639 = vmatmul.mubr.bf16.gmra.mrb[96].mxu0 %v7746_v49 }
 0x14d   : > { %6642 = vmatprep.mubr.msk.bf16.mxu0 %vm8006_vm0, %v8005_v0 }
 0x154   : > { %6643 = vmatmul.mubr.bf16.gmra.mrb[100].mxu0 %v7747_v50 }
 0x155   : > { %6646 = vmatprep.mubr.msk.bf16.mxu0 %vm8006_vm0, %v8005_v0  ;;  %v8257_v0 = vshrl.u32 %v893_v60, 7 }
 0x157   : > { %v8260_v3 = vadd.s32 16, %v8257_v0  ;;  %vm916_vm1 = vcmp.ge.s32.totalorder %v8257_v0, 1 }
 0x158   : > { %vm8303_vm7 = vmpackc.low %vm8008_vm6, %vm916_vm1 }
 0x159   : > { %vm921_vm2 = vcmp.le.s32.totalorder %v8260_v3, 16 }
 0x15a   : > { %vm8359_vm9 = vmpackc.low %vm916_vm1, %vm921_vm2 }
 0x15c   : > { %6647 = vmatmul.mubr.bf16.gmra.mrb[104].mxu0 %v7754_v51 }
 0x15d   : > { %6666 = vmatprep.mubr.bf16.mxu0 %v9705_v52 }
 0x15f   : > { %v624_v53 = vpop.f32.mrb[0].mxu0 }
 0x160   : > { %v6544_v54 = vpop.f32.mrb[1].mxu0 }
 0x161   : > { %v627_v55 = vpop.f32.mrb[2].mxu0 }
 0x162   : > { %v6545_v56 = vpop.f32.mrb[3].mxu0 }
 0x167   : > { %v632_v57 = vpop.f32.mrb[4].mxu0 }
 0x168   : > { %v6548_v58 = vpop.f32.mrb[5].mxu0 }
 0x169   : > { %v635_v61 = vpop.f32.mrb[6].mxu0 }
 0x16a   : > { %v6549_v62 = vpop.f32.mrb[7].mxu0  ;;  %v636_v63 = vadd.f32 %v8254_v59, %v635_v61 }
 0x16c   : > { %v842_v1 = vmax.f32 %v636_v63, 0.0 }
 0x16e   : > { %v1258_v10 = vsel %vm916_vm1, %v842_v1, 0.0 }
 0x16f   : > { %v640_v2 = vpop.f32.mrb[8].mxu0 }
 0x170   : > { %v641_v4 = vadd.f32 %v8254_v59, %v640_v2  ;;  %v6552_v5 = vpop.f32.mrb[9].mxu0 }
 0x171   : > { %v643_v6 = vpop.f32.mrb[10].mxu0 }
 0x172   : > { %v843_v7 = vmax.f32 %v641_v4, 0.0  ;;  %v644_v8 = vadd.f32 %v8254_v59, %v643_v6  ;;  %v6553_v9 = vpop.f32.mrb[11].mxu0 }
 0x174   : > { %v8268_v11 = vpack.c.bf16 %v843_v7, %v1258_v10  ;;  %v8270_v12 = vpack.c.bf16 %v843_v7, %v842_v1  ;;  %v844_v13 = vmax.f32 %v644_v8, 0.0 }
 0x176   : > { %v1260_v14 = vsel %vm921_vm2, %v844_v13, 0.0  ;;  %v8276_v15 = vcombine.low %v9705_v52, %v8268_v11  ;;  %v2753_v16 = vshrl.u32 %v8268_v11, 16  ;;  %v1381_v25 = vunpack.c.h.b16 %v8268_v11 }
 0x177   : > { %v1312_v17 = vpack.c.bf16 %v1260_v14, %v1260_v14  ;;  %v648_v18 = vpop.f32.mrb[12].mxu0  ;;  %v2756_v26 = vshll.u32 %v8268_v11, 16 }
 0x178   : > { %v649_v19 = vadd.f32 %v8254_v59, %v648_v18  ;;  %v6556_v20 = vpop.f32.mrb[13].mxu0  ;;  %6667 = vmatmul.mubr.bf16.vlgmr.msra.gmra.mrb[108].mxu0 %v8276_v15  ;;  %v9707_v21 = vshll.u32 %v8276_v15, 16  ;;  %v8282_v22 = vrot.slane %v2753_v16, 7  ;;  %v1463_v36 = vshrl.u32 %v8276_v15, 16 }
 0x179   : > { %v1382_v23 = vunpack.c.l.b16 %v1312_v17  ;;  %v651_v24 = vpop.f32.mrb[14].mxu0  ;;  %v8313_v46 = vrot.slane %v2756_v26, 1 }
 0x17a   : > { %v845_v27 = vmax.f32 %v649_v19, 0.0  ;;  %v652_v28 = vadd.f32 %v8254_v59, %v651_v24  ;;  %v6557_v29 = vpop.f32.mrb[15].mxu0  ;;  %v8289_v30 = vrot.slane %v9707_v21, 1  ;;  %v8292_v32 = vor.u32 %v2756_v26, %v8282_v22 }
 0x17b   : > { %v1432_v31 = vpack.c.b16 %v1382_v23, %v1381_v25  ;;  %9816 = vst [vmem:[#allocation25_spill] sm:$0xff] %v8313_v46  ;;  %v8321_v57 = vrot.slane %v1463_v36, 7  ;;  %v3669_v9 = vor.u32 %v8313_v46, %v2753_v16 }
 0x17c   : > { %9810 = vst [vmem:[#allocation21_spill] sm:$0xff] %v8289_v30  ;;  %v8294_v33 = vpack.c.bf16 %v845_v27, %v844_v13  ;;  %v846_v34 = vmax.f32 %v652_v28, 0.0  ;;  %v1261_v35 = vsel %vm916_vm1, %v845_v27, 0.0  ;;  %v2281_v45 = vor.u32 %v8289_v30, %v1463_v36 }
 0x17d   : > { %v8299_v37 = vpack.c.bf16 %v1261_v35, %v1260_v14  ;;  %v1471_v38 = vshrl.u32 %v1432_v31, 16  ;;  %6670 = vmatprep.mubr.bf16.mxu0 %v1432_v31  ;;  %v1474_v40 = vshll.u32 %v1432_v31, 16  ;;  %v7808_v14 = vld [vmem:[#allocation7 + $0x1d8] sm:$0xff]  }
 0x17e   : > { %v1313_v43 = vpack.c.bf16 %v846_v34, %v1261_v35  ;;  %v8310_v44 = vpack.c.bf16 %v846_v34, %v845_v27 }
 0x17f   : > { %9811 = vst [vmem:[#allocation22_spill] sm:$0xff] %v8299_v37  ;;  %v9698_v47 = vshrl.u32 %v8299_v37, 16  ;;  %v2763_v48 = vshll.u32 %v8299_v37, 16  ;;  %v656_v49 = vpop.f32.mrb[16].mxu0  ;;  %v1473_v50 = vrot.slane %v1471_v38, 7  ;;  %v2282_v51 = vrot.slane %v1474_v40, 1 }
 0x180   : > { %9815 = vst [vmem:[#allocation24_spill] sm:$0xff] %v8310_v44  ;;  %v1479_v53 = vshrl.u32 %v1313_v43, 16  ;;  %v1482_v54 = vshll.u32 %v1313_v43, 16  ;;  %v657_v55 = vadd.f32 %v8254_v59, %v656_v49  ;;  %v6560_v56 = vpop.f32.mrb[17].mxu0  ;;  %6671 = vmatmul.mubr.msk.bf16.gmra.mrb[112].mxu0 %vm8303_vm7, %v8310_v44  ;;  %v1384_v34 = vunpack.c.h.b16 %v1313_v43 }
 0x181   : > { %v8325_v58 = vrot.slane %v9698_v47, 7  ;;  %v659_v60 = vpop.f32.mrb[18].mxu0  ;;  %v1476_v61 = vor.u32 %v1474_v40, %v1473_v50  ;;  %v8328_v62 = vsel %vm2276_vm3, %v2281_v45, %v2282_v51  ;;  %v2284_v63 = vor.u32 %v2282_v51, %v1471_v38  ;;  %v8391_v51 = vld [vmem:[#allocation7 + $0x100] sm:$0xff]  }
 0x182   : > { %9817 = vst [vmem:[#allocation26_spill] sm:$0xff] %v8328_v62  ;;  %v847_v1 = vmax.f32 %v657_v55, 0.0  ;;  %v660_v2 = vadd.f32 %v8254_v59, %v659_v60  ;;  %v6561_v4 = vpop.f32.mrb[19].mxu0  ;;  %v1481_v5 = vrot.slane %v1479_v53, 7  ;;  %v8331_v6 = vrot.slane %v1482_v54, 1  ;;  %6906 = vmatprep.subr.bf16.mxu1 %v8391_v51 }
 0x183   : > { %v2765_v7 = vor.u32 %v2763_v48, %v8325_v58  ;;  %v8336_v8 = vsel %vm1454_vm4, %v8321_v57, %v1476_v61  ;;  %v8339_v10 = vrot.slane %v2763_v48, 1 }
 0x184   : > { %9818 = vst [vmem:[#allocation27_spill] sm:$0xff] %v8331_v6  ;;  %v1263_v11 = vsel %vm921_vm2, %v847_v1, 0.0  ;;  %v848_v13 = vmax.f32 %v660_v2, 0.0  ;;  %v8349_v17 = vor.u32 %v1482_v54, %v1481_v5  ;;  %v8353_v18 = vsel %vm2276_vm3, %v2284_v63, %v8331_v6 }
 0x185   : > { %9819 = vst [vmem:[#allocation28_spill] sm:$0xff] %v8339_v10  ;;  %9823 = vst [vmem:[#allocation30_spill] sm:$0xff] %v8353_v18  ;;  %v1314_v19 = vpack.c.bf16 %v1263_v11, %v1263_v11  ;;  %v2287_v20 = vor.u32 %v8331_v6, %v1479_v53  ;;  %v8366_v23 = vsel %vm2276_vm3, %v3669_v9, %v8339_v10  ;;  %v7767_v53 = vld [vmem:[#allocation7] sm:$0xff]  }
 0x186   : > { %9822 = vst [vmem:[#allocation29_spill] sm:$0xff] %v8349_v17  ;;  %9826 = vst [vmem:[#allocation31_spill] sm:$0xff] %v8366_v23  ;;  %v8368_v24 = vpack.c.bf16 %v848_v13, %v847_v1  ;;  %v1264_v25 = vsel %vm916_vm1, %v848_v13, 0.0  ;;  %v8374_v26 = vsel %vm1454_vm4, %v1473_v50, %v8349_v17  ;;  %v8378_v27 = vsel %vm1454_vm4, %v8282_v22, %v2765_v7 }
 0x187   : > { %9828 = vst [vmem:[#allocation33_spill] sm:$0xff] %v8378_v27  ;;  %v1385_v28 = vunpack.c.l.b16 %v1314_v19  ;;  %v664_v29 = vpop.f32.mrb[20].mxu0  ;;  %v5931_v31 = vpack.c.bf16 %v1264_v25, %v1263_v11  ;;  %6714 = vmatprep.subr.bf16.mxu0 %v7767_v53  ;;  %v7768_v19 = vld [vmem:[#allocation7 + $0x8] sm:$0xff]  }
 0x188   : > { %9827 = vst [vmem:[#allocation32_spill] sm:$0xff] %v8368_v24  ;;  %v665_v36 = vadd.f32 %v8254_v59, %v664_v29  ;;  %v6564_v38 = vpop.f32.mrb[21].mxu0  ;;  %6674 = vmatprep.mubr.msk.bf16.mxu0 %vm8359_vm9, %v8368_v24  ;;  %6715 = vmatpush3.bf16.msra.mxu0 %v7767_v53 }
 0x189   : > { %v1487_v40 = vshrl.u32 %v5931_v31, 16  ;;  %v1490_v45 = vshll.u32 %v5931_v31, 16  ;;  %v667_v22 = vpop.f32.mrb[22].mxu0  ;;  %v8388_v48 = vpack.c.b16 %v1385_v28, %v1384_v34  ;;  %6716 = vmatprep.subr.bf16.mxu0 %v7768_v19 }
 0x18a   : > { %v849_v49 = vmax.f32 %v665_v36, 0.0  ;;  %v668_v43 = vadd.f32 %v8254_v59, %v667_v22  ;;  %v6565_v50 = vpop.f32.mrb[23].mxu0 }
 0x18b   : > { %v8393_v54 = vrot.slane %v1487_v40, 7  ;;  %v2288_v55 = vrot.slane %v1490_v45, 1  ;;  %v9699_v63 = vshrl.u32 %v8388_v48, 16  ;;  %v7770_v50 = vld [vmem:[#allocation7 + $0x10] sm:$0xff]  }
 0x18c   : > { %v1315_v56 = vpack.c.bf16 %v849_v49, %v1264_v25  ;;  %v8395_v60 = vpack.c.bf16 %v849_v49, %v848_v13  ;;  %v850_v61 = vmax.f32 %v668_v43, 0.0  ;;  %6717 = vmatpush3.bf16.msra.mxu0 %v7768_v19 }
 0x18d   : > { %v1492_v1 = vor.u32 %v1490_v45, %v8393_v54  ;;  %v8401_v2 = vsel %vm2276_vm3, %v2287_v20, %v2288_v55  ;;  %v2290_v4 = vor.u32 %v2288_v55, %v1487_v40  ;;  %v2770_v31 = vrot.slane %v9699_v63, 7  ;;  %6718 = vmatprep.subr.bf16.mxu0 %v7770_v50 }
 0x18e   : > { %9829 = vst [vmem:[#allocation34_spill] sm:$0xff] %v8401_v2  ;;  %v2776_v7 = vshrl.u32 %v1315_v56, 16  ;;  %v1266_v9 = vsel %vm921_vm2, %v850_v61, 0.0  ;;  %v1387_v34 = vunpack.c.h.b16 %v1315_v56  ;;  %v2779_v36 = vshll.u32 %v1315_v56, 16 }
 0x18f   : > { %v1316_v11 = vpack.c.bf16 %v1266_v9, %v1266_v9  ;;  %v672_v13 = vpop.f32.mrb[24].mxu0  ;;  %v8406_v25 = vsel %vm1454_vm4, %v1481_v5, %v1492_v1  ;;  %v9700_v45 = vshll.u32 %v8388_v48, 16 }
 0x190   : > { %v673_v28 = vadd.f32 %v8254_v59, %v672_v13  ;;  %v6568_v29 = vpop.f32.mrb[25].mxu0  ;;  %v8411_v20 = vrot.slane %v2776_v7, 7  ;;  %6719 = vmatpush3.bf16.msra.mxu0 %v7770_v50 }
 0x191   : > { %v1388_v38 = vunpack.c.l.b16 %v1316_v11  ;;  %v675_v40 = vpop.f32.mrb[26].mxu0  ;;  %v2773_v53 = vor.u32 %v9700_v45, %v2770_v31 }
 0x192   : > { %v851_v22 = vmax.f32 %v673_v28, 0.0  ;;  %v676_v49 = vadd.f32 %v8254_v59, %v675_v40  ;;  %v6569_v5 = vpop.f32.mrb[27].mxu0  ;;  %v2781_v55 = vor.u32 %v2779_v36, %v8411_v20  ;;  %v8428_v28 = vrot.slane %v2779_v36, 1 }
 0x193   : > { %v8415_v43 = vpack.c.b16 %v1388_v38, %v1387_v34  ;;  %v8432_v29 = vsel %vm1454_vm4, %v8325_v58, %v2773_v53  ;;  %v7771_v5 = vld [vmem:[#allocation7 + $0x18] sm:$0xff]  }
 0x194   : > { %v8420_v1 = vpack.c.bf16 %v851_v22, %v850_v61  ;;  %v852_v56 = vmax.f32 %v676_v49, 0.0  ;;  %v1267_v11 = vsel %vm916_vm1, %v851_v22, 0.0  ;;  %9831 = vst [vmem:[#allocation36_spill] sm:$0xff] %v8428_v28  ;;  %9832 = vst [vmem:[#allocation37_spill] sm:$0xff] %v8432_v29  ;;  %v8439_v38 = vsel %vm1454_vm4, %v2770_v31, %v2781_v55  ;;  %6720 = vmatprep.subr.bf16.mxu0 %v7771_v5 }
 0x195   : > { %v8424_v13 = vpack.c.bf16 %v1267_v11, %v1266_v9  ;;  %6675 = vmatmul.mubr.bf16.gmra.mrb[116].mxu0 %v8415_v43  ;;  %v9701_v19 = vshll.u32 %v8415_v43, 16  ;;  %9834 = vst [vmem:[#allocation39_spill] sm:$0xff] %v8439_v38  ;;  %v9703_v36 = vshrl.u32 %v8415_v43, 16 }
 0x196   : > { %v8434_v34 = vpack.c.bf16 %v852_v56, %v1267_v11  ;;  %v8436_v61 = vpack.c.bf16 %v852_v56, %v851_v22  ;;  %v3678_v11 = vor.u32 %v8428_v28, %v2776_v7  ;;  %6721 = vmatpush3.bf16.msra.mxu0 %v7771_v5 }
 0x197   : > { %9830 = vst [vmem:[#allocation35_spill] sm:$0xff] %v8424_v13  ;;  %v9704_v9 = vshrl.u32 %v8424_v13, 16  ;;  %v2787_v40 = vshll.u32 %v8424_v13, 16  ;;  %v680_v49 = vpop.f32.mrb[28].mxu0  ;;  %v2291_v58 = vrot.slane %v9701_v19, 1  ;;  %v7773_v19 = vld [vmem:[#allocation7 + $0x20] sm:$0xff]  }
 0x198   : > { %9833 = vst [vmem:[#allocation38_spill] sm:$0xff] %v8436_v61  ;;  %v9702_v53 = vshll.u32 %v8434_v34, 16  ;;  %v681_v22 = vadd.f32 %v8254_v59, %v680_v49  ;;  %v6572_v56 = vpop.f32.mrb[29].mxu0  ;;  %6678 = vmatprep.mubr.msk.bf16.mxu0 %vm8303_vm7, %v8436_v61  ;;  %v1503_v45 = vshrl.u32 %v8434_v34, 16  ;;  %6722 = vmatprep.subr.bf16.mxu0 %v7773_v19 }
 0x199   : > { %v683_v31 = vpop.f32.mrb[30].mxu0  ;;  %v8452_v50 = vsel %vm2276_vm3, %v2290_v4, %v2291_v58  ;;  %v2293_v55 = vor.u32 %v2291_v58, %v9703_v36  ;;  %v8457_v35 = vrot.slane %v2787_v40, 1  ;;  %v8469_v7 = vrot.slane %v9704_v9, 7 }
 0x19a   : > { %9835 = vst [vmem:[#allocation40_spill] sm:$0xff] %v8452_v50  ;;  %v853_v47 = vmax.f32 %v681_v22, 0.0  ;;  %v684_v49 = vadd.f32 %v8254_v59, %v683_v31  ;;  %v6573_v56 = vpop.f32.mrb[31].mxu0  ;;  %v2294_v63 = vrot.slane %v9702_v53, 1  ;;  %6723 = vmatpush3.bf16.msra.mxu0 %v7773_v19  ;;  %v8500_v17 = vrot.slane %v1503_v45, 7 }
 0x19b   : > { %9836 = vst [vmem:[#allocation41_spill] sm:$0xff] %v8457_v35  ;;  %v8465_v4 = vsel %vm2276_vm3, %v3678_v11, %v8457_v35  ;;  %v2789_v53 = vor.u32 %v2787_v40, %v8469_v7  ;;  %6724 = vmatprep.subr.bf16.mxu0 %v7774_v41 }
 0x19c   : > { %9837 = vst [vmem:[#allocation42_spill] sm:$0xff] %v8465_v4  ;;  %v1269_v58 = vsel %vm921_vm2, %v853_v47, 0.0  ;;  %v854_v22 = vmax.f32 %v684_v49, 0.0  ;;  %v8474_v5 = vsel %vm2276_vm3, %v2293_v55, %v2294_v63  ;;  %v2296_v56 = vor.u32 %v2294_v63, %v1503_v45 }
 0x19d   : > { %9838 = vst [vmem:[#allocation43_spill] sm:$0xff] %v8474_v5  ;;  %v1318_v31 = vpack.c.bf16 %v1269_v58, %v1269_v58  ;;  %v1390_v49 = vunpack.c.h.b16 %v8434_v34  ;;  %v8484_v55 = vsel %vm1454_vm4, %v8411_v20, %v2789_v53  ;;  %v7776_v20 = vld [vmem:[#allocation7 + $0x30] sm:$0xff]  }
 0x19e   : > { %v8477_v36 = vpack.c.bf16 %v854_v22, %v853_v47  ;;  %v1270_v11 = vsel %vm916_vm1, %v854_v22, 0.0  ;;  %9840 = vst [vmem:[#allocation45_spill] sm:$0xff] %v8484_v55  ;;  %6725 = vmatpush3.bf16.msra.mxu0 %v7774_v41 }
 0x19f   : > { %v1391_v9 = vunpack.c.l.b16 %v1318_v31  ;;  %v688_v52 = vpop.f32.mrb[32].mxu0  ;;  %v5932_v21 = vpack.c.bf16 %v1270_v11, %v1269_v58  ;;  %6726 = vmatprep.subr.bf16.mxu0 %v7776_v20 }
 0x1a0   : > { %9839 = vst [vmem:[#allocation44_spill] sm:$0xff] %v8477_v36  ;;  %v689_v63 = vadd.f32 %v8254_v59, %v688_v52  ;;  %v6576_v6 = vpop.f32.mrb[33].mxu0  ;;  %6679 = vmatmul.mubr.msk.bf16.gmra.mrb[120].mxu0 %vm8359_vm9, %v8477_v36 }
 0x1a1   : > { %v1511_v47 = vshrl.u32 %v5932_v21, 16  ;;  %v1514_v40 = vshll.u32 %v5932_v21, 16  ;;  %v691_v19 = vpop.f32.mrb[34].mxu0  ;;  %v8490_v31 = vpack.c.b16 %v1391_v9, %v1390_v49 }
 0x1a2   : > { %v855_v58 = vmax.f32 %v689_v63, 0.0  ;;  %v692_v61 = vadd.f32 %v8254_v59, %v691_v19  ;;  %v6577_v24 = vpop.f32.mrb[35].mxu0  ;;  %6727 = vmatpush3.bf16.msra.mxu0 %v7776_v20 }
 0x1a3   : > { %9841 = vst [vmem:[#allocation46_spill] sm:$0xff] %v8490_v31  ;;  %v8493_v53 = vrot.slane %v1511_v47, 7  ;;  %v2297_v52 = vrot.slane %v1514_v40, 1  ;;  %v9718_v21 = vshrl.u32 %v8490_v31, 16  ;;  %v9719_v46 = vshll.u32 %v8490_v31, 16 }
 0x1a4   : > { %v8495_v6 = vpack.c.bf16 %v855_v58, %v1270_v11  ;;  %v8497_v44 = vpack.c.bf16 %v855_v58, %v854_v22  ;;  %v856_v36 = vmax.f32 %v692_v61, 0.0  ;;  %v7777_v61 = vld [vmem:[#allocation7 + $0x38] sm:$0xff]  }
 0x1a5   : > { %v1516_v9 = vor.u32 %v1514_v40, %v8493_v53  ;;  %v8504_v49 = vsel %vm2276_vm3, %v2296_v56, %v2297_v52  ;;  %v2299_v41 = vor.u32 %v2297_v52, %v1511_v47  ;;  %v2794_v56 = vrot.slane %v9718_v21, 7  ;;  %6728 = vmatprep.subr.bf16.mxu0 %v7777_v61 }
 0x1a6   : > { %9842 = vst [vmem:[#allocation47_spill] sm:$0xff] %v8497_v44  ;;  %9843 = vst [vmem:[#allocation48_spill] sm:$0xff] %v8504_v49  ;;  %v2800_v24 = vshrl.u32 %v8495_v6, 16  ;;  %v1272_v11 = vsel %vm921_vm2, %v856_v36, 0.0  ;;  %v1393_v58 = vunpack.c.h.b16 %v8495_v6  ;;  %v2803_v52 = vshll.u32 %v8495_v6, 16  ;;  %6729 = vmatpush3.bf16.msra.mxu0 %v7777_v61 }
 0x1a7   : > { %v1320_v22 = vpack.c.bf16 %v1272_v11, %v1272_v11  ;;  %v696_v63 = vpop.f32.mrb[36].mxu0  ;;  %v8511_v19 = vsel %vm1454_vm4, %v8500_v17, %v1516_v9 }
 0x1a8   : > { %v697_v45 = vadd.f32 %v8254_v59, %v696_v63  ;;  %v6580_v40 = vpop.f32.mrb[37].mxu0  ;;  %v2802_v47 = vrot.slane %v2800_v24, 7 }
 0x1a9   : > { %v1394_v42 = vunpack.c.l.b16 %v1320_v22  ;;  %v699_v20 = vpop.f32.mrb[38].mxu0  ;;  %v2797_v40 = vor.u32 %v9719_v46, %v2794_v56 }
 0x1aa   : > { %v857_v55 = vmax.f32 %v697_v45, 0.0  ;;  %v700_v9 = vadd.f32 %v8254_v59, %v699_v20  ;;  %v6581_v38 = vpop.f32.mrb[39].mxu0  ;;  %v2805_v21 = vor.u32 %v2803_v52, %v2802_v47 }
 0x1ab   : > { %v8520_v63 = vpack.c.b16 %v1394_v42, %v1393_v58  ;;  %v8532_v38 = vsel %vm1454_vm4, %v8469_v7, %v2797_v40  ;;  %v8538_v58 = vrot.slane %v2803_v52, 1 }
 0x1ac   : > { %v8524_v29 = vpack.c.bf16 %v857_v55, %v856_v36  ;;  %v858_v27 = vmax.f32 %v700_v9, 0.0  ;;  %v1273_v6 = vsel %vm916_vm1, %v857_v55, 0.0  ;;  %9845 = vst [vmem:[#allocation50_spill] sm:$0xff] %v8532_v38  ;;  %v8541_v36 = vsel %vm1454_vm4, %v2794_v56, %v2805_v21 }
 0x1ad   : > { %v5961_v22 = vpack.c.bf16 %v1273_v6, %v1272_v11  ;;  %6682 = vmatprep.mubr.bf16.mxu0 %v8520_v63  ;;  %v9720_v45 = vshll.u32 %v8520_v63, 16  ;;  %9847 = vst [vmem:[#allocation52_spill] sm:$0xff] %v8538_v58  ;;  %9848 = vst [vmem:[#allocation53_spill] sm:$0xff] %v8541_v36  ;;  %v9724_v46 = vshrl.u32 %v8520_v63, 16 }
 0x1ae   : > { %9844 = vst [vmem:[#allocation49_spill] sm:$0xff] %v8524_v29  ;;  %v8534_v42 = vpack.c.bf16 %v858_v27, %v1273_v6  ;;  %v8536_v61 = vpack.c.bf16 %v858_v27, %v857_v55 }
 0x1af   : > { %v2811_v20 = vshll.u32 %v5961_v22, 16  ;;  %v704_v9 = vpop.f32.mrb[40].mxu0  ;;  %v2808_v11 = vshrl.u32 %v5961_v22, 16  ;;  %v2300_v4 = vrot.slane %v9720_v45, 1 }
 0x1b0   : > { %9846 = vst [vmem:[#allocation51_spill] sm:$0xff] %v8536_v61  ;;  %v9723_v7 = vshll.u32 %v8534_v42, 16  ;;  %v705_v40 = vadd.f32 %v8254_v59, %v704_v9  ;;  %v6584_v6 = vpop.f32.mrb[41].mxu0  ;;  %6683 = vmatmul.mubr.msk.bf16.gmra.mrb[124].mxu0 %vm8303_vm7, %v8536_v61  ;;  %v3687_v61 = vor.u32 %v8538_v58, %v2800_v24  ;;  %v1396_v58 = vunpack.c.h.b16 %v8534_v42 }
 0x1b1   : > { %v707_v27 = vpop.f32.mrb[42].mxu0  ;;  %v8551_v55 = vrot.slane %v2808_v11, 7  ;;  %v8554_v21 = vsel %vm2276_vm3, %v2299_v41, %v2300_v4  ;;  %v2302_v56 = vor.u32 %v2300_v4, %v9724_v46  ;;  %v1527_v6 = vshrl.u32 %v8534_v42, 16 }
 0x1b2   : > { %9849 = vst [vmem:[#allocation54_spill] sm:$0xff] %v8554_v21  ;;  %v859_v52 = vmax.f32 %v705_v40, 0.0  ;;  %v708_v22 = vadd.f32 %v8254_v59, %v707_v27  ;;  %v6585_v45 = vpop.f32.mrb[43].mxu0  ;;  %v2303_v9 = vrot.slane %v9723_v7, 1  ;;  %v3688_v36 = vrot.slane %v2811_v20, 1 }
 0x1b3   : > { %v2813_v38 = vor.u32 %v2811_v20, %v8551_v55 }
 0x1b4   : > { %v1275_v41 = vsel %vm921_vm2, %v859_v52, 0.0  ;;  %v860_v35 = vmax.f32 %v708_v22, 0.0  ;;  %v8567_v4 = vsel %vm2276_vm3, %v2302_v56, %v2303_v9  ;;  %v2305_v27 = vor.u32 %v2303_v9, %v1527_v6 }
 0x1b5   : > { %9850 = vst [vmem:[#allocation55_spill] sm:$0xff] %v8567_v4  ;;  %v1322_v40 = vpack.c.bf16 %v1275_v41, %v1275_v41  ;;  %v8570_v45 = vsel %vm2276_vm3, %v3687_v61, %v3688_v36  ;;  %v3690_v7 = vor.u32 %v3688_v36, %v2808_v11  ;;  %v8577_v20 = vsel %vm1454_vm4, %v2802_v47, %v2813_v38 }
 0x1b6   : > { %9851 = vst [vmem:[#allocation56_spill] sm:$0xff] %v8570_v45  ;;  %v8572_v46 = vpack.c.bf16 %v860_v35, %v859_v52  ;;  %v1276_v24 = vsel %vm916_vm1, %v860_v35, 0.0  ;;  %9853 = vst [vmem:[#allocation58_spill] sm:$0xff] %v8577_v20 }
 0x1b7   : > { %v1397_v22 = vunpack.c.l.b16 %v1322_v40  ;;  %v712_v13 = vpop.f32.mrb[44].mxu0  ;;  %v5933_v56 = vpack.c.bf16 %v1276_v24, %v1275_v41 }
 0x1b8   : > { %9852 = vst [vmem:[#allocation57_spill] sm:$0xff] %v8572_v46  ;;  %v713_v4 = vadd.f32 %v8254_v59, %v712_v13  ;;  %v6588_v9 = vpop.f32.mrb[45].mxu0  ;;  %6686 = vmatprep.mubr.msk.bf16.mxu0 %vm8359_vm9, %v8572_v46 }
 0x1b9   : > { %v8584_v61 = vpack.c.b16 %v1397_v22, %v1396_v58  ;;  %v1535_v36 = vshrl.u32 %v5933_v56, 16  ;;  %v1538_v11 = vshll.u32 %v5933_v56, 16  ;;  %v715_v52 = vpop.f32.mrb[46].mxu0  ;;  %v8593_v58 = vrot.slane %v1527_v6, 7 }
 0x1ba   : > { %v861_v45 = vmax.f32 %v713_v4, 0.0  ;;  %v716_v47 = vadd.f32 %v8254_v59, %v715_v52  ;;  %v6589_v38 = vpop.f32.mrb[47].mxu0 }
 0x1bb   : > { %9854 = vst [vmem:[#allocation59_spill] sm:$0xff] %v8584_v61  ;;  %v2816_v40 = vshrl.u32 %v8584_v61, 16  ;;  %v2819_v41 = vshll.u32 %v8584_v61, 16  ;;  %v8589_v20 = vrot.slane %v1535_v36, 7  ;;  %v2306_v13 = vrot.slane %v1538_v11, 1 }
 0x1bc   : > { %v1323_v9 = vpack.c.bf16 %v861_v45, %v1276_v24  ;;  %v8591_v21 = vpack.c.bf16 %v861_v45, %v860_v35  ;;  %v862_v46 = vmax.f32 %v716_v47, 0.0 }
 0x1bd   : > { %9855 = vst [vmem:[#allocation60_spill] sm:$0xff] %v8589_v20  ;;  %v2818_v22 = vrot.slane %v2816_v40, 7  ;;  %v1540_v56 = vor.u32 %v1538_v11, %v8589_v20  ;;  %v8597_v4 = vsel %vm2276_vm3, %v2305_v27, %v2306_v13  ;;  %v2308_v52 = vor.u32 %v2306_v13, %v1535_v36 }
 0x1be   : > { %9856 = vst [vmem:[#allocation61_spill] sm:$0xff] %v8591_v21  ;;  %9857 = vst [vmem:[#allocation62_spill] sm:$0xff] %v8597_v4  ;;  %v2824_v38 = vshrl.u32 %v1323_v9, 16  ;;  %v2827_v28 = vshll.u32 %v1323_v9, 16  ;;  %v1278_v10 = vsel %vm921_vm2, %v862_v46, 0.0  ;;  %v3691_v6 = vrot.slane %v2819_v41, 1 }
 0x1bf   : > { %v1324_v37 = vpack.c.bf16 %v1278_v10, %v1278_v10  ;;  %v720_v49 = vpop.f32.mrb[48].mxu0  ;;  %v2821_v24 = vor.u32 %v2819_v41, %v2818_v22  ;;  %v8603_v35 = vsel %vm1454_vm4, %v8593_v58, %v1540_v56  ;;  %v1399_v45 = vunpack.c.h.b16 %v1323_v9 }
 0x1c0   : > { %v721_v11 = vadd.f32 %v8254_v59, %v720_v49  ;;  %v6592_v47 = vpop.f32.mrb[49].mxu0  ;;  %v2826_v27 = vrot.slane %v2824_v38, 7  ;;  %v3694_v4 = vrot.slane %v2827_v28, 1  ;;  %v8609_v23 = vsel %vm2276_vm3, %v3690_v7, %v3691_v6 }
 0x1c1   : > { %v1400_v36 = vunpack.c.l.b16 %v1324_v37  ;;  %v723_v13 = vpop.f32.mrb[50].mxu0  ;;  %v2822_v5 = vsel %vm1454_vm4, %v8551_v55, %v2821_v24  ;;  %9858 = vst [vmem:[#allocation63_spill] sm:$0xff] %v8609_v23  ;;  %v3693_v50 = vor.u32 %v3691_v6, %v2816_v40  ;;  %v7766_v47 = vld [vmem:[#allocation7 + $0x108] sm:$0xff]   ;;  %v7775_v23 = vld [vmem:[#allocation7 + $0x120] sm:$0xff]  }
 0x1c2   : > { %v863_v2 = vmax.f32 %v721_v11, 0.0  ;;  %v724_v56 = vadd.f32 %v8254_v59, %v723_v13  ;;  %v6593_v18 = vpop.f32.mrb[51].mxu0  ;;  %6874 = vmatprep.mubr.bf16.mxu1 %v2822_v5  ;;  %v2829_v41 = vor.u32 %v2827_v28, %v2826_v27  ;;  %v3696_v9 = vor.u32 %v3694_v4, %v2824_v38  ;;  %v7769_v38 = vld [vmem:[#allocation7 + $0x110] sm:$0xff]  }
 0x1c3   : > { %v8612_v49 = vpack.c.b16 %v1400_v36, %v1399_v45  ;;  %v8615_v37 = vsel %vm2276_vm3, %v3693_v50, %v3694_v4 }
 0x1c4   : > { %9859 = vst [vmem:[#allocation64_spill] sm:$0xff] %v8615_v37  ;;  %v8617_v62 = vpack.c.bf16 %v863_v2, %v862_v46  ;;  %v864_v55 = vmax.f32 %v724_v56, 0.0  ;;  %v1279_v7 = vsel %vm916_vm1, %v863_v2, 0.0  ;;  %v2830_v40 = vsel %vm1454_vm4, %v2818_v22, %v2829_v41 }
 0x1c5   : > { %v5962_v24 = vpack.c.bf16 %v1279_v7, %v1278_v10  ;;  %6687 = vmatmul.mubr.bf16.gmra.mrb[128].mxu0 %v8612_v49  ;;  %6875 = vmatmul.mubr.bf16.vlgmr.msra.gmra.mrb[0].mxu1 %v2830_v40  ;;  %v9738_v18 = vshll.u32 %v8612_v49, 16  ;;  %v9740_v6 = vshrl.u32 %v8612_v49, 16 }
 0x1c6   : > { %9860 = vst [vmem:[#allocation65_spill] sm:$0xff] %v8617_v62  ;;  %v8624_v28 = vpack.c.bf16 %v864_v55, %v1279_v7  ;;  %v8626_v5 = vpack.c.bf16 %v864_v55, %v863_v2  ;;  %6907 = vmatpush3.bf16.msra.mxu1 %v8391_v51 }
 0x1c7   : > { %v2832_v46 = vshrl.u32 %v5962_v24, 16  ;;  %v2835_v50 = vshll.u32 %v5962_v24, 16  ;;  %v728_v4 = vpop.f32.mrb[52].mxu0  ;;  %6908 = vmatprep.subr.bf16.mxu1 %v7766_v47  ;;  %v2309_v10 = vrot.slane %v9738_v18, 1 }
 0x1c8   : > { %9861 = vst [vmem:[#allocation66_spill] sm:$0xff] %v8626_v5  ;;  %v9739_v22 = vshll.u32 %v8624_v28, 16  ;;  %v729_v45 = vadd.f32 %v8254_v59, %v728_v4  ;;  %v6596_v11 = vpop.f32.mrb[53].mxu0  ;;  %6690 = vmatprep.mubr.msk.bf16.mxu0 %vm8303_vm7, %v8626_v5  ;;  %v1551_v40 = vshrl.u32 %v8624_v28, 16  ;;  %v7772_v4 = vld [vmem:[#allocation7 + $0x118] sm:$0xff]  }
 0x1c9   : > { %v731_v51 = vpop.f32.mrb[54].mxu0  ;;  %v8637_v2 = vrot.slane %v2832_v46, 7  ;;  %v8640_v36 = vsel %vm2276_vm3, %v2308_v52, %v2309_v10  ;;  %v2311_v13 = vor.u32 %v2309_v10, %v9740_v6  ;;  %v3697_v11 = vrot.slane %v2835_v50, 1 }
 0x1ca   : > { %9862 = vst [vmem:[#allocation67_spill] sm:$0xff] %v8640_v36  ;;  %v865_v56 = vmax.f32 %v729_v45, 0.0  ;;  %v732_v41 = vadd.f32 %v8254_v59, %v731_v51  ;;  %v6597_v55 = vpop.f32.mrb[55].mxu0  ;;  %6909 = vmatpush3.bf16.msra.mxu1 %v7766_v47  ;;  %v2312_v7 = vrot.slane %v9739_v22, 1 }
 0x1cb   : > { %v2837_v24 = vor.u32 %v2835_v50, %v8637_v2  ;;  %6910 = vmatprep.subr.bf16.mxu1 %v7769_v38  ;;  %v8656_v55 = vsel %vm2276_vm3, %v3696_v9, %v3697_v11  ;;  %v3699_v6 = vor.u32 %v3697_v11, %v2832_v46 }
 0x1cc   : > { %v1281_v52 = vsel %vm921_vm2, %v865_v56, 0.0  ;;  %v866_v18 = vmax.f32 %v732_v41, 0.0  ;;  %v8652_v10 = vsel %vm2276_vm3, %v2311_v13, %v2312_v7  ;;  %v2314_v51 = vor.u32 %v2312_v7, %v1551_v40  ;;  %9864 = vst [vmem:[#allocation69_spill] sm:$0xff] %v8656_v55 }
 0x1cd   : > { %9863 = vst [vmem:[#allocation68_spill] sm:$0xff] %v8652_v10  ;;  %v1326_v45 = vpack.c.bf16 %v1281_v52, %v1281_v52  ;;  %v2838_v47 = vsel %vm1454_vm4, %v2826_v27, %v2837_v24  ;;  %v1402_v41 = vunpack.c.h.b16 %v8624_v28 }
 0x1ce   : > { %v8658_v22 = vpack.c.bf16 %v866_v18, %v865_v56  ;;  %6878 = vmatprep.mubr.bf16.mxu1 %v2838_v47  ;;  %v1282_v50 = vsel %vm916_vm1, %v866_v18, 0.0  ;;  %6911 = vmatpush3.bf16.msra.mxu1 %v7769_v38 }
 0x1cf   : > { %v1403_v5 = vunpack.c.l.b16 %v1326_v45  ;;  %v736_v13 = vpop.f32.mrb[56].mxu0  ;;  %v5934_v37 = vpack.c.bf16 %v1282_v50, %v1281_v52  ;;  %6912 = vmatprep.subr.bf16.mxu1 %v7772_v4 }
 0x1d0   : > { %9865 = vst [vmem:[#allocation70_spill] sm:$0xff] %v8658_v22  ;;  %v737_v27 = vadd.f32 %v8254_v59, %v736_v13  ;;  %v6600_v7 = vpop.f32.mrb[57].mxu0  ;;  %6691 = vmatmul.mubr.msk.bf16.gmra.mrb[132].mxu0 %vm8359_vm9, %v8658_v22  ;;  %v7778_v13 = vld [vmem:[#allocation7 + $0x128] sm:$0xff]  }
 0x1d1   : > { %v8667_v9 = vpack.c.b16 %v1403_v5, %v1402_v41  ;;  %v1559_v56 = vshrl.u32 %v5934_v37, 16  ;;  %v1562_v24 = vshll.u32 %v5934_v37, 16  ;;  %v739_v38 = vpop.f32.mrb[58].mxu0  ;;  %v8676_v37 = vrot.slane %v1551_v40, 7 }
 0x1d2   : > { %v867_v46 = vmax.f32 %v737_v27, 0.0  ;;  %v740_v11 = vadd.f32 %v8254_v59, %v739_v38  ;;  %v6601_v45 = vpop.f32.mrb[59].mxu0  ;;  %6913 = vmatpush3.bf16.msra.mxu1 %v7772_v4 }
 0x1d3   : > { %9866 = vst [vmem:[#allocation71_spill] sm:$0xff] %v8667_v9  ;;  %v2840_v52 = vshrl.u32 %v8667_v9, 16  ;;  %v2843_v47 = vshll.u32 %v8667_v9, 16  ;;  %6914 = vmatprep.subr.bf16.mxu1 %v7775_v23  ;;  %v8672_v7 = vrot.slane %v1559_v56, 7  ;;  %v2315_v55 = vrot.slane %v1562_v24, 1 }
 0x1d4   : > { %v1327_v22 = vpack.c.bf16 %v867_v46, %v1282_v50  ;;  %v8674_v5 = vpack.c.bf16 %v867_v46, %v866_v18  ;;  %v868_v41 = vmax.f32 %v740_v11, 0.0 }
 0x1d5   : > { %9867 = vst [vmem:[#allocation72_spill] sm:$0xff] %v8672_v7  ;;  %v2842_v27 = vrot.slane %v2840_v52, 7  ;;  %v1564_v38 = vor.u32 %v1562_v24, %v8672_v7  ;;  %v8680_v4 = vsel %vm2276_vm3, %v2314_v51, %v2315_v55  ;;  %v2317_v45 = vor.u32 %v2315_v55, %v1559_v56  ;;  %v7779_v56 = vld [vmem:[#allocation7 + $0x130] sm:$0xff]  }
 0x1d6   : > { %9868 = vst [vmem:[#allocation73_spill] sm:$0xff] %v8674_v5  ;;  %9869 = vst [vmem:[#allocation74_spill] sm:$0xff] %v8680_v4  ;;  %v2848_v10 = vshrl.u32 %v1327_v22, 16  ;;  %v2851_v36 = vshll.u32 %v1327_v22, 16  ;;  %v1284_v30 = vsel %vm921_vm2, %v868_v41, 0.0  ;;  %6915 = vmatpush3.bf16.msra.mxu1 %v7775_v23  ;;  %v3700_v46 = vrot.slane %v2843_v47, 1 }
 0x1d7   : > { %v1328_v9 = vpack.c.bf16 %v1284_v30, %v1284_v30  ;;  %v744_v50 = vpop.f32.mrb[60].mxu0  ;;  %v2845_v18 = vor.u32 %v2843_v47, %v2842_v27  ;;  %6916 = vmatprep.subr.bf16.mxu1 %v7778_v13  ;;  %v8686_v40 = vsel %vm1454_vm4, %v8676_v37, %v1564_v38  ;;  %v1405_v24 = vunpack.c.h.b16 %v1327_v22 }
 0x1d8   : > { %9870 = vst [vmem:[#allocation75_spill] sm:$0xff] %v8686_v40  ;;  %v745_v51 = vadd.f32 %v8254_v59, %v744_v50  ;;  %v6604_v11 = vpop.f32.mrb[61].mxu0  ;;  %v2850_v55 = vrot.slane %v2848_v10, 7  ;;  %v3703_v4 = vrot.slane %v2851_v36, 1  ;;  %v8692_v21 = vsel %vm2276_vm3, %v3699_v6, %v3700_v46 }
 0x1d9   : > { %v1406_v5 = vunpack.c.l.b16 %v1328_v9  ;;  %v747_v62 = vpop.f32.mrb[62].mxu0  ;;  %v2846_v23 = vsel %vm1454_vm4, %v8637_v2, %v2845_v18  ;;  %9871 = vst [vmem:[#allocation76_spill] sm:$0xff] %v8692_v21  ;;  %v3702_v7 = vor.u32 %v3700_v46, %v2840_v52 }
 0x1da   : > { %v869_v61 = vmax.f32 %v745_v51, 0.0  ;;  %v748_v38 = vadd.f32 %v8254_v59, %v747_v62  ;;  %v6605_v47 = vpop.f32.mrb[63].mxu0  ;;  %6879 = vmatmul.mubr.bf16.gmra.mrb[4].mxu1 %v2846_v23  ;;  %v2853_v22 = vor.u32 %v2851_v36, %v2850_v55  ;;  %v3705_v50 = vor.u32 %v3703_v4, %v2848_v10  ;;  %v7780_v62 = vld [vmem:[#allocation7 + $0x138] sm:$0xff]  }
 0x1db   : > { %v8695_v11 = vpack.c.b16 %v1406_v5, %v1405_v24  ;;  %6917 = vmatpush3.bf16.msra.mxu1 %v7778_v13  ;;  %v8698_v9 = vsel %vm2276_vm3, %v3702_v7, %v3703_v4 }
 0x1dc   : > { %9873 = vst [vmem:[#allocation78_spill] sm:$0xff] %v8698_v9  ;;  %v8700_v40 = vpack.c.bf16 %v869_v61, %v868_v41  ;;  %v870_v2 = vmax.f32 %v748_v38, 0.0  ;;  %v1285_v6 = vsel %vm916_vm1, %v869_v61, 0.0  ;;  %v2854_v52 = vsel %vm1454_vm4, %v2842_v27, %v2853_v22  ;;  %6918 = vmatprep.subr.bf16.mxu1 %v7779_v56 }
 0x1dd   : > { %9872 = vst [vmem:[#allocation77_spill] sm:$0xff] %v8695_v11  ;;  %v5963_v18 = vpack.c.bf16 %v1285_v6, %v1284_v30  ;;  %6694 = vmatprep.mubr.bf16.mxu0 %v8695_v11  ;;  %6882 = vmatprep.mubr.bf16.mxu1 %v2854_v52  ;;  %v9752_v36 = vshll.u32 %v8695_v11, 16  ;;  %v9753_v4 = vshrl.u32 %v8695_v11, 16 }
 0x1de   : > { %9874 = vst [vmem:[#allocation79_spill] sm:$0xff] %v8700_v40  ;;  %v8707_v10 = vpack.c.bf16 %v870_v2, %v1285_v6  ;;  %v8709_v13 = vpack.c.bf16 %v870_v2, %v869_v61  ;;  %v8719_v61 = vld [vmem:[#allocation7 + $0x140] sm:$0xff]  }
 0x1df   : > { %v2856_v7 = vshrl.u32 %v5963_v18, 16  ;;  %v2859_v5 = vshll.u32 %v5963_v18, 16  ;;  %v752_v41 = vpop.f32.mrb[64].mxu0  ;;  %6919 = vmatpush3.bf16.msra.mxu1 %v7779_v56  ;;  %v2318_v27 = vrot.slane %v9752_v36, 1 }
 0x1e0   : > { %9875 = vst [vmem:[#allocation80_spill] sm:$0xff] %v8707_v10  ;;  %9876 = vst [vmem:[#allocation81_spill] sm:$0xff] %v8709_v13  ;;  %v9751_v30 = vshll.u32 %v8707_v10, 16  ;;  %v753_v46 = vadd.f32 %v8254_v59, %v752_v41  ;;  %v6608_v24 = vpop.f32.mrb[65].mxu0  ;;  %6695 = vmatmul.mubr.msk.bf16.gmra.mrb[136].mxu0 %vm8303_vm7, %v8709_v13  ;;  %6920 = vmatprep.subr.bf16.mxu1 %v7780_v62  ;;  %v1575_v52 = vshrl.u32 %v8707_v10, 16 }
 0x1e1   : > { %v755_v51 = vpop.f32.mrb[66].mxu0  ;;  %v8721_v23 = vrot.slane %v2856_v7, 7  ;;  %v8724_v56 = vsel %vm2276_vm3, %v2317_v45, %v2318_v27  ;;  %v2320_v38 = vor.u32 %v2318_v27, %v9753_v4  ;;  %v3706_v41 = vrot.slane %v2859_v5, 1 }
 0x1e2   : > { %9877 = vst [vmem:[#allocation82_spill] sm:$0xff] %v8724_v56  ;;  %v871_v47 = vmax.f32 %v753_v46, 0.0  ;;  %v756_v22 = vadd.f32 %v8254_v59, %v755_v51  ;;  %v6609_v2 = vpop.f32.mrb[67].mxu0  ;;  %v2321_v6 = vrot.slane %v9751_v30, 1 }
 0x1e3   : > { %v2861_v18 = vor.u32 %v2859_v5, %v8721_v23  ;;  %6921 = vmatpush3.bf16.msra.mxu1 %v7780_v62  ;;  %v8741_v30 = vsel %vm2276_vm3, %v3705_v50, %v3706_v41  ;;  %v3708_v5 = vor.u32 %v3706_v41, %v2856_v7  ;;  %v8757_v7 = vld [vmem:[%s9690_s3] ss:$0 sm:$0xff] }
 0x1e4   : > { %v1287_v45 = vsel %vm921_vm2, %v871_v47, 0.0  ;;  %v872_v24 = vmax.f32 %v756_v22, 0.0  ;;  %6970 = vmatprep.subr.bf16.mxu1 %v8719_v61  ;;  %v8737_v27 = vsel %vm2276_vm3, %v2320_v38, %v2321_v6  ;;  %v2323_v2 = vor.u32 %v2321_v6, %v1575_v52  ;;  %9879 = vst [vmem:[#allocation84_spill] sm:$0xff] %v8741_v30 }
 0x1e5   : > { %9878 = vst [vmem:[#allocation83_spill] sm:$0xff] %v8737_v27  ;;  %v1330_v46 = vpack.c.bf16 %v1287_v45, %v1287_v45  ;;  %v2862_v51 = vsel %vm1454_vm4, %v2850_v55, %v2861_v18  ;;  %v1408_v22 = vunpack.c.h.b16 %v8707_v10 }
 0x1e6   : > { %v8743_v36 = vpack.c.bf16 %v872_v24, %v871_v47  ;;  %6883 = vmatmul.mubr.bf16.gmra.mrb[8].mxu1 %v2862_v51  ;;  %v1288_v62 = vsel %vm916_vm1, %v872_v24, 0.0 }
 0x1e7   : > { %v1409_v4 = vunpack.c.l.b16 %v1330_v46  ;;  %v760_v13 = vpop.f32.mrb[68].mxu0  ;;  %v5935_v38 = vpack.c.bf16 %v1288_v62, %v1287_v45 }
 0x1e8   : > { %9880 = vst [vmem:[#allocation85_spill] sm:$0xff] %v8743_v36  ;;  %v761_v9 = vadd.f32 %v8254_v59, %v760_v13  ;;  %v6612_v21 = vpop.f32.mrb[69].mxu0  ;;  %6698 = vmatprep.mubr.msk.bf16.mxu0 %vm8359_vm9, %v8743_v36 }
 0x1e9   : > { %v8752_v55 = vpack.c.b16 %v1409_v4, %v1408_v22  ;;  %v1583_v50 = vshrl.u32 %v5935_v38, 16  ;;  %v1586_v47 = vshll.u32 %v5935_v38, 16  ;;  %v763_v6 = vpop.f32.mrb[70].mxu0  ;;  %v8764_v4 = vld [vmem:[#allocation7 + $0x80] sm:$0xff]   ;;  %v8768_v38 = vrot.slane %v1575_v52, 7 }
 0x1ea   : > { %v873_v18 = vmax.f32 %v761_v9, 0.0  ;;  %v764_v41 = vadd.f32 %v8757_v7, %v763_v6  ;;  %v6613_v45 = vpop.f32.mrb[71].mxu0  ;;  %6778 = vmatprep.subr.bf16.mxu0 %v8764_v4 }
 0x1eb   : > { %9881 = vst [vmem:[#allocation86_spill] sm:$0xff] %v8752_v55  ;;  %v2864_v59 = vshrl.u32 %v8752_v55, 16  ;;  %v2867_v21 = vshll.u32 %v8752_v55, 16  ;;  %v8762_v13 = vrot.slane %v1583_v50, 7  ;;  %v2324_v46 = vrot.slane %v1586_v47, 1  ;;  %9884 = vst [vmem:[#allocation89_spill] sm:$0xff] %v8768_v38 }
 0x1ec   : > { %v1331_v51 = vpack.c.bf16 %v873_v18, %v1288_v62  ;;  %v8766_v22 = vpack.c.bf16 %v873_v18, %v872_v24  ;;  %v874_v9 = vmax.f32 %v764_v41, 0.0 }
 0x1ed   : > { %9882 = vst [vmem:[#allocation87_spill] sm:$0xff] %v8762_v13  ;;  %v2866_v36 = vrot.slane %v2864_v59, 7  ;;  %v1588_v30 = vor.u32 %v1586_v47, %v8762_v13  ;;  %v8773_v6 = vsel %vm2276_vm3, %v2323_v2, %v2324_v46  ;;  %v2326_v45 = vor.u32 %v2324_v46, %v1583_v50 }
 0x1ee   : > { %9883 = vst [vmem:[#allocation88_spill] sm:$0xff] %v8766_v22  ;;  %9885 = vst [vmem:[#allocation90_spill] sm:$0xff] %v8773_v6  ;;  %v2872_v27 = vshrl.u32 %v1331_v51, 16  ;;  %v2875_v56 = vshll.u32 %v1331_v51, 16  ;;  %v1290_v55 = vsel %vm921_vm2, %v874_v9, 0.0  ;;  %v3709_v41 = vrot.slane %v2867_v21, 1 }
 0x1ef   : > { %v1332_v62 = vpack.c.bf16 %v1290_v55, %v1290_v55  ;;  %v768_v24 = vpop.f32.mrb[72].mxu0  ;;  %v2869_v18 = vor.u32 %v2867_v21, %v2866_v36  ;;  %v8779_v52 = vsel %vm1454_vm4, %v8768_v38, %v1588_v30  ;;  %v1411_v47 = vunpack.c.h.b16 %v1331_v51 }
 0x1f0   : > { %9886 = vst [vmem:[#allocation91_spill] sm:$0xff] %v8779_v52  ;;  %v769_v22 = vadd.f32 %v8757_v7, %v768_v24  ;;  %v6616_v40 = vpop.f32.mrb[73].mxu0  ;;  %v2874_v2 = vrot.slane %v2872_v27, 7  ;;  %v3712_v6 = vrot.slane %v2875_v56, 1  ;;  %v8785_v10 = vsel %vm2276_vm3, %v3708_v5, %v3709_v41 }
 0x1f1   : > { %v1412_v50 = vunpack.c.l.b16 %v1332_v62  ;;  %v771_v46 = vpop.f32.mrb[74].mxu0  ;;  %v2870_v13 = vsel %vm1454_vm4, %v8721_v23, %v2869_v18  ;;  %9887 = vst [vmem:[#allocation92_spill] sm:$0xff] %v8785_v10  ;;  %v3711_v29 = vor.u32 %v3709_v41, %v2864_v59 }
 0x1f2   : > { %v875_v11 = vmax.f32 %v769_v22, 0.0  ;;  %v772_v30 = vadd.f32 %v8757_v7, %v771_v46  ;;  %v6617_v52 = vpop.f32.mrb[75].mxu0  ;;  %6886 = vmatprep.mubr.bf16.mxu1 %v2870_v13  ;;  %v2877_v21 = vor.u32 %v2875_v56, %v2874_v2  ;;  %v3714_v51 = vor.u32 %v3712_v6, %v2872_v27 }
 0x1f3   : > { %v8788_v24 = vpack.c.b16 %v1412_v50, %v1411_v47  ;;  %v8791_v40 = vsel %vm2276_vm3, %v3711_v29, %v3712_v6 }
 0x1f4   : > { %9889 = vst [vmem:[#allocation94_spill] sm:$0xff] %v8791_v40  ;;  %v8793_v62 = vpack.c.bf16 %v875_v11, %v874_v9  ;;  %v876_v38 = vmax.f32 %v772_v30, 0.0  ;;  %v1291_v23 = vsel %vm916_vm1, %v875_v11, 0.0  ;;  %v2878_v5 = vsel %vm1454_vm4, %v2866_v36, %v2877_v21 }
 0x1f5   : > { %9888 = vst [vmem:[#allocation93_spill] sm:$0xff] %v8788_v24  ;;  %v5964_v59 = vpack.c.bf16 %v1291_v23, %v1290_v55  ;;  %6699 = vmatmul.mubr.bf16.gmra.mrb[140].mxu0 %v8788_v24  ;;  %6887 = vmatmul.mubr.bf16.gmra.mrb[12].mxu1 %v2878_v5  ;;  %v9767_v56 = vshll.u32 %v8788_v24, 16  ;;  %v9768_v6 = vshrl.u32 %v8788_v24, 16 }
 0x1f6   : > { %9890 = vst [vmem:[#allocation95_spill] sm:$0xff] %v8793_v62  ;;  %v8800_v27 = vpack.c.bf16 %v876_v38, %v1291_v23  ;;  %v8802_v13 = vpack.c.bf16 %v876_v38, %v875_v11 }
 0x1f7   : > { %v2880_v29 = vshrl.u32 %v5964_v59, 16  ;;  %v2883_v22 = vshll.u32 %v5964_v59, 16  ;;  %v776_v9 = vpop.f32.mrb[76].mxu0  ;;  %v2327_v18 = vrot.slane %v9767_v56, 1 }
 0x1f8   : > { %9891 = vst [vmem:[#allocation96_spill] sm:$0xff] %v8800_v27  ;;  %9892 = vst [vmem:[#allocation97_spill] sm:$0xff] %v8802_v13  ;;  %v9766_v36 = vshll.u32 %v8800_v27, 16  ;;  %v777_v55 = vadd.f32 %v8757_v7, %v776_v9  ;;  %v6620_v52 = vpop.f32.mrb[77].mxu0  ;;  %6702 = vmatprep.mubr.msk.bf16.mxu0 %vm8303_vm7, %v8802_v13  ;;  %v1599_v23 = vshrl.u32 %v8800_v27, 16 }
 0x1f9   : > { %v779_v41 = vpop.f32.mrb[78].mxu0  ;;  %v8812_v11 = vrot.slane %v2880_v29, 7  ;;  %v8815_v38 = vsel %vm2276_vm3, %v2326_v45, %v2327_v18  ;;  %v2329_v47 = vor.u32 %v2327_v18, %v9768_v6  ;;  %v3715_v59 = vrot.slane %v2883_v22, 1 }
 0x1fa   : > { %9893 = vst [vmem:[#allocation98_spill] sm:$0xff] %v8815_v38  ;;  %v877_v50 = vmax.f32 %v777_v55, 0.0  ;;  %v780_v46 = vadd.f32 %v8757_v7, %v779_v41  ;;  %v6621_v30 = vpop.f32.mrb[79].mxu0  ;;  %v2330_v21 = vrot.slane %v9766_v36, 1  ;;  %v1414_v6 = vunpack.c.h.b16 %v8800_v27 }
 0x1fb   : > { %v2885_v5 = vor.u32 %v2883_v22, %v8812_v11  ;;  %v8831_v30 = vsel %vm2276_vm3, %v3714_v51, %v3715_v59  ;;  %v3717_v56 = vor.u32 %v3715_v59, %v2880_v29 }
 0x1fc   : > { %v1293_v9 = vsel %vm921_vm2, %v877_v50, 0.0  ;;  %v878_v45 = vmax.f32 %v780_v46, 0.0  ;;  %v8827_v52 = vsel %vm2276_vm3, %v2329_v47, %v2330_v21  ;;  %v2332_v41 = vor.u32 %v2330_v21, %v1599_v23  ;;  %9895 = vst [vmem:[#allocation100_spill] sm:$0xff] %v8831_v30 }
 0x1fd   : > { %9894 = vst [vmem:[#allocation99_spill] sm:$0xff] %v8827_v52  ;;  %v1334_v18 = vpack.c.bf16 %v1293_v9, %v1293_v9  ;;  %v2886_v55 = vsel %vm1454_vm4, %v2874_v2, %v2885_v5 }
 0x1fe   : > { %v8833_v36 = vpack.c.bf16 %v878_v45, %v877_v50  ;;  %6890 = vmatprep.mubr.bf16.mxu1 %v2886_v55  ;;  %v1294_v22 = vsel %vm916_vm1, %v878_v45, 0.0 }
 0x1ff   : > { %v1415_v46 = vunpack.c.l.b16 %v1334_v18  ;;  %v784_v13 = vpop.f32.mrb[80].mxu0  ;;  %v5936_v47 = vpack.c.bf16 %v1294_v22, %v1293_v9 }
 0x200   : > { %9896 = vst [vmem:[#allocation101_spill] sm:$0xff] %v8833_v36  ;;  %v785_v40 = vadd.f32 %v8757_v7, %v784_v13  ;;  %v6624_v10 = vpop.f32.mrb[81].mxu0  ;;  %6703 = vmatmul.mubr.msk.bf16.gmra.mrb[144].mxu0 %vm8359_vm9, %v8833_v36 }
 0x201   : > { %v8842_v2 = vpack.c.b16 %v1415_v46, %v1414_v6  ;;  %v1607_v51 = vshrl.u32 %v5936_v47, 16  ;;  %v1610_v50 = vshll.u32 %v5936_v47, 16  ;;  %v787_v21 = vpop.f32.mrb[82].mxu0  ;;  %v8851_v6 = vrot.slane %v1599_v23, 7 }
 0x202   : > { %v879_v5 = vmax.f32 %v785_v40, 0.0  ;;  %v788_v29 = vadd.f32 %v8757_v7, %v787_v21  ;;  %v6625_v59 = vpop.f32.mrb[83].mxu0 }
 0x203   : > { %9897 = vst [vmem:[#allocation102_spill] sm:$0xff] %v8842_v2  ;;  %v2888_v18 = vshrl.u32 %v8842_v2, 16  ;;  %v2891_v9 = vshll.u32 %v8842_v2, 16  ;;  %v8847_v55 = vrot.slane %v1607_v51, 7  ;;  %v2333_v10 = vrot.slane %v1610_v50, 1  ;;  %9900 = vst [vmem:[#allocation105_spill] sm:$0xff] %v8851_v6 }
 0x204   : > { %v1335_v13 = vpack.c.bf16 %v879_v5, %v1294_v22  ;;  %v8849_v30 = vpack.c.bf16 %v879_v5, %v878_v45  ;;  %v880_v36 = vmax.f32 %v788_v29, 0.0 }
 0x205   : > { %9898 = vst [vmem:[#allocation103_spill] sm:$0xff] %v8847_v55  ;;  %v2890_v46 = vrot.slane %v2888_v18, 7  ;;  %v1612_v47 = vor.u32 %v1610_v50, %v8847_v55  ;;  %v8855_v40 = vsel %vm2276_vm3, %v2332_v41, %v2333_v10  ;;  %v2335_v21 = vor.u32 %v2333_v10, %v1607_v51 }
 0x206   : > { %9899 = vst [vmem:[#allocation104_spill] sm:$0xff] %v8849_v30  ;;  %9901 = vst [vmem:[#allocation106_spill] sm:$0xff] %v8855_v40  ;;  %v2896_v59 = vshrl.u32 %v1335_v13, 16  ;;  %v2899_v52 = vshll.u32 %v1335_v13, 16  ;;  %v1296_v38 = vsel %vm921_vm2, %v880_v36, 0.0  ;;  %v3718_v23 = vrot.slane %v2891_v9, 1 }
 0x207   : > { %v1336_v2 = vpack.c.bf16 %v1296_v38, %v1296_v38  ;;  %v792_v62 = vpop.f32.mrb[84].mxu0  ;;  %v2893_v22 = vor.u32 %v2891_v9, %v2890_v46  ;;  %v8861_v45 = vsel %vm1454_vm4, %v8851_v6, %v1612_v47  ;;  %v1417_v5 = vunpack.c.h.b16 %v1335_v13 }
 0x208   : > { %9902 = vst [vmem:[#allocation107_spill] sm:$0xff] %v8861_v45  ;;  %v793_v50 = vadd.f32 %v8757_v7, %v792_v62  ;;  %v6628_v29 = vpop.f32.mrb[85].mxu0  ;;  %v2898_v41 = vrot.slane %v2896_v59, 7  ;;  %v3721_v40 = vrot.slane %v2899_v52, 1  ;;  %v8867_v55 = vsel %vm2276_vm3, %v3717_v56, %v3718_v23 }
 0x209   : > { %v1418_v51 = vunpack.c.l.b16 %v1336_v2  ;;  %v795_v10 = vpop.f32.mrb[86].mxu0  ;;  %v2894_v30 = vsel %vm1454_vm4, %v8812_v11, %v2893_v22  ;;  %9903 = vst [vmem:[#allocation108_spill] sm:$0xff] %v8867_v55  ;;  %v3720_v27 = vor.u32 %v3718_v23, %v2888_v18 }
 0x20a   : > { %v881_v24 = vmax.f32 %v793_v50, 0.0  ;;  %v796_v47 = vadd.f32 %v8757_v7, %v795_v10  ;;  %v6629_v45 = vpop.f32.mrb[87].mxu0  ;;  %6891 = vmatmul.mubr.bf16.gmra.mrb[16].mxu1 %v2894_v30  ;;  %v2901_v9 = vor.u32 %v2899_v52, %v2898_v41  ;;  %v3723_v13 = vor.u32 %v3721_v40, %v2896_v59 }
 0x20b   : > { %v8870_v62 = vpack.c.b16 %v1418_v51, %v1417_v5  ;;  %v8873_v29 = vsel %vm2276_vm3, %v3720_v27, %v3721_v40 }
 0x20c   : > { %9905 = vst [vmem:[#allocation110_spill] sm:$0xff] %v8873_v29  ;;  %v8875_v2 = vpack.c.bf16 %v881_v24, %v880_v36  ;;  %v882_v6 = vmax.f32 %v796_v47, 0.0  ;;  %v1297_v56 = vsel %vm916_vm1, %v881_v24, 0.0  ;;  %v2902_v11 = vsel %vm1454_vm4, %v2890_v46, %v2901_v9 }
 0x20d   : > { %9904 = vst [vmem:[#allocation109_spill] sm:$0xff] %v8870_v62  ;;  %v5965_v18 = vpack.c.bf16 %v1297_v56, %v1296_v38  ;;  %6706 = vmatprep.mubr.bf16.mxu0 %v8870_v62  ;;  %6894 = vmatprep.mubr.bf16.mxu1 %v2902_v11  ;;  %v9782_v52 = vshll.u32 %v8870_v62, 16  ;;  %v9783_v22 = vshrl.u32 %v8870_v62, 16 }
 0x20e   : > { %9906 = vst [vmem:[#allocation111_spill] sm:$0xff] %v8875_v2  ;;  %v8882_v30 = vpack.c.bf16 %v882_v6, %v1297_v56  ;;  %v8884_v59 = vpack.c.bf16 %v882_v6, %v881_v24 }
 0x20f   : > { %v2904_v27 = vshrl.u32 %v5965_v18, 16  ;;  %v2907_v40 = vshll.u32 %v5965_v18, 16  ;;  %v800_v36 = vpop.f32.mrb[88].mxu0  ;;  %v2336_v45 = vrot.slane %v9782_v52, 1 }
 0x210   : > { %9907 = vst [vmem:[#allocation112_spill] sm:$0xff] %v8882_v30  ;;  %9908 = vst [vmem:[#allocation113_spill] sm:$0xff] %v8884_v59  ;;  %v9781_v46 = vshll.u32 %v8882_v30, 16  ;;  %v801_v38 = vadd.f32 %v8757_v7, %v800_v36  ;;  %v6632_v23 = vpop.f32.mrb[89].mxu0  ;;  %6707 = vmatmul.mubr.msk.bf16.gmra.mrb[148].mxu0 %vm8303_vm7, %v8884_v59  ;;  %v1623_v56 = vshrl.u32 %v8882_v30, 16 }
 0x211   : > { %v803_v5 = vpop.f32.mrb[90].mxu0  ;;  %v8894_v24 = vrot.slane %v2904_v27, 7  ;;  %v8897_v6 = vsel %vm2276_vm3, %v2335_v21, %v2336_v45  ;;  %v2338_v50 = vor.u32 %v2336_v45, %v9783_v22  ;;  %v3724_v18 = vrot.slane %v2907_v40, 1 }
 0x212   : > { %9909 = vst [vmem:[#allocation114_spill] sm:$0xff] %v8897_v6  ;;  %v883_v51 = vmax.f32 %v801_v38, 0.0  ;;  %v804_v10 = vadd.f32 %v8757_v7, %v803_v5  ;;  %v6633_v47 = vpop.f32.mrb[91].mxu0  ;;  %v2339_v9 = vrot.slane %v9781_v46, 1  ;;  %v1420_v22 = vunpack.c.h.b16 %v8882_v30 }
 0x213   : > { %v2909_v11 = vor.u32 %v2907_v40, %v8894_v24  ;;  %v8913_v47 = vsel %vm2276_vm3, %v3723_v13, %v3724_v18  ;;  %v3726_v52 = vor.u32 %v3724_v18, %v2904_v27 }
 0x214   : > { %v1299_v36 = vsel %vm921_vm2, %v883_v51, 0.0  ;;  %v884_v21 = vmax.f32 %v804_v10, 0.0  ;;  %v8909_v23 = vsel %vm2276_vm3, %v2338_v50, %v2339_v9  ;;  %v2341_v5 = vor.u32 %v2339_v9, %v1623_v56  ;;  %9911 = vst [vmem:[#allocation116_spill] sm:$0xff] %v8913_v47 }
 0x215   : > { %9910 = vst [vmem:[#allocation115_spill] sm:$0xff] %v8909_v23  ;;  %v1338_v45 = vpack.c.bf16 %v1299_v36, %v1299_v36  ;;  %v2910_v38 = vsel %vm1454_vm4, %v2898_v41, %v2909_v11 }
 0x216   : > { %v8915_v46 = vpack.c.bf16 %v884_v21, %v883_v51  ;;  %6895 = vmatmul.mubr.bf16.gmra.mrb[20].mxu1 %v2910_v38  ;;  %v1300_v40 = vsel %vm916_vm1, %v884_v21, 0.0 }
 0x217   : > { %v1421_v10 = vunpack.c.l.b16 %v1338_v45  ;;  %v808_v59 = vpop.f32.mrb[92].mxu0  ;;  %v5937_v50 = vpack.c.bf16 %v1300_v40, %v1299_v36 }
 0x218   : > { %9912 = vst [vmem:[#allocation117_spill] sm:$0xff] %v8915_v46  ;;  %v809_v29 = vadd.f32 %v8757_v7, %v808_v59  ;;  %v6636_v55 = vpop.f32.mrb[93].mxu0  ;;  %6710 = vmatprep.mubr.msk.bf16.mxu0 %vm8359_vm9, %v8915_v46 }
 0x219   : > { %v8924_v41 = vpack.c.b16 %v1421_v10, %v1420_v22  ;;  %v1631_v13 = vshrl.u32 %v5937_v50, 16  ;;  %v1634_v51 = vshll.u32 %v5937_v50, 16  ;;  %v811_v9 = vpop.f32.mrb[94].mxu0  ;;  %v8933_v22 = vrot.slane %v1623_v56, 7 }
 0x21a   : > { %v885_v11 = vmax.f32 %v809_v29, 0.0  ;;  %v812_v27 = vadd.f32 %v8757_v7, %v811_v9  ;;  %v6637_v18 = vpop.f32.mrb[95].mxu0 }
 0x21b   : > { %9913 = vst [vmem:[#allocation118_spill] sm:$0xff] %v8924_v41  ;;  %v2912_v45 = vshrl.u32 %v8924_v41, 16  ;;  %v2915_v36 = vshll.u32 %v8924_v41, 16  ;;  %v8929_v38 = vrot.slane %v1631_v13, 7  ;;  %v2342_v55 = vrot.slane %v1634_v51, 1  ;;  %9916 = vst [vmem:[#allocation121_spill] sm:$0xff] %v8933_v22 }
 0x21c   : > { %v1339_v59 = vpack.c.bf16 %v885_v11, %v1300_v40  ;;  %v8931_v47 = vpack.c.bf16 %v885_v11, %v884_v21  ;;  %v886_v46 = vmax.f32 %v812_v27, 0.0 }
 0x21d   : > { %9914 = vst [vmem:[#allocation119_spill] sm:$0xff] %v8929_v38  ;;  %v2914_v10 = vrot.slane %v2912_v45, 7  ;;  %v1636_v50 = vor.u32 %v1634_v51, %v8929_v38  ;;  %v8937_v29 = vsel %vm2276_vm3, %v2341_v5, %v2342_v55  ;;  %v2344_v9 = vor.u32 %v2342_v55, %v1631_v13 }
 0x21e   : > { %9915 = vst [vmem:[#allocation120_spill] sm:$0xff] %v8931_v47  ;;  %9917 = vst [vmem:[#allocation122_spill] sm:$0xff] %v8937_v29  ;;  %v2920_v18 = vshrl.u32 %v1339_v59, 16  ;;  %v2923_v23 = vshll.u32 %v1339_v59, 16  ;;  %v1302_v6 = vsel %vm921_vm2, %v886_v46, 0.0  ;;  %v3727_v56 = vrot.slane %v2915_v36, 1 }
 0x21f   : > { %v1340_v41 = vpack.c.bf16 %v1302_v6, %v1302_v6  ;;  %v816_v2 = vpop.f32.mrb[96].mxu0  ;;  %v2917_v40 = vor.u32 %v2915_v36, %v2914_v10  ;;  %v8943_v21 = vsel %vm1454_vm4, %v8933_v22, %v1636_v50  ;;  %v1423_v11 = vunpack.c.h.b16 %v1339_v59 }
 0x220   : > { %9918 = vst [vmem:[#allocation123_spill] sm:$0xff] %v8943_v21  ;;  %v817_v51 = vadd.f32 %v8757_v7, %v816_v2  ;;  %v6640_v27 = vpop.f32.mrb[97].mxu0  ;;  %v2922_v5 = vrot.slane %v2920_v18, 7  ;;  %v3730_v29 = vrot.slane %v2923_v23, 1  ;;  %v8949_v30 = vsel %vm2276_vm3, %v3726_v52, %v3727_v56 }
 0x221   : > { %v1424_v13 = vunpack.c.l.b16 %v1340_v41  ;;  %v1426_v55 = vshrl.u32 %v1340_v41, 16  ;;  %v819_v47 = vpop.f32.mrb[98].mxu0  ;;  %v2918_v38 = vsel %vm1454_vm4, %v8894_v24, %v2917_v40  ;;  %v3729_v59 = vor.u32 %v3727_v56, %v2912_v45 }
 0x222   : > { %v887_v62 = vmax.f32 %v817_v51, 0.0  ;;  %v820_v50 = vadd.f32 %v8757_v7, %v819_v47  ;;  %v6641_v21 = vpop.f32.mrb[99].mxu0  ;;  %6898 = vmatprep.mubr.bf16.mxu1 %v2918_v38  ;;  %v2925_v36 = vor.u32 %v2923_v23, %v2922_v5  ;;  %v9919_v22 = vmov 0  }
 0x223   : > { %v8952_v2 = vpack.c.b16 %v1424_v13, %v1423_v11  ;;  %v1428_v27 = vrot.slane %v1426_v55, 3  ;;  %v1458_v20 = vrot.slane %v9919_v22, 7  ;;  %v3732_v41 = vor.u32 %v3730_v29, %v2920_v18 }
 0x224   : > { %v8955_v44 = vpack.c.bf16 %v887_v62, %v886_v46  ;;  %v888_v31 = vmax.f32 %v820_v50, 0.0  ;;  %v1303_v52 = vsel %vm916_vm1, %v887_v62, 0.0  ;;  %v2926_v24 = vsel %vm1454_vm4, %v2914_v10, %v2925_v36 }
 0x225   : > { %v5966_v40 = vpack.c.bf16 %v1303_v52, %v1302_v6  ;;  %6711 = vmatmul.mubr.bf16.gmra.mrb[152].mxu0 %v8952_v2  ;;  %6899 = vmatmul.mubr.bf16.gmra.mrb[24].mxu1 %v2926_v24  ;;  %v1672_v23 = vsel %vm8345_vm8, %v1428_v27, %v1458_v20  ;;  %v1642_v47 = vshll.u32 %v8952_v2, 16  ;;  %v9920_v46 = vshll.u32 %v8276_v15, 16 }
 0x226   : > { %v1341_v45 = vpack.c.bf16 %v888_v31, %v1303_v52  ;;  %v8964_v38 = vpack.c.bf16 %v888_v31, %v887_v62  ;;  %6730 = vmatprep.mubr.bf16.mxu0 %v1672_v23  ;;  %v8970_v18 = vsel %vm2276_vm3, %v3729_v59, %v3730_v29  ;;  %v1639_v56 = vshrl.u32 %v8952_v2, 16 }
 0x227   : > { %v1468_v0 = vor.u32 %v9920_v46, %v8321_v57  ;;  %v2928_v6 = vshrl.u32 %v5966_v40, 16  ;;  %v2931_v10 = vshll.u32 %v5966_v40, 16  ;;  %v824_v21 = vpop.f32.mrb[100].mxu0  ;;  %v2345_v11 = vrot.slane %v1642_v47, 1  ;;  %v7786_v46 = vld [vmem:[#allocation7 + $0x88] sm:$0xff]  }
 0x228   : > { %v4121_v51 = vshrl.u32 %v1341_v45, 16  ;;  %v4124_v13 = vshll.u32 %v1341_v45, 16  ;;  %v825_v31 = vadd.f32 %v8757_v7, %v824_v21  ;;  %v6644_v62 = vpop.f32.mrb[101].mxu0  ;;  %v8984_v23 = vrot.slane %v1639_v56, 7 }
 0x229   : > { %v827_v55 = vpop.f32.mrb[102].mxu0  ;;  %v2930_v50 = vrot.slane %v2928_v6, 7  ;;  %v8977_v15 = vsel %vm2276_vm3, %v2344_v9, %v2345_v11  ;;  %v8979_v57 = vor.u32 %v2345_v11, %v1639_v56  ;;  %v3733_v59 = vrot.slane %v2931_v10, 1 }
 0x22a   : > { %v889_v29 = vmax.f32 %v825_v31, 0.0  ;;  %v6645_v36 = vpop.f32.mrb[103].mxu0  ;;  %v8981_v27 = vrot.slane %v4121_v51, 7  ;;  %v4828_v52 = vrot.slane %v4124_v13, 1  ;;  %v1469_v24 = vsel %vm1454_vm4, %v1458_v20, %v1468_v0  ;;  %v7788_v55 = vld [vmem:[#allocation7 + $0x90] sm:$0xff]  }
 0x22b   : > { %v2933_v40 = vor.u32 %v2931_v10, %v2930_v50  ;;  %v8989_v9 = vsel %vm2276_vm3, %v3732_v41, %v3733_v59  ;;  %v3735_v21 = vor.u32 %v3733_v59, %v2928_v6  ;;  %v2721_v41 = vunpack.c.h.b16 %v1341_v45 }
 0x22c   : > { %v1305_v7 = vsel %vm921_vm2, %v889_v29, 0.0  ;;  %v4126_v11 = vor.u32 %v4124_v13, %v8981_v27  ;;  %v8995_v20 = vsel %vm2276_vm3, %v8979_v57, %v4828_v52  ;;  %v4830_v0 = vor.u32 %v4828_v52, %v4121_v51 }
 0x22d   : > { %v1342_v31 = vpack.c.bf16 %v1305_v7, %v1305_v7  ;;  %6731 = vmatmul.mubr.bf16.vlgmr.msra.gmra.mrb[108].mxu0 %v1469_v24  ;;  %v2934_v62 = vsel %vm1454_vm4, %v2922_v5, %v2933_v40  ;;  %9921 = vst [vmem:[#allocation124_spill] sm:$0xff] %v8995_v20  ;;  %v9922_v10 = vmov 0.0|0.0   ;;  %v9923_v40 = vshrl.u32 %v8415_v43, 16  ;;  %v7827_v20 = vld [vmem:[#allocation7 + $0xe8] sm:$0xff]  }
 0x22e   : > { %6734 = vmatprep.mubr.bf16.mxu0 %v8336_v8  ;;  %6902 = vmatprep.mubr.bf16.mxu1 %v2934_v62  ;;  %v9000_v3 = vsel %vm1454_vm4, %v8984_v23, %v4126_v11  ;;  %v7789_v11 = vld [vmem:[#allocation7 + $0x98] sm:$0xff]  }
 0x22f   : > { %v2722_v6 = vunpack.c.l.b16 %v1342_v31  ;;  %v9003_v56 = vcombine.low %v1342_v31, %v9922_v10  ;;  %6779 = vmatpush3.bf16.msra.mxu0 %v8764_v4  ;;  %v2724_v5 = vshrl.u32 %v1342_v31, 16  ;;  %v832_v13 = vpop.f32.mrb[104].mxu0  ;;  %v1497_v7 = vrot.slane %v9923_v40, 7  ;;  %v7790_v40 = vld [vmem:[#allocation7 + $0xa0] sm:$0xff]  }
 0x230   : > { %6780 = vmatprep.subr.bf16.mxu0 %v7786_v46  ;;  %v6648_v29 = vpop.f32.mrb[105].mxu0 }
 0x231   : > { %v9006_v51 = vpack.c.b16 %v2722_v6, %v2721_v41  ;;  %v9008_v8 = vrot.slane %v2724_v5, 3  ;;  %v9799_v36 = vshll.u32 %v9003_v56, 16  ;;  %v835_v59 = vpop.f32.mrb[106].mxu0  ;;  %v9800_v31 = vshrl.u32 %v9003_v56, 16 }
 0x232   : > { %v6649_v52 = vpop.f32.mrb[107].mxu0 }
 0x233   : > { %v2936_v45 = vshrl.u32 %v9006_v51, 16  ;;  %v2939_v24 = vshll.u32 %v9006_v51, 16  ;;  %6781 = vmatpush3.bf16.msra.mxu0 %v7786_v46  ;;  %v4831_v62 = vrot.slane %v9799_v36, 1 }
 0x234   : > { %6782 = vmatprep.subr.bf16.mxu0 %v7788_v55 }
 0x235   : > { %6735 = vmatmul.mubr.bf16.gmra.mrb[112].mxu0 %v8374_v26  ;;  %v2938_v41 = vrot.slane %v2936_v45, 7  ;;  %v3736_v6 = vrot.slane %v2939_v24, 1  ;;  %v9025_v46 = vsel %vm2276_vm3, %v4830_v0, %v4831_v62  ;;  %v9029_v5 = vor.u32 %v4831_v62, %v9800_v31  ;;  %v9969_v31 = vld [vmem:[#allocation88_spill] sm:$0xff] }
 0x236   : > { %6738 = vmatprep.mubr.bf16.mxu0 %v8406_v25  ;;  %9924 = vst [vmem:[#allocation125_spill] sm:$0xff] %v9025_v46  ;;  %v9926_v26 = vshll.u32 %v8415_v43, 16  ;;  %v9927_v0 = vshll.u32 %v8434_v34, 16  ;;  %v9928_v34 = vshrl.u32 %v8520_v63, 16  ;;  %v9931_v62 = vshrl.u32 %v8612_v49, 16  ;;  %v9990_v46 = vld [vmem:[#allocation28_spill] sm:$0xff] }
 0x237   : > { %9925 = vst [vmem:[#allocation126_spill] sm:$0xff] %v9029_v5  ;;  %v2941_v13 = vor.u32 %v2939_v24, %v2938_v41  ;;  %6783 = vmatpush3.bf16.msra.mxu0 %v7788_v55  ;;  %v9032_v29 = vsel %vm2276_vm3, %v3735_v21, %v3736_v6  ;;  %v9034_v59 = vor.u32 %v3736_v6, %v2936_v45  ;;  %v7792_v55 = vld [vmem:[#allocation7 + $0xa8] sm:$0xff]   ;;  %v7783_v24 = vld [vmem:[#allocation7 + $0x150] sm:$0xff]   ;;  %v9084_v41 = vld [vmem:[#allocation7 + $0xc0] sm:$0xff]  }
 0x238   : > { %v1500_v52 = vor.u32 %v9926_v26, %v1497_v7  ;;  %6784 = vmatprep.subr.bf16.mxu0 %v7789_v11  ;;  %v1508_v4 = vor.u32 %v9927_v0, %v8500_v17  ;;  %v1521_v17 = vrot.slane %v9928_v34, 7  ;;  %v7791_v6 = vld [vmem:[#allocation7 + $0x168] sm:$0xff]   ;;  %v9936_v0 = vld [vmem:[#allocation60_spill] sm:$0xff]  ;;  %v7795_v34 = vld [vmem:[#allocation7 + $0x170] sm:$0xff]  }
 0x239   : > { %v2942_v36 = vsel %vm1454_vm4, %v2930_v50, %v2941_v13  ;;  %v9933_v13 = vshll.u32 %v8624_v28, 16  ;;  %v9937_v28 = vld [vmem:[#allocation77_spill] sm:$0xff] }
 0x23a   : > { %6903 = vmatmul.mubr.bf16.gmra.mrb[28].mxu1 %v2942_v36  ;;  %v9047_v21 = vsel %vm1454_vm4, %v8393_v54, %v1500_v52  ;;  %v9051_v50 = vsel %vm1454_vm4, %v1497_v7, %v1508_v4  ;;  %v7782_v36 = vld [vmem:[#allocation7 + $0x148] sm:$0xff]   ;;  %v7793_v54 = vld [vmem:[#allocation7 + $0xb0] sm:$0xff]   ;;  %v7794_v7 = vld [vmem:[#allocation7 + $0xb8] sm:$0xff]  }
 0x23b   : > { %6922 = vmatprep.mubr.msk.bf16.mxu1 %vm8303_vm7, %v8270_v12  ;;  %6785 = vmatpush3.bf16.msra.mxu0 %v7789_v11  ;;  %v9929_v12 = vshll.u32 %v8520_v63, 16  ;;  %v7784_v11 = vld [vmem:[#allocation7 + $0x158] sm:$0xff]   ;;  %v1556_v26 = vor.u32 %v9933_v13, %v8676_v37  ;;  %v9934_v52 = vld [vmem:[#allocation46_spill] sm:$0xff]  ;;  %v9938_v37 = vshrl.u32 %v9937_v28, 16  ;;  %v9948_v13 = vld [vmem:[#allocation65_spill] sm:$0xff] }
 0x23c   : > { %6786 = vmatprep.subr.bf16.mxu0 %v7790_v40 }
 0x23d   : > { %6739 = vmatmul.mubr.bf16.gmra.mrb[116].mxu0 %v9047_v21  ;;  %v1524_v45 = vor.u32 %v9929_v12, %v1521_v17  ;;  %v7796_v12 = vld [vmem:[#allocation7 + $0x178] sm:$0xff]  }
 0x23e   : > { %6742 = vmatprep.mubr.bf16.mxu0 %v9051_v50 }
 0x23f   : > { %6787 = vmatpush3.bf16.msra.mxu0 %v7790_v40  ;;  %v9066_v4 = vsel %vm1454_vm4, %v8493_v53, %v1524_v45  ;;  %v9935_v40 = vld [vmem:[#allocation47_spill] sm:$0xff]  ;;  %v9939_v45 = vshll.u32 %v9937_v28, 16 }
 0x240   : > { %6788 = vmatprep.subr.bf16.mxu0 %v7792_v55 }
 0x242   : > { %6923 = vmatmul.mubr.msk.bf16.vlgmr.msra.gmra.mrb[32].mxu1 %vm8359_vm9, %v8294_v33  ;;  %v9930_v33 = vshll.u32 %v8534_v42, 16  ;;  %v1545_v42 = vrot.slane %v9931_v62, 7 }
 0x243   : > { %6971 = vmatpush3.bf16.msra.mxu1 %v8719_v61  ;;  %6926 = vmatprep.mubr.bf16.mxu1 %v8388_v48 }
 0x244   : > { %6972 = vmatprep.subr.bf16.mxu1 %v7782_v36  ;;  %6789 = vmatpush3.bf16.msra.mxu0 %v7792_v55  ;;  %v1532_v61 = vor.u32 %v9930_v33, %v8593_v58  ;;  %v7787_v58 = vld [vmem:[#allocation7 + $0x160] sm:$0xff]  }
 0x245   : > { %6743 = vmatmul.mubr.bf16.gmra.mrb[120].mxu0 %v8511_v19  ;;  %6790 = vmatprep.subr.bf16.mxu0 %v7793_v54  ;;  %v9114_v33 = vld [vmem:[#allocation7 + $0x180] sm:$0xff]  }
 0x246   : > { %6746 = vmatprep.mubr.bf16.mxu0 %v9066_v4  ;;  %v9079_v53 = vsel %vm1454_vm4, %v1521_v17, %v1532_v61  ;;  %v9103_v17 = vsel %vm1454_vm4, %v1545_v42, %v1556_v26  ;;  %v9942_v61 = vld [vmem:[#allocation75_spill] sm:$0xff] }
 0x247   : > { %6973 = vmatpush3.bf16.msra.mxu1 %v7782_v36  ;;  %v1569_v36 = vrot.slane %v9938_v37, 7  ;;  %v9951_v37 = vld [vmem:[#allocation91_spill] sm:$0xff] }
 0x248   : > { %6974 = vmatprep.subr.bf16.mxu1 %v7783_v24  ;;  %6791 = vmatpush3.bf16.msra.mxu0 %v7793_v54 }
 0x249   : > { %6792 = vmatprep.subr.bf16.mxu0 %v7794_v7  ;;  %v1572_v54 = vor.u32 %v9939_v45, %v1569_v36 }
 0x24a   : > { %6927 = vmatmul.mubr.msk.bf16.gmra.mrb[36].mxu1 %vm8303_vm7, %v8395_v60  ;;  %v9932_v60 = vshll.u32 %v8612_v49, 16 }
 0x24b   : > { %6930 = vmatprep.mubr.msk.bf16.mxu1 %vm8359_vm9, %v8420_v1  ;;  %6975 = vmatpush3.bf16.msra.mxu1 %v7783_v24  ;;  %v9940_v24 = vld [vmem:[#allocation49_spill] sm:$0xff] }
 0x24c   : > { %6976 = vmatprep.subr.bf16.mxu1 %v7784_v11  ;;  %6793 = vmatpush3.bf16.msra.mxu0 %v7794_v7  ;;  %v1548_v1 = vor.u32 %v9932_v60, %v1545_v42  ;;  %v9941_v7 = vld [vmem:[#allocation59_spill] sm:$0xff]  ;;  %v9944_v42 = vld [vmem:[#allocation89_spill] sm:$0xff] }
 0x24d   : > { %6747 = vmatmul.mubr.bf16.gmra.mrb[124].mxu0 %v9079_v53  ;;  %6842 = vmatprep.subr.bf16.mxu0 %v9084_v41 }
 0x24e   : > { %6750 = vmatprep.mubr.bf16.mxu0 %v8603_v35  ;;  %v9099_v55 = vsel %vm1454_vm4, %v9936_v0, %v1548_v1 }
 0x24f   : > { %6977 = vmatpush3.bf16.msra.mxu1 %v7784_v11  ;;  %v9943_v11 = vld [vmem:[#allocation72_spill] sm:$0xff] }
 0x250   : > { %6978 = vmatprep.subr.bf16.mxu1 %v7787_v58  ;;  %v9119_v62 = vsel %vm1454_vm4, %v9943_v11, %v1572_v54  ;;  %v9953_v54 = vld [vmem:[#allocation105_spill] sm:$0xff] }
 0x252   : > { %6931 = vmatmul.mubr.bf16.gmra.mrb[40].mxu1 %v9934_v52 }
 0x253   : > { %6934 = vmatprep.mubr.msk.bf16.mxu1 %vm8303_vm7, %v9935_v40  ;;  %6979 = vmatpush3.bf16.msra.mxu1 %v7787_v58  ;;  %v9945_v58 = vld [vmem:[#allocation80_spill] sm:$0xff]  ;;  %v9949_v40 = vld [vmem:[#allocation93_spill] sm:$0xff] }
 0x254   : > { %6980 = vmatprep.subr.bf16.mxu1 %v7791_v6  ;;  %v9946_v60 = vshll.u32 %v9945_v58, 16  ;;  %v9950_v0 = vshrl.u32 %v9949_v40, 16  ;;  %v9957_v58 = vld [vmem:[#allocation73_spill] sm:$0xff] }
 0x255   : > { %6751 = vmatmul.mubr.bf16.gmra.mrb[128].mxu0 %v9099_v55 }
 0x256   : > { %6754 = vmatprep.mubr.bf16.mxu0 %v9103_v17  ;;  %v1580_v1 = vor.u32 %v9946_v60, %v9944_v42  ;;  %v9956_v42 = vld [vmem:[#allocation71_spill] sm:$0xff] }
 0x257   : > { %6981 = vmatpush3.bf16.msra.mxu1 %v7791_v6  ;;  %v9947_v6 = vld [vmem:[#allocation61_spill] sm:$0xff] }
 0x258   : > { %6982 = vmatprep.subr.bf16.mxu1 %v7795_v34  ;;  %v9133_v26 = vsel %vm1454_vm4, %v1569_v36, %v1580_v1  ;;  %v9958_v36 = vld [vmem:[#allocation87_spill] sm:$0xff] }
 0x25a   : > { %6935 = vmatmul.mubr.msk.bf16.gmra.mrb[44].mxu1 %vm8359_vm9, %v9940_v24  ;;  %v9954_v24 = vld [vmem:[#allocation96_spill] sm:$0xff] }
 0x25b   : > { %6938 = vmatprep.mubr.bf16.mxu1 %v9941_v7  ;;  %6983 = vmatpush3.bf16.msra.mxu1 %v7795_v34  ;;  %v1593_v34 = vrot.slane %v9950_v0, 7  ;;  %v9955_v7 = vshll.u32 %v9954_v24, 16  ;;  %v9962_v24 = vld [vmem:[#allocation79_spill] sm:$0xff] }
 0x25c   : > { %6984 = vmatprep.subr.bf16.mxu1 %v7796_v12 }
 0x25d   : > { %6755 = vmatmul.mubr.bf16.gmra.mrb[132].mxu0 %v9942_v61  ;;  %v1604_v11 = vor.u32 %v9955_v7, %v9953_v54  ;;  %v9963_v7 = vld [vmem:[#allocation86_spill] sm:$0xff] }
 0x25e   : > { %6758 = vmatprep.mubr.bf16.mxu0 %v9119_v62 }
 0x25f   : > { %6985 = vmatpush3.bf16.msra.mxu1 %v7796_v12  ;;  %v9952_v12 = vshll.u32 %v9949_v40, 16  ;;  %v9154_v1 = vsel %vm1454_vm4, %v1593_v34, %v1604_v11  ;;  %v9966_v11 = vld [vmem:[#allocation121_spill] sm:$0xff] }
 0x260   : > { %7034 = vmatprep.subr.bf16.mxu1 %v9114_v33 }
 0x261   : > { %v1596_v45 = vor.u32 %v9952_v12, %v1593_v34 }
 0x262   : > { %6939 = vmatmul.mubr.msk.bf16.gmra.mrb[0].mxu1 %vm8303_vm7, %v9947_v6  ;;  %v9959_v6 = vld [vmem:[#allocation109_spill] sm:$0xff] }
 0x263   : > { %6942 = vmatprep.mubr.msk.bf16.mxu1 %vm8359_vm9, %v9948_v13  ;;  %v9150_v60 = vsel %vm1454_vm4, %v9958_v36, %v1596_v45  ;;  %v9960_v13 = vshrl.u32 %v9959_v6, 16  ;;  %v9961_v12 = vshll.u32 %v9959_v6, 16  ;;  %v9964_v45 = vld [vmem:[#allocation107_spill] sm:$0xff] }
 0x265   : > { %6759 = vmatmul.mubr.bf16.gmra.mrb[136].mxu0 %v9133_v26  ;;  %v1617_v0 = vrot.slane %v9960_v13, 7 }
 0x266   : > { %6762 = vmatprep.mubr.bf16.mxu0 %v9951_v37 }
 0x267   : > { %v1620_v54 = vor.u32 %v9961_v12, %v1617_v0  ;;  %v9970_v12 = vld [vmem:[#allocation95_spill] sm:$0xff] }
 0x26a   : > { %6943 = vmatmul.mubr.bf16.gmra.mrb[4].mxu1 %v9956_v42  ;;  %v9965_v42 = vld [vmem:[#allocation103_spill] sm:$0xff] }
 0x26b   : > { %6946 = vmatprep.mubr.msk.bf16.mxu1 %vm8303_vm7, %v9957_v58  ;;  %v9168_v34 = vsel %vm1454_vm4, %v9965_v42, %v1620_v54  ;;  %v9967_v58 = vld [vmem:[#allocation112_spill] sm:$0xff]  ;;  %v9971_v54 = vld [vmem:[#allocation123_spill] sm:$0xff]  ;;  %v9189_v42 = vrot.slane %v9919_v22, 1  ;;  %v9977_v22 = vld [vmem:[#allocation118_spill] sm:$0xff] }
 0x26c   : > { %v9968_v36 = vshll.u32 %v9967_v58, 16  ;;  %v9974_v58 = vld [vmem:[#allocation119_spill] sm:$0xff] }
 0x26d   : > { %6763 = vmatmul.mubr.bf16.gmra.mrb[140].mxu0 %v9150_v60 }
 0x26e   : > { %6766 = vmatprep.mubr.bf16.mxu0 %v9154_v1  ;;  %v1628_v13 = vor.u32 %v9968_v36, %v9966_v11  ;;  %v9972_v11 = vld [vmem:[#allocation102_spill] sm:$0xff]  ;;  %v9975_v36 = vld [vmem:[#allocation21_spill] sm:$0xff] }
 0x272   : > { %6947 = vmatmul.mubr.msk.bf16.gmra.mrb[8].mxu1 %vm8359_vm9, %v9962_v24  ;;  %v9181_v24 = vsel %vm1454_vm4, %v1617_v0, %v1628_v13  ;;  %v2280_v13 = vsel %vm2276_vm3, %v9189_v42, %v9975_v36  ;;  %v9982_v36 = vld [vmem:[#allocation40_spill] sm:$0xff] }
 0x273   : > { %6950 = vmatprep.mubr.bf16.mxu1 %v9963_v7  ;;  %v1644_v7 = vor.u32 %v1642_v47, %v8984_v23  ;;  %v9976_v47 = vld [vmem:[#allocation111_spill] sm:$0xff]  ;;  %v9978_v23 = vld [vmem:[#allocation26_spill] sm:$0xff] }
 0x275   : > { %6767 = vmatmul.mubr.bf16.gmra.mrb[144].mxu0 %v9964_v45  ;;  %v9197_v0 = vsel %vm1454_vm4, %v9974_v58, %v1644_v7  ;;  %v7823_v7 = vld [vmem:[#allocation7 + $0xc8] sm:$0xff]  }
 0x276   : > { %6770 = vmatprep.mubr.bf16.mxu0 %v9168_v34  ;;  %v9981_v58 = vld [vmem:[#allocation34_spill] sm:$0xff] }
 0x27a   : > { %6951 = vmatmul.mubr.msk.bf16.gmra.mrb[12].mxu1 %vm8303_vm7, %v9969_v31  ;;  %v9973_v31 = vld [vmem:[#allocation104_spill] sm:$0xff] }
 0x27b   : > { %6954 = vmatprep.mubr.msk.bf16.mxu1 %vm8359_vm9, %v9970_v12  ;;  %v9979_v12 = vld [vmem:[#allocation30_spill] sm:$0xff] }
 0x27d   : > { %6771 = vmatmul.mubr.bf16.gmra.mrb[148].mxu0 %v9181_v24 }
 0x27e   : > { %6774 = vmatprep.mubr.bf16.mxu0 %v9971_v54 }
 0x282   : > { %6955 = vmatmul.mubr.bf16.gmra.mrb[16].mxu1 %v9972_v11  ;;  %v9980_v11 = vld [vmem:[#allocation120_spill] sm:$0xff] }
 0x283   : > { %6958 = vmatprep.mubr.msk.bf16.mxu1 %vm8303_vm7, %v9973_v31  ;;  %v7824_v31 = vld [vmem:[#allocation7 + $0xd0] sm:$0xff]  }
 0x285   : > { %6775 = vmatmul.mubr.bf16.gmra.mrb[152].mxu0 %v9197_v0 }
 0x286   : > { %6794 = vmatprep.mubr.bf16.mxu0 %v2280_v13  ;;  %v7825_v13 = vld [vmem:[#allocation7 + $0xd8] sm:$0xff]  }
 0x28a   : > { %6959 = vmatmul.mubr.msk.bf16.gmra.mrb[20].mxu1 %vm8359_vm9, %v9976_v47 }
 0x28b   : > { %6962 = vmatprep.mubr.bf16.mxu1 %v9977_v22  ;;  %v9984_v22 = vld [vmem:[#allocation31_spill] sm:$0xff] }
 0x28d   : > { %6795 = vmatmul.mubr.bf16.vlgmr.msra.gmra.mrb[108].mxu0 %v9978_v23  ;;  %v7826_v23 = vld [vmem:[#allocation7 + $0xe0] sm:$0xff]  }
 0x28e   : > { %6798 = vmatprep.mubr.bf16.mxu0 %v9979_v12  ;;  %6843 = vmatpush3.bf16.msra.mxu0 %v9084_v41  ;;  %v9983_v41 = vshll.u32 %v8388_v48, 16  ;;  %v9986_v12 = vld [vmem:[#allocation48_spill] sm:$0xff] }
 0x28f   : > { %6844 = vmatprep.subr.bf16.mxu0 %v7823_v7 }
 0x290   : > { %v3673_v47 = vrot.slane %v9983_v41, 1  ;;  %v7798_v41 = vld [vmem:[#allocation7 + $0x188] sm:$0xff]  }
 0x292   : > { %6963 = vmatmul.mubr.msk.bf16.gmra.mrb[24].mxu1 %vm8303_vm7, %v9980_v11  ;;  %6845 = vmatpush3.bf16.msra.mxu0 %v7823_v7  ;;  %v9987_v7 = vshrl.u32 %v8388_v48, 16  ;;  %v7799_v48 = vld [vmem:[#allocation7 + $0x190] sm:$0xff]  }
 0x293   : > { %6966 = vmatprep.mubr.msk.bf16.mxu1 %vm8359_vm9, %v8955_v44  ;;  %6846 = vmatprep.subr.bf16.mxu0 %v7824_v31  ;;  %v9985_v44 = vld [vmem:[#allocation43_spill] sm:$0xff] }
 0x294   : > { %v3675_v11 = vor.u32 %v3673_v47, %v9987_v7  ;;  %v9992_v7 = vld [vmem:[#allocation54_spill] sm:$0xff] }
 0x295   : > { %6799 = vmatmul.mubr.bf16.gmra.mrb[112].mxu0 %v9981_v58 }
 0x296   : > { %6802 = vmatprep.mubr.bf16.mxu0 %v9982_v36  ;;  %6847 = vmatpush3.bf16.msra.mxu0 %v7824_v31  ;;  %v9988_v31 = vld [vmem:[#allocation22_spill] sm:$0xff] }
 0x297   : > { %6848 = vmatprep.subr.bf16.mxu0 %v7825_v13  ;;  %v9989_v5 = vshrl.u32 %v9988_v31, 16 }
 0x29a   : > { %6967 = vmatmul.mubr.bf16.gmra.mrb[28].mxu1 %v9006_v51  ;;  %6849 = vmatpush3.bf16.msra.mxu0 %v7825_v13  ;;  %v3672_v51 = vor.u32 %v9990_v46, %v9989_v5  ;;  %v9993_v46 = vld [vmem:[#allocation55_spill] sm:$0xff]  ;;  %v9994_v5 = vshll.u32 %v9934_v52, 16 }
 0x29b   : > { %6986 = vmatprep.mubr.bf16.mxu1 %v9984_v22  ;;  %6850 = vmatprep.subr.bf16.mxu0 %v7826_v23  ;;  %v9991_v22 = vld [vmem:[#allocation36_spill] sm:$0xff] }
 0x29c   : > { %v3674_v13 = vsel %vm2276_vm3, %v3672_v51, %v3673_v47  ;;  %v3677_v36 = vsel %vm2276_vm3, %v3675_v11, %v9991_v22  ;;  %v3682_v31 = vrot.slane %v9994_v5, 1  ;;  %v7829_v47 = vld [vmem:[#allocation7 + $0xf8] sm:$0xff]   ;;  %v9995_v11 = vld [vmem:[#allocation35_spill] sm:$0xff]  ;;  %v9997_v51 = vld [vmem:[#allocation41_spill] sm:$0xff] }
 0x29d   : > { %6803 = vmatmul.mubr.bf16.gmra.mrb[116].mxu0 %v9985_v44  ;;  %v9999_v5 = vld [vmem:[#allocation62_spill] sm:$0xff] }
 0x29e   : > { %6806 = vmatprep.mubr.bf16.mxu0 %v9986_v12  ;;  %6851 = vmatpush3.bf16.msra.mxu0 %v7826_v23  ;;  %v7828_v23 = vld [vmem:[#allocation7 + $0xf0] sm:$0xff]  }
 0x29f   : > { %6852 = vmatprep.subr.bf16.mxu0 %v7827_v20 }
 0x2a2   : > { %6987 = vmatmul.mubr.bf16.vlgmr.msra.gmra.mrb[32].mxu1 %v3674_v13  ;;  %6853 = vmatpush3.bf16.msra.mxu0 %v7827_v20  ;;  %v9996_v20 = vshrl.u32 %v9995_v11, 16  ;;  %v9998_v13 = vld [vmem:[#allocation42_spill] sm:$0xff] }
 0x2a3   : > { %7035 = vmatpush3.bf16.msra.mxu1 %v9114_v33  ;;  %6990 = vmatprep.mubr.bf16.mxu1 %v3677_v36  ;;  %v7800_v36 = vld [vmem:[#allocation7 + $0x198] sm:$0xff]   ;;  %v7802_v11 = vld [vmem:[#allocation7 + $0x1a8] sm:$0xff]  }
 0x2a4   : > { %7036 = vmatprep.subr.bf16.mxu1 %v7798_v41  ;;  %6854 = vmatprep.subr.bf16.mxu0 %v7828_v23  ;;  %v3681_v33 = vor.u32 %v9997_v51, %v9996_v20  ;;  %v10002_v20 = vld [vmem:[#allocation52_spill] sm:$0xff] }
 0x2a5   : > { %6807 = vmatmul.mubr.bf16.gmra.mrb[120].mxu0 %v9992_v7  ;;  %v10001_v7 = vld [vmem:[#allocation67_spill] sm:$0xff] }
 0x2a6   : > { %6810 = vmatprep.mubr.bf16.mxu0 %v9993_v46  ;;  %6855 = vmatpush3.bf16.msra.mxu0 %v7828_v23  ;;  %v3683_v22 = vsel %vm2276_vm3, %v3681_v33, %v3682_v31  ;;  %v7801_v46 = vld [vmem:[#allocation7 + $0x1a0] sm:$0xff]   ;;  %v10003_v33 = vld [vmem:[#allocation56_spill] sm:$0xff] }
 0x2a7   : > { %7037 = vmatpush3.bf16.msra.mxu1 %v7798_v41  ;;  %6856 = vmatprep.subr.bf16.mxu0 %v7829_v47  ;;  %v10000_v41 = vshrl.u32 %v9934_v52, 16  ;;  %v7804_v52 = vld [vmem:[#allocation7 + $0x1b8] sm:$0xff]  }
 0x2a8   : > { %7038 = vmatprep.subr.bf16.mxu1 %v7799_v48 }
 0x2a9   : > { %v3684_v23 = vor.u32 %v3682_v31, %v10000_v41  ;;  %v10006_v31 = vld [vmem:[#allocation63_spill] sm:$0xff]  ;;  %v10008_v41 = vld [vmem:[#allocation82_spill] sm:$0xff] }
 0x2aa   : > { %6991 = vmatmul.mubr.bf16.gmra.mrb[36].mxu1 %v9998_v13  ;;  %6857 = vmatpush3.bf16.msra.mxu0 %v7829_v47  ;;  %v10004_v47 = vld [vmem:[#allocation68_spill] sm:$0xff]  ;;  %v10005_v13 = vld [vmem:[#allocation74_spill] sm:$0xff] }
 0x2ab   : > { %6994 = vmatprep.mubr.bf16.mxu1 %v3683_v22  ;;  %7039 = vmatpush3.bf16.msra.mxu1 %v7799_v48  ;;  %v3686_v51 = vsel %vm2276_vm3, %v3684_v23, %v10002_v20  ;;  %v7803_v48 = vld [vmem:[#allocation7 + $0x1b0] sm:$0xff]   ;;  %v7805_v22 = vld [vmem:[#allocation7 + $0x1c0] sm:$0xff]   ;;  %v10011_v20 = vld [vmem:[#allocation76_spill] sm:$0xff] }
 0x2ac   : > { %7040 = vmatprep.subr.bf16.mxu1 %v7800_v36  ;;  %v10009_v23 = vld [vmem:[#allocation83_spill] sm:$0xff] }
 0x2ad   : > { %6811 = vmatmul.mubr.bf16.gmra.mrb[124].mxu0 %v9999_v5 }
 0x2ae   : > { %6814 = vmatprep.mubr.bf16.mxu0 %v10001_v7 }
 0x2af   : > { %7041 = vmatpush3.bf16.msra.mxu1 %v7800_v36  ;;  %v10007_v36 = vld [vmem:[#allocation64_spill] sm:$0xff] }
 0x2b0   : > { %7042 = vmatprep.subr.bf16.mxu1 %v7801_v46 }
 0x2b2   : > { %6995 = vmatmul.mubr.bf16.gmra.mrb[40].mxu1 %v3686_v51  ;;  %v10013_v51 = vld [vmem:[#allocation98_spill] sm:$0xff] }
 0x2b3   : > { %6998 = vmatprep.mubr.bf16.mxu1 %v10003_v33  ;;  %7043 = vmatpush3.bf16.msra.mxu1 %v7801_v46  ;;  %v10010_v46 = vld [vmem:[#allocation69_spill] sm:$0xff]  ;;  %v10014_v33 = vld [vmem:[#allocation78_spill] sm:$0xff] }
 0x2b4   : > { %7044 = vmatprep.subr.bf16.mxu1 %v7802_v11 }
 0x2b5   : > { %6815 = vmatmul.mubr.bf16.gmra.mrb[128].mxu0 %v10004_v47 }
 0x2b6   : > { %6818 = vmatprep.mubr.bf16.mxu0 %v10005_v13 }
 0x2b7   : > { %7045 = vmatpush3.bf16.msra.mxu1 %v7802_v11  ;;  %v10012_v11 = vld [vmem:[#allocation90_spill] sm:$0xff] }
 0x2b8   : > { %7046 = vmatprep.subr.bf16.mxu1 %v7803_v48 }
 0x2ba   : > { %6999 = vmatmul.mubr.bf16.gmra.mrb[44].mxu1 %v10006_v31  ;;  %v10015_v31 = vld [vmem:[#allocation84_spill] sm:$0xff] }
 0x2bb   : > { %7002 = vmatprep.mubr.bf16.mxu1 %v10007_v36  ;;  %7047 = vmatpush3.bf16.msra.mxu1 %v7803_v48  ;;  %v10016_v48 = vld [vmem:[#allocation99_spill] sm:$0xff]  ;;  %v10017_v36 = vld [vmem:[#allocation106_spill] sm:$0xff] }
 0x2bc   : > { %7048 = vmatprep.subr.bf16.mxu1 %v7804_v52 }
 0x2bd   : > { %6819 = vmatmul.mubr.bf16.gmra.mrb[132].mxu0 %v10008_v41  ;;  %v10018_v41 = vld [vmem:[#allocation92_spill] sm:$0xff] }
 0x2be   : > { %6822 = vmatprep.mubr.bf16.mxu0 %v10009_v23  ;;  %v10020_v23 = vld [vmem:[#allocation114_spill] sm:$0xff] }
 0x2bf   : > { %7049 = vmatpush3.bf16.msra.mxu1 %v7804_v52  ;;  %v10019_v52 = vld [vmem:[#allocation94_spill] sm:$0xff] }
 0x2c0   : > { %7098 = vmatprep.subr.bf16.mxu1 %v7805_v22 }
 0x2c2   : > { %7003 = vmatmul.mubr.bf16.gmra.mrb[0].mxu1 %v10010_v46  ;;  %v10021_v46 = vld [vmem:[#allocation115_spill] sm:$0xff] }
 0x2c3   : > { %7006 = vmatprep.mubr.bf16.mxu1 %v10011_v20  ;;  %v10022_v20 = vld [vmem:[#allocation100_spill] sm:$0xff] }
 0x2c5   : > { %6823 = vmatmul.mubr.bf16.gmra.mrb[136].mxu0 %v10012_v11  ;;  %v10023_v11 = vld [vmem:[#allocation108_spill] sm:$0xff] }
 0x2c6   : > { %6826 = vmatprep.mubr.bf16.mxu0 %v10013_v51  ;;  %v10024_v51 = vld [vmem:[#allocation122_spill] sm:$0xff] }
 0x2ca   : > { %7007 = vmatmul.mubr.bf16.gmra.mrb[4].mxu1 %v10014_v33  ;;  %v10025_v33 = vld [vmem:[#allocation110_spill] sm:$0xff] }
 0x2cb   : > { %7010 = vmatprep.mubr.bf16.mxu1 %v10015_v31  ;;  %v10026_v31 = vld [vmem:[#allocation116_spill] sm:$0xff] }
 0x2cd   : > { %6827 = vmatmul.mubr.bf16.gmra.mrb[140].mxu0 %v10016_v48 }
 0x2ce   : > { %6830 = vmatprep.mubr.bf16.mxu0 %v10017_v36 }
 0x2d2   : > { %7011 = vmatmul.mubr.bf16.gmra.mrb[8].mxu1 %v10018_v41 }
 0x2d3   : > { %7014 = vmatprep.mubr.bf16.mxu1 %v10019_v52  ;;  %v2379_v52 = vsel %vm9274_vm11, %v8979_v57, %v9189_v42  ;;  %v10032_v57 = vld [vmem:[#allocation39_spill] sm:$0xff]  ;;  %v10033_v42 = vld [vmem:[#allocation45_spill] sm:$0xff] }
 0x2d5   : > { %6831 = vmatmul.mubr.bf16.gmra.mrb[144].mxu0 %v10020_v23 }
 0x2d6   : > { %6834 = vmatprep.mubr.bf16.mxu0 %v10021_v46 }
 0x2da   : > { %7015 = vmatmul.mubr.bf16.gmra.mrb[12].mxu1 %v10022_v20  ;;  %v10030_v20 = vld [vmem:[#allocation33_spill] sm:$0xff] }
 0x2db   : > { %7018 = vmatprep.mubr.bf16.mxu1 %v10023_v11  ;;  %v10029_v11 = vsel %vm8345_vm8, %v9008_v8, %v8292_v32 }
 0x2dd   : > { %6835 = vmatmul.mubr.bf16.gmra.mrb[148].mxu0 %v10024_v51 }
 0x2de   : > { %6838 = vmatprep.mubr.bf16.mxu0 %v8977_v15 }
 0x2e2   : > { %7019 = vmatmul.mubr.bf16.gmra.mrb[16].mxu1 %v10025_v33  ;;  %v10031_v33 = vld [vmem:[#allocation37_spill] sm:$0xff] }
 0x2e3   : > { %7022 = vmatprep.mubr.bf16.mxu1 %v10026_v31  ;;  %v10034_v31 = vld [vmem:[#allocation25_spill] sm:$0xff] }
 0x2e4   : > { %v3768_v32 = vsel %vm9274_vm11, %v9034_v59, %v10034_v31  ;;  %v10040_v59 = vld [vmem:[#allocation58_spill] sm:$0xff]  ;;  %v7820_v31 = vld [vmem:[#allocation7 + $0x238] sm:$0xff]  }
 0x2e5   : > { %6839 = vmatmul.mubr.bf16.gmra.mrb[152].mxu0 %v2379_v52  ;;  %v10038_v52 = vld [vmem:[#allocation50_spill] sm:$0xff] }
 0x2e6   : > { %6858 = vmatprep.mubr.bf16.mxu0 %v10029_v11  ;;  %v7807_v11 = vld [vmem:[#allocation7 + $0x1d0] sm:$0xff]  }
 0x2ea   : > { %7023 = vmatmul.mubr.bf16.gmra.mrb[20].mxu1 %v8949_v30  ;;  %v10035_v30 = vld [vmem:[#allocation23_spill] sm:$0xff] }
 0x2eb   : > { %7026 = vmatprep.mubr.bf16.mxu1 %v8970_v18  ;;  %v10036_v18 = vld [vmem:[#allocation29_spill] sm:$0xff] }
 0x2ec   : > { %v10037_v8 = vsel %vm8345_vm8, %v10035_v30, %v10036_v18 }
 0x2ed   : > { %6859 = vmatmul.mubr.bf16.vlgmr.msra.gmra.mrb[108].mxu0 %v10030_v20  ;;  %v7809_v20 = vld [vmem:[#allocation7 + $0x1e0] sm:$0xff]  }
 0x2ee   : > { %6862 = vmatprep.mubr.bf16.mxu0 %v10031_v33  ;;  %v7817_v33 = vld [vmem:[#allocation7 + $0x220] sm:$0xff]  }
 0x2f2   : > { %7027 = vmatmul.mubr.bf16.gmra.mrb[24].mxu1 %v8989_v9  ;;  %v10039_v9 = vld [vmem:[#allocation53_spill] sm:$0xff] }
 0x2f3   : > { %7030 = vmatprep.mubr.bf16.mxu1 %v9032_v29  ;;  %v7806_v29 = vld [vmem:[#allocation7 + $0x1c8] sm:$0xff]  }
 0x2f5   : > { %6863 = vmatmul.mubr.bf16.gmra.mrb[112].mxu0 %v10032_v57  ;;  %v7818_v57 = vld [vmem:[#allocation7 + $0x228] sm:$0xff]  }
 0x2f6   : > { %6866 = vmatprep.mubr.bf16.mxu0 %v10033_v42  ;;  %v7819_v42 = vld [vmem:[#allocation7 + $0x230] sm:$0xff]  }
 0x2fa   : > { %7031 = vmatmul.mubr.bf16.gmra.mrb[28].mxu1 %v3768_v32  ;;  %v10048_v32 = vld [vmem:[#allocation57_spill] sm:$0xff] }
 0x2fb   : > { %7050 = vmatprep.mubr.bf16.mxu1 %v10037_v8  ;;  %v10049_v8 = vld [vmem:[#allocation66_spill] sm:$0xff] }
 0x2fd   : > { %6867 = vmatmul.mubr.bf16.gmra.mrb[116].mxu0 %v10038_v52 }
 0x2fe   : > { %6870 = vmatprep.mubr.bf16.mxu0 %v10039_v9  ;;  %v10050_v9 = vld [vmem:[#allocation70_spill] sm:$0xff] }
 0x302   : > { %7051 = vmatmul.mubr.bf16.vlgmr.msra.gmra.mrb[32].mxu1 %v8406_v25  ;;  %v7810_v25 = vld [vmem:[#allocation7 + $0x1e8] sm:$0xff]  }
 0x303   : > { %7099 = vmatpush3.bf16.msra.mxu1 %v7805_v22  ;;  %7054 = vmatprep.mubr.bf16.mxu1 %v9047_v21  ;;  %v7811_v21 = vld [vmem:[#allocation7 + $0x1f0] sm:$0xff]   ;;  %v7812_v22 = vld [vmem:[#allocation7 + $0x1f8] sm:$0xff]  }
 0x304   : > { %7100 = vmatprep.subr.bf16.mxu1 %v7806_v29 }
 0x305   : > { %6871 = vmatmul.mubr.bf16.gmra.mrb[120].mxu0 %v10040_v59 }
 0x307   : > { %7101 = vmatpush3.bf16.msra.mxu1 %v7806_v29 }
 0x308   : > { %7102 = vmatprep.subr.bf16.mxu1 %v7807_v11 }
 0x30a   : > { %7055 = vmatmul.mubr.bf16.gmra.mrb[36].mxu1 %v9051_v50  ;;  %v4111_v50 = vunpack.c.l.b16 %v9922_v10 }
 0x30b   : > { %7058 = vmatprep.mubr.bf16.mxu1 %v8511_v19  ;;  %7103 = vmatpush3.bf16.msra.mxu1 %v7807_v11  ;;  %v7813_v19 = vld [vmem:[#allocation7 + $0x200] sm:$0xff]  }
 0x30c   : > { %7104 = vmatprep.subr.bf16.mxu1 %v7808_v14 }
 0x30f   : > { %7105 = vmatpush3.bf16.msra.mxu1 %v7808_v14  ;;  %v10051_v14 = vld [vmem:[#allocation81_spill] sm:$0xff] }
 0x310   : > { %7106 = vmatprep.subr.bf16.mxu1 %v7809_v20 }
 0x312   : > { %7059 = vmatmul.mubr.bf16.gmra.mrb[40].mxu1 %v9066_v4  ;;  %v10041_v4 = vshrl.u32 %v9003_v56, 16 }
 0x313   : > { %7062 = vmatprep.mubr.bf16.mxu1 %v9079_v53  ;;  %7107 = vmatpush3.bf16.msra.mxu1 %v7809_v20 }
 0x314   : > { %7108 = vmatprep.subr.bf16.mxu1 %v7810_v25  ;;  %v4131_v53 = vrot.slane %v10041_v4, 7  ;;  %v10053_v4 = vld [vmem:[#allocation97_spill] sm:$0xff] }
 0x317   : > { %7109 = vmatpush3.bf16.msra.mxu1 %v7810_v25 }
 0x318   : > { %7110 = vmatprep.subr.bf16.mxu1 %v7811_v21 }
 0x31a   : > { %7063 = vmatmul.mubr.bf16.gmra.mrb[44].mxu1 %v8603_v35  ;;  %v4110_v35 = vunpack.c.h.b16 %v9922_v10 }
 0x31b   : > { %7066 = vmatprep.mubr.bf16.mxu1 %v9099_v55  ;;  %7111 = vmatpush3.bf16.msra.mxu1 %v7811_v21 }
 0x31c   : > { %7112 = vmatprep.subr.bf16.mxu1 %v7812_v22  ;;  %v9331_v55 = vpack.c.b16 %v4111_v50, %v4110_v35 }
 0x31f   : > { %7113 = vmatpush3.bf16.msra.mxu1 %v7812_v22  ;;  %v10052_v22 = vld [vmem:[#allocation85_spill] sm:$0xff] }
 0x320   : > { %7162 = vmatprep.subr.bf16.mxu1 %v7813_v19 }
 0x322   : > { %7067 = vmatmul.mubr.bf16.gmra.mrb[0].mxu1 %v9103_v17  ;;  %v10042_v17 = vshll.u32 %v9003_v56, 16 }
 0x323   : > { %7070 = vmatprep.mubr.bf16.mxu1 %v9942_v61 }
 0x324   : > { %v4134_v61 = vor.u32 %v10042_v17, %v4131_v53  ;;  %v10054_v17 = vld [vmem:[#allocation101_spill] sm:$0xff] }
 0x326   : > { %v4135_v10 = vsel %vm1454_vm4, %v8981_v27, %v4134_v61  ;;  %v7815_v27 = vld [vmem:[#allocation7 + $0x210] sm:$0xff]  }
 0x32a   : > { %7071 = vmatmul.mubr.bf16.gmra.mrb[4].mxu1 %v9119_v62  ;;  %v9801_v62 = vshrl.u32 %v9331_v55, 16 }
 0x32b   : > { %7074 = vmatprep.mubr.bf16.mxu1 %v9133_v26 }
 0x32c   : > { %v4139_v26 = vrot.slane %v9801_v62, 7  ;;  %v10063_v62 = vld [vmem:[#allocation90_spill] sm:$0xff] }
 0x332   : > { %7075 = vmatmul.mubr.bf16.gmra.mrb[8].mxu1 %v9951_v37  ;;  %v4140_v37 = vshll.u32 %v9331_v55, 16 }
 0x333   : > { %7078 = vmatprep.mubr.bf16.mxu1 %v9150_v60 }
 0x334   : > { %v4142_v60 = vor.u32 %v4140_v37, %v4139_v26 }
 0x33a   : > { %7079 = vmatmul.mubr.bf16.gmra.mrb[12].mxu1 %v9154_v1  ;;  %v4143_v1 = vsel %vm1454_vm4, %v4131_v53, %v4142_v60  ;;  %v10055_v60 = vld [vmem:[#allocation113_spill] sm:$0xff] }
 0x33b   : > { %7082 = vmatprep.mubr.bf16.mxu1 %v9964_v45  ;;  %v10043_v45 = vld [vmem:[#allocation24_spill] sm:$0xff] }
 0x342   : > { %7083 = vmatmul.mubr.bf16.gmra.mrb[16].mxu1 %v9168_v34  ;;  %v7814_v34 = vld [vmem:[#allocation7 + $0x208] sm:$0xff]  }
 0x343   : > { %7086 = vmatprep.mubr.bf16.mxu1 %v9181_v24  ;;  %v10044_v24 = vld [vmem:[#allocation32_spill] sm:$0xff] }
 0x34a   : > { %7087 = vmatmul.mubr.bf16.gmra.mrb[20].mxu1 %v9971_v54  ;;  %v10045_v54 = vld [vmem:[#allocation38_spill] sm:$0xff] }
 0x34b   : > { %7090 = vmatprep.mubr.bf16.mxu1 %v9197_v0  ;;  %v10046_v0 = vld [vmem:[#allocation44_spill] sm:$0xff] }
 0x352   : > { %7091 = vmatmul.mubr.bf16.gmra.mrb[24].mxu1 %v9000_v3  ;;  %v7816_v3 = vld [vmem:[#allocation7 + $0x218] sm:$0xff]  }
 0x353   : > { %7094 = vmatprep.mubr.bf16.mxu1 %v4135_v10 }
 0x35a   : > { %7095 = vmatmul.mubr.bf16.gmra.mrb[28].mxu1 %v4143_v1 }
 0x35b   : > { %7114 = vmatprep.mubr.msk.bf16.mxu1 %vm8303_vm7, %v10043_v45 }
 0x362   : > { %7115 = vmatmul.mubr.msk.bf16.vlgmr.msra.gmra.mrb[32].mxu1 %vm8359_vm9, %v10044_v24  ;;  %v10056_v24 = vld [vmem:[#allocation117_spill] sm:$0xff] }
 0x363   : > { %7163 = vmatpush3.bf16.msra.mxu1 %v7813_v19  ;;  %7118 = vmatprep.mubr.bf16.mxu1 %v8415_v43  ;;  %v10047_v43 = vld [vmem:[#allocation51_spill] sm:$0xff] }
 0x364   : > { %7164 = vmatprep.subr.bf16.mxu1 %v7814_v34 }
 0x367   : > { %7165 = vmatpush3.bf16.msra.mxu1 %v7814_v34 }
 0x368   : > { %7166 = vmatprep.subr.bf16.mxu1 %v7815_v27 }
 0x36a   : > { %7119 = vmatmul.mubr.msk.bf16.gmra.mrb[36].mxu1 %vm8303_vm7, %v10045_v54 }
 0x36b   : > { %7122 = vmatprep.mubr.msk.bf16.mxu1 %vm8359_vm9, %v10046_v0  ;;  %7167 = vmatpush3.bf16.msra.mxu1 %v7815_v27 }
 0x36c   : > { %7168 = vmatprep.subr.bf16.mxu1 %v7816_v3 }
 0x36f   : > { %7169 = vmatpush3.bf16.msra.mxu1 %v7816_v3 }
 0x370   : > { %7170 = vmatprep.subr.bf16.mxu1 %v7817_v33 }
 0x372   : > { %7123 = vmatmul.mubr.bf16.gmra.mrb[40].mxu1 %v8520_v63 }
 0x373   : > { %7126 = vmatprep.mubr.msk.bf16.mxu1 %vm8303_vm7, %v10047_v43  ;;  %7171 = vmatpush3.bf16.msra.mxu1 %v7817_v33 }
 0x374   : > { %7172 = vmatprep.subr.bf16.mxu1 %v7818_v57 }
 0x377   : > { %7173 = vmatpush3.bf16.msra.mxu1 %v7818_v57 }
 0x378   : > { %7174 = vmatprep.subr.bf16.mxu1 %v7819_v42 }
 0x37a   : > { %7127 = vmatmul.mubr.msk.bf16.gmra.mrb[44].mxu1 %vm8359_vm9, %v10048_v32 }
 0x37b   : > { %7130 = vmatprep.mubr.bf16.mxu1 %v8612_v49  ;;  %7175 = vmatpush3.bf16.msra.mxu1 %v7819_v42 }
 0x37c   : > { %7176 = vmatprep.subr.bf16.mxu1 %v7820_v31 }
 0x37f   : > { %7177 = vmatpush3.bf16.msra.mxu1 %v7820_v31 }
 0x380   : > { %v9366_v63 = vpop.f32.mrb[124].mxu0 }
 0x381   : > { %v9368_v30 = vpop.f32.mrb[125].mxu0 }
 0x382   : > { %v9370_v18 = vpop.f32.mrb[126].mxu0  ;;  %7131 = vmatmul.mubr.msk.bf16.gmra.mrb[0].mxu1 %vm8303_vm7, %v10049_v8 }
 0x383   : > { %v9375_v52 = vpop.f32.mrb[127].mxu0  ;;  %7134 = vmatprep.mubr.msk.bf16.mxu1 %vm8359_vm9, %v10050_v9 }
 0x388   : > { %v9380_v49 = vpop.f32.mrb[128].mxu0 }
 0x389   : > { %v9382_v29 = vpop.f32.mrb[129].mxu0 }
 0x38a   : > { %v9384_v11 = vpop.f32.mrb[130].mxu0  ;;  %7135 = vmatmul.mubr.bf16.gmra.mrb[4].mxu1 %v9937_v28 }
 0x38b   : > { %v9387_v59 = vpop.f32.mrb[131].mxu0  ;;  %7138 = vmatprep.mubr.msk.bf16.mxu1 %vm8303_vm7, %v10051_v14  ;;  %v10059_v14 = vld [vmem:[#allocation54_spill] sm:$0xff] }
 0x390   : > { %v9392_v20 = vpop.f32.mrb[132].mxu0 }
 0x391   : > { %v9394_v25 = vpop.f32.mrb[133].mxu0 }
 0x392   : > { %v9396_v21 = vpop.f32.mrb[134].mxu0  ;;  %7139 = vmatmul.mubr.msk.bf16.gmra.mrb[8].mxu1 %vm8359_vm9, %v10052_v22 }
 0x393   : > { %v9401_v19 = vpop.f32.mrb[135].mxu0  ;;  %7142 = vmatprep.mubr.bf16.mxu1 %v9949_v40 }
 0x398   : > { %v9404_v28 = vpop.f32.mrb[136].mxu0 }
 0x399   : > { %v9406_v35 = vpop.f32.mrb[137].mxu0 }
 0x39a   : > { %v9408_v50 = vpop.f32.mrb[138].mxu0  ;;  %7143 = vmatmul.mubr.msk.bf16.gmra.mrb[12].mxu1 %vm8303_vm7, %v10053_v4 }
 0x39b   : > { %v9413_v53 = vpop.f32.mrb[139].mxu0  ;;  %7146 = vmatprep.mubr.msk.bf16.mxu1 %vm8359_vm9, %v10054_v17  ;;  %v10060_v17 = vld [vmem:[#allocation55_spill] sm:$0xff] }
 0x3a0   : > { %v9418_v61 = vpop.f32.mrb[140].mxu0 }
 0x3a1   : > { %v9420_v26 = vpop.f32.mrb[141].mxu0 }
 0x3a2   : > { %v9422_v40 = vpop.f32.mrb[142].mxu0  ;;  %7147 = vmatmul.mubr.bf16.gmra.mrb[16].mxu1 %v9959_v6 }
 0x3a3   : > { %v9425_v10 = vpop.f32.mrb[143].mxu0  ;;  %7150 = vmatprep.mubr.msk.bf16.mxu1 %vm8303_vm7, %v10055_v60 }
 0x3a8   : > { %v9430_v1 = vpop.f32.mrb[144].mxu0 }
 0x3a9   : > { %v9432_v45 = vpop.f32.mrb[145].mxu0 }
 0x3aa   : > { %v9434_v34 = vpop.f32.mrb[146].mxu0  ;;  %7151 = vmatmul.mubr.msk.bf16.gmra.mrb[20].mxu1 %vm8359_vm9, %v10056_v24 }
 0x3ab   : > { %v9439_v27 = vpop.f32.mrb[147].mxu0  ;;  %7154 = vmatprep.mubr.bf16.mxu1 %v8952_v2 }
 0x3b0   : > { %v9442_v6 = vpop.f32.mrb[148].mxu0 }
 0x3b1   : > { %v9444_v3 = vpop.f32.mrb[149].mxu0 }
 0x3b2   : > { %v9446_v54 = vpop.f32.mrb[150].mxu0  ;;  %7155 = vmatmul.mubr.msk.bf16.gmra.mrb[24].mxu1 %vm8303_vm7, %v8964_v38  ;;  %v10058_v38 = vld [vmem:[#allocation40_spill] sm:$0xff] }
 0x3b3   : > { %v9451_v0 = vpop.f32.mrb[151].mxu0  ;;  %7158 = vmatprep.mubr.bf16.mxu1 %v9003_v56 }
 0x3b8   : > { %v9454_v16 = vpop.f32.mrb[152].mxu0 }
 0x3b9   : > { %v9456_v33 = vpop.f32.mrb[153].mxu0 }
 0x3ba   : > { %v9458_v57 = vpop.f32.mrb[154].mxu0  ;;  %7159 = vmatmul.mubr.bf16.gmra.mrb[28].mxu1 %v9331_v55 }
 0x3bb   : > { %v9461_v2 = vpop.f32.mrb[155].mxu0  ;;  %7178 = vmatprep.mubr.bf16.mxu1 %v9981_v58 }
 0x3bc   : > { %10057 = vst [vmem:[#allocation46_spill] sm:$0xff] %v9461_v2 }
 0x3c0   : > { %v6860_v43 = vpop.f32.mrb[108].mxu0 }
 0x3c1   : > { %v3067_v42 = vpop.f32.mrb[109].mxu0 }
 0x3c2   : > { %v6861_v39 = vpop.f32.mrb[110].mxu0  ;;  %7179 = vmatmul.mubr.bf16.vlgmr.msra.gmra.mrb[32].mxu1 %v10058_v38 }
 0x3c3   : > { %v3070_v31 = vpop.f32.mrb[111].mxu0  ;;  %7182 = vmatprep.mubr.bf16.mxu1 %v9985_v44 }
 0x3c8   : > { %v6864_v56 = vpop.f32.mrb[112].mxu0 }
 0x3c9   : > { %v3083_v32 = vpop.f32.mrb[113].mxu0 }
 0x3ca   : > { %v6865_v8 = vpop.f32.mrb[114].mxu0  ;;  %7183 = vmatmul.mubr.bf16.gmra.mrb[36].mxu1 %v9986_v12 }
 0x3cb   : > { %v9467_v9 = vpop.f32.mrb[115].mxu0  ;;  %7186 = vmatprep.mubr.bf16.mxu1 %v10059_v14  ;;  %v10061_v14 = vld [vmem:[#allocation82_spill] sm:$0xff] }
 0x3d0   : > { %v9470_v22 = vpop.f32.mrb[116].mxu0 }
 0x3d1   : > { %v9472_v58 = vpop.f32.mrb[117].mxu0 }
 0x3d2   : > { %v9474_v4 = vpop.f32.mrb[118].mxu0  ;;  %7187 = vmatmul.mubr.bf16.gmra.mrb[40].mxu1 %v10060_v17  ;;  %v10062_v17 = vld [vmem:[#allocation83_spill] sm:$0xff] }
 0x3d3   : > { %v9477_v60 = vpop.f32.mrb[119].mxu0  ;;  %7190 = vmatprep.mubr.bf16.mxu1 %v9999_v5  ;;  %v10064_v5 = vld [vmem:[#allocation98_spill] sm:$0xff] }
 0x3d8   : > { %v9480_v44 = vpop.f32.mrb[120].mxu0 }
 0x3d9   : > { %v9482_v24 = vpop.f32.mrb[121].mxu0 }
 0x3da   : > { %v9484_v12 = vpop.f32.mrb[122].mxu0  ;;  %7191 = vmatmul.mubr.bf16.gmra.mrb[44].mxu1 %v10001_v7  ;;  %v10065_v7 = vld [vmem:[#allocation124_spill] sm:$0xff] }
 0x3db   : > { %v9487_v38 = vpop.f32.mrb[123].mxu0  ;;  %7194 = vmatprep.mubr.bf16.mxu1 %v10004_v47  ;;  %v4834_v47 = vrot.slane %v4140_v37, 1 }
 0x3e2   : > { %7195 = vmatmul.mubr.bf16.gmra.mrb[0].mxu1 %v10005_v13  ;;  %v10066_v13 = vld [vmem:[#allocation125_spill] sm:$0xff] }
 0x3e3   : > { %7198 = vmatprep.mubr.bf16.mxu1 %v10061_v14  ;;  %v10069_v14 = vld [vmem:[#allocation27_spill] sm:$0xff] }
 0x3ea   : > { %7199 = vmatmul.mubr.bf16.gmra.mrb[4].mxu1 %v10062_v17 }
 0x3eb   : > { %7202 = vmatprep.mubr.bf16.mxu1 %v10063_v62  ;;  %v10067_v62 = vld [vmem:[#allocation126_spill] sm:$0xff] }
 0x3f2   : > { %7203 = vmatmul.mubr.bf16.gmra.mrb[8].mxu1 %v10064_v5 }
 0x3f3   : > { %7206 = vmatprep.mubr.bf16.mxu1 %v10016_v48  ;;  %v4835_v48 = vsel %vm2276_vm3, %v10067_v62, %v4834_v47 }
 0x3fa   : > { %7207 = vmatmul.mubr.bf16.gmra.mrb[12].mxu1 %v10017_v36  ;;  %v10068_v36 = vshrl.u32 %v9331_v55, 16 }
 0x3fb   : > { %7210 = vmatprep.mubr.bf16.mxu1 %v10020_v23 }
 0x3fc   : > { %v4836_v23 = vor.u32 %v4834_v47, %v10068_v36 }
 0x402   : > { %7211 = vmatmul.mubr.bf16.gmra.mrb[16].mxu1 %v10021_v46  ;;  %v9515_v46 = vld [vmem:[%s9691_s4] ss:$0 sm:$0xff] }
 0x403   : > { %7214 = vmatprep.mubr.bf16.mxu1 %v10024_v51  ;;  %v4846_v51 = vsel %vm9274_vm11, %v4836_v23, %v10069_v14 }
 0x40a   : > { %7215 = vmatmul.mubr.bf16.gmra.mrb[20].mxu1 %v8977_v15 }
 0x40b   : > { %7218 = vmatprep.mubr.bf16.mxu1 %v10065_v7 }
 0x412   : > { %7219 = vmatmul.mubr.bf16.gmra.mrb[24].mxu1 %v10066_v13 }
 0x413   : > { %7222 = vmatprep.mubr.bf16.mxu1 %v4835_v48 }
 0x41a   : > { %7223 = vmatmul.mubr.bf16.gmra.mrb[28].mxu1 %v4846_v51 }
 0x495   : > { %v7180_v15 = vpop.f32.mrb[32].mxu1 }
 0x496   : > { %v7242_v37 = vadd.f32 %v7180_v15, %v6860_v43  ;;  %v4946_v17 = vpop.f32.mrb[33].mxu1 }
 0x497   : > { %v7243_v5 = vadd.f32 %v4946_v17, %v3067_v42  ;;  %v7181_v7 = vpop.f32.mrb[34].mxu1 }
 0x498   : > { %v5194_v13 = vadd.f32 %v7242_v37, %v9515_v46  ;;  %v7244_v62 = vadd.f32 %v7181_v7, %v6861_v39  ;;  %v4949_v55 = vpop.f32.mrb[35].mxu1 }
 0x499   : > { %v5192_v47 = vadd.f32 %v7243_v5, %v9515_v46  ;;  %v7245_v41 = vadd.f32 %v4949_v55, %v3070_v31 }
 0x49a   : > { %v5195_v48 = vadd.f32 %v7244_v62, %v9515_v46  ;;  %v5242_v23 = vmax.f32 %v5194_v13, 0.0 }
 0x49b   : > { %v5193_v36 = vadd.f32 %v7245_v41, %v9515_v46  ;;  %v5240_v51 = vmax.f32 %v5192_v47, 0.0 }
 0x49c   : > { %v5243_v14 = vmax.f32 %v5195_v48, 0.0 }
 0x49d   : > { %v5241_v43 = vmax.f32 %v5193_v36, 0.0  ;;  %v7184_v15 = vpop.f32.mrb[36].mxu1 }
 0x49e   : > { %v6068_v42 = vpack.c.bf16 %v5243_v14, %v5242_v23  ;;  %v7246_v17 = vadd.f32 %v7184_v15, %v6864_v56  ;;  %v4962_v2 = vpop.f32.mrb[37].mxu1 }
 0x49f   : > { %v6063_v37 = vpack.c.bf16 %v5241_v43, %v5240_v51  ;;  %v7247_v39 = vadd.f32 %v4962_v2, %v3083_v32  ;;  %v7185_v7 = vpop.f32.mrb[38].mxu1 }
 0x4a0   : > { %6180 = vst [vmem:[%s8186_s13 + $0x8] sm:$0xff] %v6068_v42   ;;  %v5198_v5 = vadd.f32 %v7246_v17, %v9515_v46  ;;  %v7248_v31 = vadd.f32 %v7185_v7, %v6865_v8  ;;  %v4965_v55 = vpop.f32.mrb[39].mxu1 }
 0x4a1   : > { %6064 = vst [vmem:[%s8186_s13] sm:$0xff] %v6063_v37   ;;  %v5196_v62 = vadd.f32 %v7247_v39, %v9515_v46  ;;  %v7249_v13 = vadd.f32 %v4965_v55, %v9467_v9 }
 0x4a2   : > { %v5199_v47 = vadd.f32 %v7248_v31, %v9515_v46  ;;  %v5246_v56 = vmax.f32 %v5198_v5, 0.0 }
 0x4a3   : > { %v5197_v41 = vadd.f32 %v7249_v13, %v9515_v46  ;;  %v5244_v2 = vmax.f32 %v5196_v62, 0.0 }
 0x4a4   : > { %v5247_v48 = vmax.f32 %v5199_v47, 0.0 }
 0x4a5   : > { %v5245_v32 = vmax.f32 %v5197_v41, 0.0  ;;  %v7188_v36 = vpop.f32.mrb[40].mxu1 }
 0x4a6   : > { %v6078_v23 = vpack.c.bf16 %v5247_v48, %v5246_v56  ;;  %v7250_v8 = vadd.f32 %v7188_v36, %v9470_v22  ;;  %v4978_v14 = vpop.f32.mrb[41].mxu1 }
 0x4a7   : > { %v6073_v51 = vpack.c.bf16 %v5245_v32, %v5244_v2  ;;  %v7251_v43 = vadd.f32 %v4978_v14, %v9472_v58  ;;  %v7189_v15 = vpop.f32.mrb[42].mxu1 }
 0x4a8   : > { %6182 = vst [vmem:[%s8186_s13 + $0x18] sm:$0xff] %v6078_v23   ;;  %v5202_v9 = vadd.f32 %v7250_v8, %v9515_v46  ;;  %v7252_v42 = vadd.f32 %v7189_v15, %v9474_v4  ;;  %v4981_v17 = vpop.f32.mrb[43].mxu1 }
 0x4a9   : > { %6181 = vst [vmem:[%s8186_s13 + $0x10] sm:$0xff] %v6073_v51   ;;  %v5200_v37 = vadd.f32 %v7251_v43, %v9515_v46  ;;  %v7253_v39 = vadd.f32 %v4981_v17, %v9477_v60 }
 0x4aa   : > { %v5203_v7 = vadd.f32 %v7252_v42, %v9515_v46  ;;  %v5250_v5 = vmax.f32 %v5202_v9, 0.0 }
 0x4ab   : > { %v5201_v22 = vadd.f32 %v7253_v39, %v9515_v46  ;;  %v5248_v31 = vmax.f32 %v5200_v37, 0.0 }
 0x4ac   : > { %v5251_v58 = vmax.f32 %v5203_v7, 0.0 }
 0x4ad   : > { %v5249_v55 = vmax.f32 %v5201_v22, 0.0  ;;  %v7192_v62 = vpop.f32.mrb[44].mxu1 }
 0x4ae   : > { %v6088_v13 = vpack.c.bf16 %v5251_v58, %v5250_v5  ;;  %v7254_v4 = vadd.f32 %v7192_v62, %v9480_v44  ;;  %v4994_v47 = vpop.f32.mrb[45].mxu1 }
 0x4af   : > { %v6083_v41 = vpack.c.bf16 %v5249_v55, %v5248_v31  ;;  %v7255_v56 = vadd.f32 %v4994_v47, %v9482_v24  ;;  %v7193_v48 = vpop.f32.mrb[46].mxu1 }
 0x4b0   : > { %6184 = vst [vmem:[%s8186_s13 + $0x28] sm:$0xff] %v6088_v13   ;;  %v5206_v60 = vadd.f32 %v7254_v4, %v9515_v46  ;;  %v7256_v2 = vadd.f32 %v7193_v48, %v9484_v12  ;;  %v4997_v32 = vpop.f32.mrb[47].mxu1 }
 0x4b1   : > { %6183 = vst [vmem:[%s8186_s13 + $0x20] sm:$0xff] %v6083_v41   ;;  %v5204_v36 = vadd.f32 %v7255_v56, %v9515_v46  ;;  %v7257_v23 = vadd.f32 %v4997_v32, %v9487_v38 }
 0x4b2   : > { %v5207_v8 = vadd.f32 %v7256_v2, %v9515_v46  ;;  %v5254_v14 = vmax.f32 %v5206_v60, 0.0 }
 0x4b3   : > { %v5205_v44 = vadd.f32 %v7257_v23, %v9515_v46  ;;  %v5252_v51 = vmax.f32 %v5204_v36, 0.0 }
 0x4b4   : > { %v5255_v24 = vmax.f32 %v5207_v8, 0.0 }
 0x4b5   : > { %v5253_v43 = vmax.f32 %v5205_v44, 0.0  ;;  %v7196_v15 = vpop.f32.mrb[0].mxu1 }
 0x4b6   : > { %v6098_v9 = vpack.c.bf16 %v5255_v24, %v5254_v14  ;;  %v7258_v12 = vadd.f32 %v7196_v15, %v9366_v63  ;;  %v5010_v42 = vpop.f32.mrb[1].mxu1 }
 0x4b7   : > { %v6093_v17 = vpack.c.bf16 %v5253_v43, %v5252_v51  ;;  %v7259_v37 = vadd.f32 %v5010_v42, %v9368_v30  ;;  %v7197_v39 = vpop.f32.mrb[2].mxu1 }
 0x4b8   : > { %6186 = vst [vmem:[%s8186_s13 + $0x38] sm:$0xff] %v6098_v9   ;;  %v5210_v38 = vadd.f32 %v7258_v12, %v9515_v46  ;;  %v7260_v7 = vadd.f32 %v7197_v39, %v9370_v18  ;;  %v5013_v22 = vpop.f32.mrb[3].mxu1 }
 0x4b9   : > { %6185 = vst [vmem:[%s8186_s13 + $0x30] sm:$0xff] %v6093_v17   ;;  %v5208_v5 = vadd.f32 %v7259_v37, %v9515_v46  ;;  %v7261_v58 = vadd.f32 %v5013_v22, %v9375_v52 }
 0x4ba   : > { %v5211_v31 = vadd.f32 %v7260_v7, %v9515_v46  ;;  %v5258_v55 = vmax.f32 %v5210_v38, 0.0 }
 0x4bb   : > { %v5209_v63 = vadd.f32 %v7261_v58, %v9515_v46  ;;  %v5256_v62 = vmax.f32 %v5208_v5, 0.0 }
 0x4bc   : > { %v5259_v30 = vmax.f32 %v5211_v31, 0.0 }
 0x4bd   : > { %v5257_v13 = vmax.f32 %v5209_v63, 0.0  ;;  %v7200_v4 = vpop.f32.mrb[4].mxu1 }
 0x4be   : > { %v6108_v47 = vpack.c.bf16 %v5259_v30, %v5258_v55  ;;  %v7262_v18 = vadd.f32 %v7200_v4, %v9380_v49  ;;  %v5026_v41 = vpop.f32.mrb[5].mxu1 }
 0x4bf   : > { %v6103_v56 = vpack.c.bf16 %v5257_v13, %v5256_v62  ;;  %v7263_v48 = vadd.f32 %v5026_v41, %v9382_v29  ;;  %v7201_v60 = vpop.f32.mrb[6].mxu1 }
 0x4c0   : > { %6188 = vst [vmem:[%s8186_s13 + $0x48] sm:$0xff] %v6108_v47   ;;  %v5214_v52 = vadd.f32 %v7262_v18, %v9515_v46  ;;  %v7264_v2 = vadd.f32 %v7201_v60, %v9384_v11  ;;  %v5029_v32 = vpop.f32.mrb[7].mxu1 }
 0x4c1   : > { %6187 = vst [vmem:[%s8186_s13 + $0x40] sm:$0xff] %v6103_v56   ;;  %v5212_v36 = vadd.f32 %v7263_v48, %v9515_v46  ;;  %v7265_v23 = vadd.f32 %v5029_v32, %v9387_v59 }
 0x4c2   : > { %v5215_v8 = vadd.f32 %v7264_v2, %v9515_v46  ;;  %v5262_v44 = vmax.f32 %v5214_v52, 0.0 }
 0x4c3   : > { %v5213_v49 = vadd.f32 %v7265_v23, %v9515_v46  ;;  %v5260_v14 = vmax.f32 %v5212_v36, 0.0 }
 0x4c4   : > { %v5263_v29 = vmax.f32 %v5215_v8, 0.0 }
 0x4c5   : > { %v5261_v24 = vmax.f32 %v5213_v49, 0.0  ;;  %v7204_v51 = vpop.f32.mrb[8].mxu1 }
 0x4c6   : > { %v6118_v43 = vpack.c.bf16 %v5263_v29, %v5262_v44  ;;  %v7266_v11 = vadd.f32 %v7204_v51, %v9392_v20  ;;  %v5042_v15 = vpop.f32.mrb[9].mxu1 }
 0x4c7   : > { %v6113_v9 = vpack.c.bf16 %v5261_v24, %v5260_v14  ;;  %v7267_v12 = vadd.f32 %v5042_v15, %v9394_v25  ;;  %v7205_v42 = vpop.f32.mrb[10].mxu1 }
 0x4c8   : > { %6190 = vst [vmem:[%s8186_s13 + $0x58] sm:$0xff] %v6118_v43   ;;  %v5218_v59 = vadd.f32 %v7266_v11, %v9515_v46  ;;  %v7268_v17 = vadd.f32 %v7205_v42, %v9396_v21  ;;  %v5045_v37 = vpop.f32.mrb[11].mxu1 }
 0x4c9   : > { %6189 = vst [vmem:[%s8186_s13 + $0x50] sm:$0xff] %v6113_v9   ;;  %v5216_v39 = vadd.f32 %v7267_v12, %v9515_v46  ;;  %v7269_v38 = vadd.f32 %v5045_v37, %v9401_v19 }
 0x4ca   : > { %v5219_v7 = vadd.f32 %v7268_v17, %v9515_v46  ;;  %v5266_v22 = vmax.f32 %v5218_v59, 0.0 }
 0x4cb   : > { %v5217_v20 = vadd.f32 %v7269_v38, %v9515_v46  ;;  %v5264_v5 = vmax.f32 %v5216_v39, 0.0 }
 0x4cc   : > { %v5267_v25 = vmax.f32 %v5219_v7, 0.0 }
 0x4cd   : > { %v5265_v58 = vmax.f32 %v5217_v20, 0.0  ;;  %v7208_v31 = vpop.f32.mrb[12].mxu1 }
 0x4ce   : > { %v6128_v63 = vpack.c.bf16 %v5267_v25, %v5266_v22  ;;  %v7270_v21 = vadd.f32 %v7208_v31, %v9404_v28  ;;  %v5058_v55 = vpop.f32.mrb[13].mxu1 }
 0x4cf   : > { %v6123_v30 = vpack.c.bf16 %v5265_v58, %v5264_v5  ;;  %v7271_v62 = vadd.f32 %v5058_v55, %v9406_v35  ;;  %v7209_v13 = vpop.f32.mrb[14].mxu1 }
 0x4d0   : > { %6192 = vst [vmem:[%s8186_s13 + $0x68] sm:$0xff] %v6128_v63   ;;  %v5222_v19 = vadd.f32 %v7270_v21, %v9515_v46  ;;  %v7272_v4 = vadd.f32 %v7209_v13, %v9408_v50  ;;  %v5061_v47 = vpop.f32.mrb[15].mxu1 }
 0x4d1   : > { %6191 = vst [vmem:[%s8186_s13 + $0x60] sm:$0xff] %v6123_v30   ;;  %v5220_v18 = vadd.f32 %v7271_v62, %v9515_v46  ;;  %v7273_v41 = vadd.f32 %v5061_v47, %v9413_v53 }
 0x4d2   : > { %v5223_v56 = vadd.f32 %v7272_v4, %v9515_v46  ;;  %v5270_v48 = vmax.f32 %v5222_v19, 0.0 }
 0x4d3   : > { %v5221_v28 = vadd.f32 %v7273_v41, %v9515_v46  ;;  %v5268_v60 = vmax.f32 %v5220_v18, 0.0 }
 0x4d4   : > { %v5271_v35 = vmax.f32 %v5223_v56, 0.0 }
 0x4d5   : > { %v5269_v52 = vmax.f32 %v5221_v28, 0.0  ;;  %v7212_v2 = vpop.f32.mrb[16].mxu1 }
 0x4d6   : > { %v6138_v32 = vpack.c.bf16 %v5271_v35, %v5270_v48  ;;  %v7274_v50 = vadd.f32 %v7212_v2, %v9418_v61  ;;  %v5074_v36 = vpop.f32.mrb[17].mxu1 }
 0x4d7   : > { %v6133_v23 = vpack.c.bf16 %v5269_v52, %v5268_v60  ;;  %v7275_v8 = vadd.f32 %v5074_v36, %v9420_v26  ;;  %v7213_v49 = vpop.f32.mrb[18].mxu1 }
 0x4d8   : > { %6194 = vst [vmem:[%s8186_s13 + $0x78] sm:$0xff] %v6138_v32   ;;  %v5226_v53 = vadd.f32 %v7274_v50, %v9515_v46  ;;  %v7276_v44 = vadd.f32 %v7213_v49, %v9422_v40  ;;  %v5077_v29 = vpop.f32.mrb[19].mxu1 }
 0x4d9   : > { %6193 = vst [vmem:[%s8186_s13 + $0x70] sm:$0xff] %v6133_v23   ;;  %v5224_v14 = vadd.f32 %v7275_v8, %v9515_v46  ;;  %v7277_v24 = vadd.f32 %v5077_v29, %v9425_v10  ;;  %v10070_v8 = vld [vmem:[#allocation46_spill] sm:$0xff] }
 0x4da   : > { %v5227_v51 = vadd.f32 %v7276_v44, %v9515_v46  ;;  %v5274_v43 = vmax.f32 %v5226_v53, 0.0 }
 0x4db   : > { %v5225_v61 = vadd.f32 %v7277_v24, %v9515_v46  ;;  %v5272_v11 = vmax.f32 %v5224_v14, 0.0 }
 0x4dc   : > { %v5275_v26 = vmax.f32 %v5227_v51, 0.0 }
 0x4dd   : > { %v5273_v15 = vmax.f32 %v5225_v61, 0.0  ;;  %v7216_v9 = vpop.f32.mrb[20].mxu1 }
 0x4de   : > { %v6148_v12 = vpack.c.bf16 %v5275_v26, %v5274_v43  ;;  %v7278_v40 = vadd.f32 %v7216_v9, %v9430_v1  ;;  %v5090_v42 = vpop.f32.mrb[21].mxu1 }
 0x4df   : > { %v6143_v59 = vpack.c.bf16 %v5273_v15, %v5272_v11  ;;  %v7279_v17 = vadd.f32 %v5090_v42, %v9432_v45  ;;  %v7217_v37 = vpop.f32.mrb[22].mxu1 }
 0x4e0   : > { %6196 = vst [vmem:[%s8186_s13 + $0x88] sm:$0xff] %v6148_v12   ;;  %v5230_v10 = vadd.f32 %v7278_v40, %v9515_v46  ;;  %v7280_v39 = vadd.f32 %v7217_v37, %v9434_v34  ;;  %v5093_v38 = vpop.f32.mrb[23].mxu1 }
 0x4e1   : > { %6195 = vst [vmem:[%s8186_s13 + $0x80] sm:$0xff] %v6143_v59   ;;  %v5228_v7 = vadd.f32 %v7279_v17, %v9515_v46  ;;  %v7281_v20 = vadd.f32 %v5093_v38, %v9439_v27 }
 0x4e2   : > { %v5231_v22 = vadd.f32 %v7280_v39, %v9515_v46  ;;  %v5278_v25 = vmax.f32 %v5230_v10, 0.0 }
 0x4e3   : > { %v5229_v1 = vadd.f32 %v7281_v20, %v9515_v46  ;;  %v5276_v5 = vmax.f32 %v5228_v7, 0.0 }
 0x4e4   : > { %v5279_v45 = vmax.f32 %v5231_v22, 0.0 }
 0x4e5   : > { %v5277_v58 = vmax.f32 %v5229_v1, 0.0  ;;  %v7220_v31 = vpop.f32.mrb[24].mxu1 }
 0x4e6   : > { %v6158_v63 = vpack.c.bf16 %v5279_v45, %v5278_v25  ;;  %v7282_v34 = vadd.f32 %v7220_v31, %v9442_v6  ;;  %v5106_v21 = vpop.f32.mrb[25].mxu1 }
 0x4e7   : > { %v6153_v55 = vpack.c.bf16 %v5277_v58, %v5276_v5  ;;  %v7283_v30 = vadd.f32 %v5106_v21, %v9444_v3  ;;  %v7221_v62 = vpop.f32.mrb[26].mxu1 }
 0x4e8   : > { %6198 = vst [vmem:[%s8186_s13 + $0x98] sm:$0xff] %v6158_v63   ;;  %v5234_v27 = vadd.f32 %v7282_v34, %v9515_v46  ;;  %v7284_v13 = vadd.f32 %v7221_v62, %v9446_v54  ;;  %v5109_v19 = vpop.f32.mrb[27].mxu1 }
 0x4e9   : > { %6197 = vst [vmem:[%s8186_s13 + $0x90] sm:$0xff] %v6153_v55   ;;  %v5232_v4 = vadd.f32 %v7283_v30, %v9515_v46  ;;  %v7285_v47 = vadd.f32 %v5109_v19, %v9451_v0 }
 0x4ea   : > { %v5235_v18 = vadd.f32 %v7284_v13, %v9515_v46  ;;  %v5282_v41 = vmax.f32 %v5234_v27, 0.0 }
 0x4eb   : > { %v5233_v6 = vadd.f32 %v7285_v47, %v9515_v46  ;;  %v5280_v56 = vmax.f32 %v5232_v4, 0.0 }
 0x4ec   : > { %v5283_v3 = vmax.f32 %v5235_v18, 0.0 }
 0x4ed   : > { %v5281_v28 = vmax.f32 %v5233_v6, 0.0  ;;  %v7224_v48 = vpop.f32.mrb[28].mxu1 }
 0x4ee   : > { %v6168_v35 = vpack.c.bf16 %v5283_v3, %v5282_v41  ;;  %v7286_v54 = vadd.f32 %v7224_v48, %v9454_v16  ;;  %v5122_v60 = vpop.f32.mrb[29].mxu1 }
 0x4ef   : > { %v6163_v52 = vpack.c.bf16 %v5281_v28, %v5280_v56  ;;  %v7287_v2 = vadd.f32 %v5122_v60, %v9456_v33  ;;  %v7225_v0 = vpop.f32.mrb[30].mxu1 }
 0x4f0   : > { %6200 = vst [vmem:[%s8186_s13 + $0xa8] sm:$0xff] %v6168_v35   ;;  %v5238_v32 = vadd.f32 %v7286_v54, %v9515_v46  ;;  %v7288_v50 = vadd.f32 %v7225_v0, %v9458_v57  ;;  %v5125_v36 = vpop.f32.mrb[31].mxu1 }
 0x4f1   : > { %6199 = vst [vmem:[%s8186_s13 + $0xa0] sm:$0xff] %v6163_v52   ;;  %v5236_v23 = vadd.f32 %v7287_v2, %v9515_v46  ;;  %v7289_v16 = vadd.f32 %v5125_v36, %v10070_v8 }
 0x4f2   : > { %v5239_v49 = vadd.f32 %v7288_v50, %v9515_v46  ;;  %v5286_v53 = vmax.f32 %v5238_v32, 0.0 }
 0x4f3   : > { %v5237_v33 = vadd.f32 %v7289_v16, %v9515_v46  ;;  %v5284_v29 = vmax.f32 %v5236_v23, 0.0 }
 0x4f4   : > { %v5287_v44 = vmax.f32 %v5239_v49, 0.0 }
 0x4f5   : > { %v5285_v57 = vmax.f32 %v5237_v33, 0.0 }
 0x4f6   : > { %v6178_v14 = vpack.c.bf16 %v5287_v44, %v5286_v53 }
 0x4f7   : > { %v6173_v24 = vpack.c.bf16 %v5285_v57, %v5284_v29 }
 0x4f8   : > { %6202 = vst [vmem:[%s8186_s13 + $0xb8] sm:$0xff] %v6178_v14  }
 0x4f9   : > { %6201 = vst [vmem:[%s8186_s13 + $0xb0] sm:$0xff] %v6173_v24  }
 0x4fa   : > { %7923 = shalt.err (!%p7920_p2)
}
 0x4fb   : > { %s7924_s11 = scalar_lea.hbm %s9633_s29, 3072  ;;  %s7928_s12 = scalar_lea.hbm %s9692_s5, 6144 }
 0x4fc   : > { %p7925_p3 = scmp.ne.s32.totalorder %s9633_s29, %s7924_s11  ;;  %p7929_p7 = scmp.lt.u32.totalorder %s9633_s29, %s9692_s5 }
 0x4fd   : > { %p7930_p9 = scmp.lt.u32.totalorder %s7928_s12, %s7924_s11  ;;  %p7932_p0 = scmp.lt.u32.totalorder %s7924_s11, %s9633_s29 }
 0x4fe   : > { %p7926_p5 = pnand %p7925_p3, %p10071_p4 }
 0x4ff   : > { %p7931_p12 = por %p7930_p9, %p7929_p7 }
 0x500   : > { %p7927_p6 = pneg %p7926_p5 }
 0x501   : > { %p7933_p13 = por %p7932_p0, %p7931_p12 }
 0x503   : > { %p7934_p1 = pnand %p7933_p13, %p7927_p6 }
 0x505   : > { %7937 = shalt.err (!%p7934_p1)
}
 0x506   : > { %s8011_s17 = smov 64   ;;  %s8012_s24 = smov 4  }
 0x507   : > { %7636 = dma.vmem_to_hbm [thread:$0]  (%p10071_p4), %s9635_s25, 3072, %s9633_s29, %s9641_s21, %s8011_s17, %s8011_s17, %s8012_s24  }
 0x508 PF: > { %p7653_p8 = scmp.ge.s32.totalorder %s7998_s23, 2  ;;  %s5576_s27 = sand.u32 1, %s7978_s18  }
 0x509   : > { %p10072_p10 = scmp.ne.s32.totalorder %s9804_s30, 0  ;;  %s5577_s8 = scalar_lea.sflag [#allocation6], %s5576_s27 }
 0x50b   : > { %p7646_p11 = pnand %p7653_p8, %p10072_p10 }
 0x50d   : > { %7973 = dma.done.wait (!%p7646_p11), %s5577_s8, 3072  }
 0x50e   : > { %7975 = vsyncadd (!%p7646_p11), %s5577_s8, 4294964224  ;;  %s20_s23 = sadd.s32 1, %s7998_s23   ;;  %s10073_s28 = sld [smem:[#allocation20_spill]] }
 0x50f   : > { %p17_p2 = scmp.ge.s32.totalorder %s20_s23, 4   ;;  %s10074_s18 = smov %s7982_s19 }
 0x510   : > { %s10075_s19 = smov %s7986_s20  ;;  %s10076_s20 = smov %s8096_s6 }
 0x511   : > { %s10077_s21 = smov %s7994_s22  ;;  %19 = sbr.rel (!%p17_p2) target bundleno = 6 (0x6), region = 108 }
 0x514   : > { %s10078_s22 = smov %s10073_s28 }
 0x518   :  { %5582 = vsyncpa [#allocation5], 1 }
 0x519   :  { %5584 = vsyncpa [#allocation5 + $0x1], 1 }
 0x51a   :  { %5585 = vsyncpa [#allocation8], 1 }
 0x51b   :  { %5586 = vsyncpa [#allocation6], 1 }
 0x51c   :  { %5588 = vsyncpa [#allocation6 + $0x1], 1 }
 0x51d   :  { %5589 = vsyncmov [#allocation3] }
 0x520   :  { %s5590_s30 = vpop.sfrf %5589 }
 0x521   :  { %p5928_p4 = scmp.ne.s32.totalorder %s5590_s30, 0 }
 0x523   :  { %5594 = shalt.err (%p5928_p4)  }
 0x524   :  { %5596 = vsyncmov [#allocation3 + $0x1] }
 0x527   :  { %s5597_s25 = vpop.sfrf %5596 }
 0x528   :  { %p5929_p3 = scmp.ne.s32.totalorder %s5597_s25, 0 }
 0x52a   :  { %5601 = shalt.err (%p5929_p3)  }

</bundles_post_ra>
